<compile_context>
chip_gen: v5e
topology: v5e:2x2
jax: 0.10.0
libtpu: 0.0.40
codegen_flags: <defaults>
</compile_context>

<pallas_src>
import jax
import jax.numpy as jnp
from jax.experimental import pallas as pl
from jax.experimental.pallas import tpu as pltpu

NEG_SLOPE = 0.2      # GATv2Conv default negative_slope
LANE = 128           # every dim (channels, nodes, edges) is padded to 128
NEG_INF = -1e9       # additive mask value for non-edges (bf16/f32 safe)

_VMEM = pl.BlockSpec(memory_space=pltpu.MemorySpace.VMEM)


# ----------------------------- fused Pallas kernel ---------------------------

def _gat_attend(xl, xr, src_oh, dst_oh, dst_oh_t, mask_bias, att, bias,
                e_proj=None):
    """GATv2 attention + aggregation + fused ReLU.

    xl [Ns, C] / xr [Nd, C] f32 (already projected, bias added), one-hots bf16
    (exact 0/1), mask_bias bf16 (0 at edges, -1e9 elsewhere), att/bias f32
    [1, C].  Feature matmuls: bf16 operands, f32 accumulation.  The score
    scatter is kept f32 end-to-end.
    """
    xl_b = xl.astype(jnp.bfloat16)

    # Gather per-edge endpoint features via exact one-hot matmuls (MXU).
    xl_e = jnp.dot(src_oh, xl_b, preferred_element_type=jnp.float32)      # [E, C]
    xr_e = jnp.dot(dst_oh, xr.astype(jnp.bfloat16),
                   preferred_element_type=jnp.float32)                    # [E, C]

    h = xl_e + xr_e
    if e_proj is not None:                                                # lin_edge term
        h = h + e_proj
    h = jnp.maximum(h, NEG_SLOPE * h)                                     # LeakyReLU (1 vmax)
    score = jnp.sum(h * att, axis=-1, keepdims=True)                      # [E, 1] f32 (VPU/XLU)

    # Scatter per-edge scores into the dense [Nd, Ns] logit matrix.  Scores
    # stay f32 through the one-hot matmul (exact selection, no bf16 rounding).
    sd = jnp.dot(dst_oh_t.astype(jnp.float32),
                 score * src_oh.astype(jnp.float32),
                 preferred_element_type=jnp.float32)                      # [Nd, Ns]

    # Masked softmax over source nodes (additive mask, EUP approx reciprocal).
    s = sd + mask_bias.astype(jnp.float32)
    m = jnp.max(s, axis=-1, keepdims=True)
    ex = jnp.exp(s - m)                                                   # exactly 0 off-edge
    denom = jnp.sum(ex, axis=-1, keepdims=True)
    alpha = ex * pl.reciprocal(denom, approx=True)                        # [Nd, Ns]

    out = jnp.dot(alpha.astype(jnp.bfloat16), xl_b,
                  preferred_element_type=jnp.float32) + bias              # [Nd, C]
    return jnp.maximum(out, 0.0)                                          # fused .relu()


def user_gnn_kernel(
    xp_ref, xc_ref,
    s1_ref, d1_ref, d1t_ref, mb1_ref,
    s2_ref, d2_ref, d2t_ref, mb2_ref, el_ref,
    wlr1_ref, wl2_ref, wr2_ref, wl3_ref, wr3_ref, we23_ref, wlin_ref,
    vecs_ref,
    out_ref,
):
    xp = xp_ref[...]                     # [Np, 128] bf16 (node- & lane-padded)
    xc = xc_ref[...]                     # [Nc, 128] bf16
    el = el_ref[...]                     # [E_pc, 128] bf16 (edge_label, padded)

    # Packed per-layer vectors: rows = (b_l, b_r, att, bias) x conv1..3, lin_b.
    vecs = vecs_ref[...]                 # [16, 128] f32
    bl1, br1, att1, bc1 = vecs[0:1], vecs[1:2], vecs[2:3], vecs[3:4]
    bl2, br2, att2, bc2 = vecs[4:5], vecs[5:6], vecs[6:7], vecs[7:8]
    bl3, br3, att3, bc3 = vecs[8:9], vecs[9:10], vecs[10:11], vecs[11:12]
    blin = vecs[12:13]

    s2 = s2_ref[...]; d2 = d2_ref[...]; d2t = d2t_ref[...]; mb2 = mb2_ref[...]

    # conv1: product -> product (self-loops in its edge list), NO edge_attr.
    # xs == xd == xp, so [W_l | W_r] is one fused [128, 256] matmul.
    xlr1 = jnp.dot(xp, wlr1_ref[...], preferred_element_type=jnp.float32)  # [Np, 256]
    xl1 = xlr1[:, :LANE] + bl1
    xr1 = xlr1[:, LANE:] + br1
    product_x = _gat_attend(xl1, xr1, s1_ref[...], d1_ref[...], d1t_ref[...],
                            mb1_ref[...], att1, bc1)

    # lin_edge for conv2 & conv3 share one fused [W_e2 | W_e3] matmul.
    e23 = jnp.dot(el, we23_ref[...], preferred_element_type=jnp.float32)   # [E_pc, 256]
    e2 = e23[:, :LANE]
    e3 = e23[:, LANE:]

    # conv2: (product, customer) with edge_attr.
    xl2 = jnp.dot(xp, wl2_ref[...], preferred_element_type=jnp.float32) + bl2
    xr2 = jnp.dot(xc, wr2_ref[...], preferred_element_type=jnp.float32) + br2
    customer_x = _gat_attend(xl2, xr2, s2, d2, d2t, mb2, att2, bc2, e_proj=e2)

    # conv3: (product_x, customer_x) with edge_attr.
    xl3 = jnp.dot(product_x.astype(jnp.bfloat16), wl3_ref[...],
                  preferred_element_type=jnp.float32) + bl3
    xr3 = jnp.dot(customer_x.astype(jnp.bfloat16), wr3_ref[...],
                  preferred_element_type=jnp.float32) + br3
    customer_x = _gat_attend(xl3, xr3, s2, d2, d2t, mb2, att3, bc3, e_proj=e3)

    # final Linear (lane-dense 128-wide padded output; sliced outside).
    out_ref[...] = jnp.dot(customer_x.astype(jnp.bfloat16), wlin_ref[...],
                           preferred_element_type=jnp.float32) + blin


# --------------------------------- wrapper -----------------------------------

def user_gnn_encoder(x_prod_p, x_cust_p, graph_pp, graph_pc, edge_label_p,
                     weights, vecs, n_customers, out_channels):
    s1, d1, d1t, mb1 = graph_pp
    s2, d2, d2t, mb2 = graph_pc
    args = (
        x_prod_p, x_cust_p,
        s1, d1, d1t, mb1,
        s2, d2, d2t, mb2, edge_label_p,
        weights["wlr1"], weights["wl2"], weights["wr2"],
        weights["wl3"], weights["wr3"], weights["we23"], weights["wlin"],
        vecs,
    )
    nc_pad = x_cust_p.shape[0]
    out_padded = pl.pallas_call(
        user_gnn_kernel,
        out_shape=jax.ShapeDtypeStruct((nc_pad, LANE), jnp.float32),
        in_specs=[_VMEM] * len(args),
        out_specs=_VMEM,
        # Explicit scoped VMEM limit (defaults: 16 MiB v5e, 32 MiB v6e/v7x).
        compiler_params=pltpu.CompilerParams(vmem_limit_bytes=32 * 1024 * 1024),
    )(*args)
    return out_padded[:n_customers, :out_channels]


# ---------------------- deterministic parameters / inputs --------------------

def _pad2(a, rows, cols):
    r, c = a.shape
    return jnp.pad(a, ((0, rows - r), (0, cols - c)))


def _ceil_to(n, m=LANE):
    return ((n + m - 1) // m) * m


def glorot(key, shape):
    fan_in, fan_out = shape
    lim = (6.0 / (fan_in + fan_out)) ** 0.5
    return jax.random.uniform(key, shape, jnp.float32, -lim, lim)


def edge_structure(src, dst, n_src, n_dst):
    """Lane-padded one-hot gather/scatter matrices (bf16, exact 0/1) + additive
    mask bias (bf16).  Padded edge rows are all-zero one-hots; padded source
    columns / destination rows carry -1e9 bias."""
    e = src.shape[0]
    e_pad, ns_pad, nd_pad = _ceil_to(e), _ceil_to(n_src), _ceil_to(n_dst)
    src_oh = jnp.zeros((e_pad, ns_pad), jnp.float32).at[jnp.arange(e), src].set(1.0)
    dst_oh = jnp.zeros((e_pad, nd_pad), jnp.float32).at[jnp.arange(e), dst].set(1.0)
    adj = jnp.zeros((nd_pad, ns_pad), jnp.float32).at[dst, src].set(1.0)
    mask_bias = (1.0 - adj) * NEG_INF                      # 0 at edges, -1e9 off
    return (src_oh.astype(jnp.bfloat16),
            dst_oh.astype(jnp.bfloat16),
            dst_oh.T.astype(jnp.bfloat16),
            mask_bias.astype(jnp.bfloat16))


def make_params(root_key, f_p, f_c, hid, out, edim):
    k1, k2, k3, kl = jax.random.split(root_key, 4)

    # conv1 (product -> product), no edge_attr; xs == xd so W_l|W_r fuse.
    ka, kb, kc = jax.random.split(k1, 3)
    wl1 = _pad2(glorot(ka, (f_p, hid)), LANE, LANE)
    wr1 = _pad2(glorot(kb, (f_p, hid)), LANE, LANE)
    att1 = _pad2(glorot(kc, (1, hid)), 1, LANE)

    # conv2 (product, customer) with edge_attr.
    ka, kb, kc, kd = jax.random.split(k2, 4)
    wl2 = _pad2(glorot(ka, (f_p, hid)), LANE, LANE)
    wr2 = _pad2(glorot(kb, (f_c, hid)), LANE, LANE)
    we2 = _pad2(glorot(kc, (edim, hid)), LANE, LANE)
    att2 = _pad2(glorot(kd, (1, hid)), 1, LANE)

    # conv3 (product_x, customer_x) with edge_attr.
    ka, kb, kc, kd = jax.random.split(k3, 4)
    wl3 = _pad2(glorot(ka, (hid, hid)), LANE, LANE)
    wr3 = _pad2(glorot(kb, (hid, hid)), LANE, LANE)
    we3 = _pad2(glorot(kc, (edim, hid)), LANE, LANE)
    att3 = _pad2(glorot(kd, (1, hid)), 1, LANE)

    wlin = _pad2(glorot(kl, (hid, out)), LANE, LANE)

    weights = dict(
        wlr1=jnp.concatenate([wl1, wr1], axis=1).astype(jnp.bfloat16),   # [128, 256]
        wl2=wl2.astype(jnp.bfloat16), wr2=wr2.astype(jnp.bfloat16),
        wl3=wl3.astype(jnp.bfloat16), wr3=wr3.astype(jnp.bfloat16),
        we23=jnp.concatenate([we2, we3], axis=1).astype(jnp.bfloat16),   # [128, 256]
        wlin=wlin.astype(jnp.bfloat16),
    )

    # Packed [16, 128] f32: rows = (b_l, b_r, att, bias) x conv1..3, lin_b, pad.
    z = jnp.zeros((1, LANE), jnp.float32)
    vecs = jnp.concatenate([z, z, att1, z,      # conv1: b_l, b_r, att, bias
                            z, z, att2, z,      # conv2
                            z, z, att3, z,      # conv3
                            z,                  # lin bias
                            z, z, z], axis=0)   # pad to 16 rows
    return weights, vecs


# ----------------------------------- main -------------------------------------

if __name__ == "__main__":
    N_P, N_C = 16, 8            # products, customers
    F_P, F_C = 32, 16           # raw feature dims
    HID, OUT, EDIM = 32, 16, 8  # hidden_channels, out_channels, edge_channels

    root = jax.random.PRNGKey(0)
    kx1, kx2, ke, kp = jax.random.split(root, 4)

    x_prod = jax.random.normal(kx1, (N_P, F_P), jnp.float32)
    x_cust = jax.random.normal(kx2, (N_C, F_C), jnp.float32)

    # product -metapath_0-> product edges: j -> (j+1)%N_P and j -> (j+3)%N_P,
    # plus self-loops j -> j (conv1 has add_self_loops=True, no edge_attr).
    src_pp = jnp.concatenate([jnp.arange(N_P), jnp.arange(N_P), jnp.arange(N_P)])
    dst_pp = jnp.concatenate([(jnp.arange(N_P) + 1) % N_P,
                              (jnp.arange(N_P) + 3) % N_P,
                              jnp.arange(N_P)])

    # product -rev_buys-> customer edges: customer c <- products 2c, 2c+1.
    src_pc = jnp.concatenate([2 * jnp.arange(N_C), 2 * jnp.arange(N_C) + 1])
    dst_pc = jnp.concatenate([jnp.arange(N_C), jnp.arange(N_C)])
    edge_label = jax.random.normal(ke, (2 * N_C, EDIM), jnp.float32)

    graph_pp = edge_structure(src_pp, dst_pp, N_P, N_P)
    graph_pc = edge_structure(src_pc, dst_pc, N_P, N_C)

    # Pad node / edge row counts AND feature lanes to 128, bf16 for the MXU.
    x_prod_p = _pad2(x_prod, _ceil_to(N_P), LANE).astype(jnp.bfloat16)
    x_cust_p = _pad2(x_cust, _ceil_to(N_C), LANE).astype(jnp.bfloat16)
    edge_label_p = _pad2(edge_label, _ceil_to(2 * N_C), LANE).astype(jnp.bfloat16)

    weights, vecs = make_params(kp, F_P, F_C, HID, OUT, EDIM)

    out = user_gnn_encoder(x_prod_p, x_cust_p, graph_pp, graph_pc,
                           edge_label_p, weights, vecs, N_C, OUT)
    out = jax.block_until_ready(out)
    assert out.shape == (N_C, OUT), out.shape
    assert bool(jnp.all(jnp.isfinite(out)))
    print("KERNEL_OK")
</pallas_src>

<mosaic_0001>
module attributes {stable_mosaic.version = 11 : i64} {
  func.func @user_gnn_kernel(%arg0: memref<128x128xbf16, #tpu.memory_space<vmem>>, %arg1: memref<128x128xbf16, #tpu.memory_space<vmem>>, %arg2: memref<128x128xbf16, #tpu.memory_space<vmem>>, %arg3: memref<128x128xbf16, #tpu.memory_space<vmem>>, %arg4: memref<128x128xbf16, #tpu.memory_space<vmem>>, %arg5: memref<128x128xbf16, #tpu.memory_space<vmem>>, %arg6: memref<128x128xbf16, #tpu.memory_space<vmem>>, %arg7: memref<128x128xbf16, #tpu.memory_space<vmem>>, %arg8: memref<128x128xbf16, #tpu.memory_space<vmem>>, %arg9: memref<128x128xbf16, #tpu.memory_space<vmem>>, %arg10: memref<128x128xbf16, #tpu.memory_space<vmem>>, %arg11: memref<128x256xbf16, #tpu.memory_space<vmem>>, %arg12: memref<128x128xbf16, #tpu.memory_space<vmem>>, %arg13: memref<128x128xbf16, #tpu.memory_space<vmem>>, %arg14: memref<128x128xbf16, #tpu.memory_space<vmem>>, %arg15: memref<128x128xbf16, #tpu.memory_space<vmem>>, %arg16: memref<128x256xbf16, #tpu.memory_space<vmem>>, %arg17: memref<128x128xbf16, #tpu.memory_space<vmem>>, %arg18: memref<16x128xf32, #tpu.memory_space<vmem>>, %arg19: memref<128x128xf32, #tpu.memory_space<vmem>>) attributes {dimension_semantics = [], scalar_prefetch = 0 : i64, scratch_operands = 0 : i64, tpu.core_type = #tpu.core_type<tc>} {
    %c0 = arith.constant 0 : index
    %c0_0 = arith.constant 0 : index
    %0 = vector.load %arg0[%c0, %c0_0] : memref<128x128xbf16, #tpu.memory_space<vmem>>, vector<128x128xbf16>
    %c0_1 = arith.constant 0 : index
    %c0_2 = arith.constant 0 : index
    %1 = vector.load %arg1[%c0_1, %c0_2] : memref<128x128xbf16, #tpu.memory_space<vmem>>, vector<128x128xbf16>
    %c0_3 = arith.constant 0 : index
    %c0_4 = arith.constant 0 : index
    %2 = vector.load %arg10[%c0_3, %c0_4] : memref<128x128xbf16, #tpu.memory_space<vmem>>, vector<128x128xbf16>
    %c0_5 = arith.constant 0 : index
    %c0_6 = arith.constant 0 : index
    %3 = vector.load %arg18[%c0_5, %c0_6] : memref<16x128xf32, #tpu.memory_space<vmem>>, vector<16x128xf32>
    %4 = vector.extract_strided_slice %3 {offsets = [0, 0], sizes = [1, 128], strides = [1, 1]} : vector<16x128xf32> to vector<1x128xf32>
    %5 = vector.extract_strided_slice %3 {offsets = [1, 0], sizes = [1, 128], strides = [1, 1]} : vector<16x128xf32> to vector<1x128xf32>
    %6 = vector.extract_strided_slice %3 {offsets = [2, 0], sizes = [1, 128], strides = [1, 1]} : vector<16x128xf32> to vector<1x128xf32>
    %7 = vector.extract_strided_slice %3 {offsets = [3, 0], sizes = [1, 128], strides = [1, 1]} : vector<16x128xf32> to vector<1x128xf32>
    %8 = vector.extract_strided_slice %3 {offsets = [4, 0], sizes = [1, 128], strides = [1, 1]} : vector<16x128xf32> to vector<1x128xf32>
    %9 = vector.extract_strided_slice %3 {offsets = [5, 0], sizes = [1, 128], strides = [1, 1]} : vector<16x128xf32> to vector<1x128xf32>
    %10 = vector.extract_strided_slice %3 {offsets = [6, 0], sizes = [1, 128], strides = [1, 1]} : vector<16x128xf32> to vector<1x128xf32>
    %11 = vector.extract_strided_slice %3 {offsets = [7, 0], sizes = [1, 128], strides = [1, 1]} : vector<16x128xf32> to vector<1x128xf32>
    %12 = vector.extract_strided_slice %3 {offsets = [8, 0], sizes = [1, 128], strides = [1, 1]} : vector<16x128xf32> to vector<1x128xf32>
    %13 = vector.extract_strided_slice %3 {offsets = [9, 0], sizes = [1, 128], strides = [1, 1]} : vector<16x128xf32> to vector<1x128xf32>
    %14 = vector.extract_strided_slice %3 {offsets = [10, 0], sizes = [1, 128], strides = [1, 1]} : vector<16x128xf32> to vector<1x128xf32>
    %15 = vector.extract_strided_slice %3 {offsets = [11, 0], sizes = [1, 128], strides = [1, 1]} : vector<16x128xf32> to vector<1x128xf32>
    %16 = vector.extract_strided_slice %3 {offsets = [12, 0], sizes = [1, 128], strides = [1, 1]} : vector<16x128xf32> to vector<1x128xf32>
    %c0_7 = arith.constant 0 : index
    %c0_8 = arith.constant 0 : index
    %17 = vector.load %arg6[%c0_7, %c0_8] : memref<128x128xbf16, #tpu.memory_space<vmem>>, vector<128x128xbf16>
    %c0_9 = arith.constant 0 : index
    %c0_10 = arith.constant 0 : index
    %18 = vector.load %arg7[%c0_9, %c0_10] : memref<128x128xbf16, #tpu.memory_space<vmem>>, vector<128x128xbf16>
    %c0_11 = arith.constant 0 : index
    %c0_12 = arith.constant 0 : index
    %19 = vector.load %arg8[%c0_11, %c0_12] : memref<128x128xbf16, #tpu.memory_space<vmem>>, vector<128x128xbf16>
    %c0_13 = arith.constant 0 : index
    %c0_14 = arith.constant 0 : index
    %20 = vector.load %arg9[%c0_13, %c0_14] : memref<128x128xbf16, #tpu.memory_space<vmem>>, vector<128x128xbf16>
    %c0_15 = arith.constant 0 : index
    %c0_16 = arith.constant 0 : index
    %21 = vector.load %arg11[%c0_15, %c0_16] : memref<128x256xbf16, #tpu.memory_space<vmem>>, vector<128x256xbf16>
    %cst = arith.constant dense<0.000000e+00> : vector<128x256xf32>
    %22 = tpu.matmul %0, %21, %cst {dimension_numbers = #tpu.dot_dimension_numbers<[1], [0], [0], [1], [0, 0, 1, 1], [], []>} : vector<128x128xbf16>, vector<128x256xbf16>, vector<128x256xf32> -> vector<128x256xf32>
    %23 = vector.extract_strided_slice %22 {offsets = [0, 0], sizes = [128, 128], strides = [1, 1]} : vector<128x256xf32> to vector<128x128xf32>
    %24 = vector.broadcast %4 : vector<1x128xf32> to vector<128x128xf32>
    %25 = arith.addf %23, %24 : vector<128x128xf32>
    %26 = vector.extract_strided_slice %22 {offsets = [0, 128], sizes = [128, 128], strides = [1, 1]} : vector<128x256xf32> to vector<128x128xf32>
    %27 = vector.broadcast %5 : vector<1x128xf32> to vector<128x128xf32>
    %28 = arith.addf %26, %27 : vector<128x128xf32>
    %c0_17 = arith.constant 0 : index
    %c0_18 = arith.constant 0 : index
    %29 = vector.load %arg2[%c0_17, %c0_18] : memref<128x128xbf16, #tpu.memory_space<vmem>>, vector<128x128xbf16>
    %c0_19 = arith.constant 0 : index
    %c0_20 = arith.constant 0 : index
    %30 = vector.load %arg3[%c0_19, %c0_20] : memref<128x128xbf16, #tpu.memory_space<vmem>>, vector<128x128xbf16>
    %c0_21 = arith.constant 0 : index
    %c0_22 = arith.constant 0 : index
    %31 = vector.load %arg4[%c0_21, %c0_22] : memref<128x128xbf16, #tpu.memory_space<vmem>>, vector<128x128xbf16>
    %c0_23 = arith.constant 0 : index
    %c0_24 = arith.constant 0 : index
    %32 = vector.load %arg5[%c0_23, %c0_24] : memref<128x128xbf16, #tpu.memory_space<vmem>>, vector<128x128xbf16>
    %33 = arith.truncf %25 : vector<128x128xf32> to vector<128x128xbf16>
    %cst_25 = arith.constant dense<0.000000e+00> : vector<128x128xf32>
    %34 = tpu.matmul %29, %33, %cst_25 {dimension_numbers = #tpu.dot_dimension_numbers<[1], [0], [0], [1], [0, 0, 1, 1], [], []>} : vector<128x128xbf16>, vector<128x128xbf16>, vector<128x128xf32> -> vector<128x128xf32>
    %35 = arith.truncf %28 : vector<128x128xf32> to vector<128x128xbf16>
    %cst_26 = arith.constant dense<0.000000e+00> : vector<128x128xf32>
    %36 = tpu.matmul %30, %35, %cst_26 {dimension_numbers = #tpu.dot_dimension_numbers<[1], [0], [0], [1], [0, 0, 1, 1], [], []>} : vector<128x128xbf16>, vector<128x128xbf16>, vector<128x128xf32> -> vector<128x128xf32>
    %37 = arith.addf %34, %36 : vector<128x128xf32>
    %cst_27 = arith.constant 2.000000e-01 : f32
    %38 = vector.broadcast %cst_27 : f32 to vector<128x128xf32>
    %39 = arith.mulf %38, %37 : vector<128x128xf32>
    %40 = arith.maximumf %37, %39 : vector<128x128xf32>
    %41 = vector.broadcast %6 : vector<1x128xf32> to vector<128x128xf32>
    %42 = arith.mulf %40, %41 : vector<128x128xf32>
    %cst_28 = arith.constant dense<0.000000e+00> : vector<128xf32>
    %43 = vector.multi_reduction <add>, %42, %cst_28 [1] : vector<128x128xf32> to vector<128xf32>
    %44 = vector.shape_cast %43 : vector<128xf32> to vector<128x1xf32>
    %45 = arith.extf %31 : vector<128x128xbf16> to vector<128x128xf32>
    %46 = arith.extf %29 : vector<128x128xbf16> to vector<128x128xf32>
    %47 = vector.broadcast %44 : vector<128x1xf32> to vector<128x128xf32>
    %48 = arith.mulf %47, %46 : vector<128x128xf32>
    %cst_29 = arith.constant dense<0.000000e+00> : vector<128x128xf32>
    %49 = tpu.matmul %45, %48, %cst_29 {dimension_numbers = #tpu.dot_dimension_numbers<[1], [0], [0], [1], [0, 0, 1, 1], [], []>} : vector<128x128xf32>, vector<128x128xf32>, vector<128x128xf32> -> vector<128x128xf32>
    %50 = arith.extf %32 : vector<128x128xbf16> to vector<128x128xf32>
    %51 = arith.addf %49, %50 : vector<128x128xf32>
    %cst_30 = arith.constant dense<0xFF800000> : vector<128xf32>
    %52 = vector.multi_reduction <maximumf>, %51, %cst_30 [1] : vector<128x128xf32> to vector<128xf32>
    %53 = vector.shape_cast %52 : vector<128xf32> to vector<128x1xf32>
    %54 = vector.broadcast %53 : vector<128x1xf32> to vector<128x128xf32>
    %55 = arith.subf %51, %54 : vector<128x128xf32>
    %56 = math.exp %55 : vector<128x128xf32>
    %cst_31 = arith.constant dense<0.000000e+00> : vector<128xf32>
    %57 = vector.multi_reduction <add>, %56, %cst_31 [1] : vector<128x128xf32> to vector<128xf32>
    %58 = vector.shape_cast %57 : vector<128xf32> to vector<128x1xf32>
    %59 = tpu.reciprocal %58 {approx = true} : vector<128x1xf32> -> vector<128x1xf32>
    %60 = vector.broadcast %59 : vector<128x1xf32> to vector<128x128xf32>
    %61 = arith.mulf %56, %60 : vector<128x128xf32>
    %62 = arith.truncf %61 : vector<128x128xf32> to vector<128x128xbf16>
    %cst_32 = arith.constant dense<0.000000e+00> : vector<128x128xf32>
    %63 = tpu.matmul %62, %33, %cst_32 {dimension_numbers = #tpu.dot_dimension_numbers<[1], [0], [0], [1], [0, 0, 1, 1], [], []>} : vector<128x128xbf16>, vector<128x128xbf16>, vector<128x128xf32> -> vector<128x128xf32>
    %64 = vector.broadcast %7 : vector<1x128xf32> to vector<128x128xf32>
    %65 = arith.addf %63, %64 : vector<128x128xf32>
    %cst_33 = arith.constant 0.000000e+00 : f32
    %66 = vector.broadcast %cst_33 : f32 to vector<128x128xf32>
    %67 = arith.maximumf %65, %66 : vector<128x128xf32>
    %c0_34 = arith.constant 0 : index
    %c0_35 = arith.constant 0 : index
    %68 = vector.load %arg16[%c0_34, %c0_35] : memref<128x256xbf16, #tpu.memory_space<vmem>>, vector<128x256xbf16>
    %cst_36 = arith.constant dense<0.000000e+00> : vector<128x256xf32>
    %69 = tpu.matmul %2, %68, %cst_36 {dimension_numbers = #tpu.dot_dimension_numbers<[1], [0], [0], [1], [0, 0, 1, 1], [], []>} : vector<128x128xbf16>, vector<128x256xbf16>, vector<128x256xf32> -> vector<128x256xf32>
    %70 = vector.extract_strided_slice %69 {offsets = [0, 0], sizes = [128, 128], strides = [1, 1]} : vector<128x256xf32> to vector<128x128xf32>
    %71 = vector.extract_strided_slice %69 {offsets = [0, 128], sizes = [128, 128], strides = [1, 1]} : vector<128x256xf32> to vector<128x128xf32>
    %c0_37 = arith.constant 0 : index
    %c0_38 = arith.constant 0 : index
    %72 = vector.load %arg12[%c0_37, %c0_38] : memref<128x128xbf16, #tpu.memory_space<vmem>>, vector<128x128xbf16>
    %cst_39 = arith.constant dense<0.000000e+00> : vector<128x128xf32>
    %73 = tpu.matmul %0, %72, %cst_39 {dimension_numbers = #tpu.dot_dimension_numbers<[1], [0], [0], [1], [0, 0, 1, 1], [], []>} : vector<128x128xbf16>, vector<128x128xbf16>, vector<128x128xf32> -> vector<128x128xf32>
    %74 = vector.broadcast %8 : vector<1x128xf32> to vector<128x128xf32>
    %75 = arith.addf %73, %74 : vector<128x128xf32>
    %c0_40 = arith.constant 0 : index
    %c0_41 = arith.constant 0 : index
    %76 = vector.load %arg13[%c0_40, %c0_41] : memref<128x128xbf16, #tpu.memory_space<vmem>>, vector<128x128xbf16>
    %cst_42 = arith.constant dense<0.000000e+00> : vector<128x128xf32>
    %77 = tpu.matmul %1, %76, %cst_42 {dimension_numbers = #tpu.dot_dimension_numbers<[1], [0], [0], [1], [0, 0, 1, 1], [], []>} : vector<128x128xbf16>, vector<128x128xbf16>, vector<128x128xf32> -> vector<128x128xf32>
    %78 = vector.broadcast %9 : vector<1x128xf32> to vector<128x128xf32>
    %79 = arith.addf %77, %78 : vector<128x128xf32>
    %80 = arith.truncf %75 : vector<128x128xf32> to vector<128x128xbf16>
    %cst_43 = arith.constant dense<0.000000e+00> : vector<128x128xf32>
    %81 = tpu.matmul %17, %80, %cst_43 {dimension_numbers = #tpu.dot_dimension_numbers<[1], [0], [0], [1], [0, 0, 1, 1], [], []>} : vector<128x128xbf16>, vector<128x128xbf16>, vector<128x128xf32> -> vector<128x128xf32>
    %82 = arith.truncf %79 : vector<128x128xf32> to vector<128x128xbf16>
    %cst_44 = arith.constant dense<0.000000e+00> : vector<128x128xf32>
    %83 = tpu.matmul %18, %82, %cst_44 {dimension_numbers = #tpu.dot_dimension_numbers<[1], [0], [0], [1], [0, 0, 1, 1], [], []>} : vector<128x128xbf16>, vector<128x128xbf16>, vector<128x128xf32> -> vector<128x128xf32>
    %84 = arith.addf %81, %83 : vector<128x128xf32>
    %85 = arith.addf %84, %70 : vector<128x128xf32>
    %cst_45 = arith.constant 2.000000e-01 : f32
    %86 = vector.broadcast %cst_45 : f32 to vector<128x128xf32>
    %87 = arith.mulf %86, %85 : vector<128x128xf32>
    %88 = arith.maximumf %85, %87 : vector<128x128xf32>
    %89 = vector.broadcast %10 : vector<1x128xf32> to vector<128x128xf32>
    %90 = arith.mulf %88, %89 : vector<128x128xf32>
    %cst_46 = arith.constant dense<0.000000e+00> : vector<128xf32>
    %91 = vector.multi_reduction <add>, %90, %cst_46 [1] : vector<128x128xf32> to vector<128xf32>
    %92 = vector.shape_cast %91 : vector<128xf32> to vector<128x1xf32>
    %93 = arith.extf %19 : vector<128x128xbf16> to vector<128x128xf32>
    %94 = arith.extf %17 : vector<128x128xbf16> to vector<128x128xf32>
    %95 = vector.broadcast %92 : vector<128x1xf32> to vector<128x128xf32>
    %96 = arith.mulf %95, %94 : vector<128x128xf32>
    %cst_47 = arith.constant dense<0.000000e+00> : vector<128x128xf32>
    %97 = tpu.matmul %93, %96, %cst_47 {dimension_numbers = #tpu.dot_dimension_numbers<[1], [0], [0], [1], [0, 0, 1, 1], [], []>} : vector<128x128xf32>, vector<128x128xf32>, vector<128x128xf32> -> vector<128x128xf32>
    %98 = arith.extf %20 : vector<128x128xbf16> to vector<128x128xf32>
    %99 = arith.addf %97, %98 : vector<128x128xf32>
    %cst_48 = arith.constant dense<0xFF800000> : vector<128xf32>
    %100 = vector.multi_reduction <maximumf>, %99, %cst_48 [1] : vector<128x128xf32> to vector<128xf32>
    %101 = vector.shape_cast %100 : vector<128xf32> to vector<128x1xf32>
    %102 = vector.broadcast %101 : vector<128x1xf32> to vector<128x128xf32>
    %103 = arith.subf %99, %102 : vector<128x128xf32>
    %104 = math.exp %103 : vector<128x128xf32>
    %cst_49 = arith.constant dense<0.000000e+00> : vector<128xf32>
    %105 = vector.multi_reduction <add>, %104, %cst_49 [1] : vector<128x128xf32> to vector<128xf32>
    %106 = vector.shape_cast %105 : vector<128xf32> to vector<128x1xf32>
    %107 = tpu.reciprocal %106 {approx = true} : vector<128x1xf32> -> vector<128x1xf32>
    %108 = vector.broadcast %107 : vector<128x1xf32> to vector<128x128xf32>
    %109 = arith.mulf %104, %108 : vector<128x128xf32>
    %110 = arith.truncf %109 : vector<128x128xf32> to vector<128x128xbf16>
    %cst_50 = arith.constant dense<0.000000e+00> : vector<128x128xf32>
    %111 = tpu.matmul %110, %80, %cst_50 {dimension_numbers = #tpu.dot_dimension_numbers<[1], [0], [0], [1], [0, 0, 1, 1], [], []>} : vector<128x128xbf16>, vector<128x128xbf16>, vector<128x128xf32> -> vector<128x128xf32>
    %112 = vector.broadcast %11 : vector<1x128xf32> to vector<128x128xf32>
    %113 = arith.addf %111, %112 : vector<128x128xf32>
    %cst_51 = arith.constant 0.000000e+00 : f32
    %114 = vector.broadcast %cst_51 : f32 to vector<128x128xf32>
    %115 = arith.maximumf %113, %114 : vector<128x128xf32>
    %116 = arith.truncf %67 : vector<128x128xf32> to vector<128x128xbf16>
    %c0_52 = arith.constant 0 : index
    %c0_53 = arith.constant 0 : index
    %117 = vector.load %arg14[%c0_52, %c0_53] : memref<128x128xbf16, #tpu.memory_space<vmem>>, vector<128x128xbf16>
    %cst_54 = arith.constant dense<0.000000e+00> : vector<128x128xf32>
    %118 = tpu.matmul %116, %117, %cst_54 {dimension_numbers = #tpu.dot_dimension_numbers<[1], [0], [0], [1], [0, 0, 1, 1], [], []>} : vector<128x128xbf16>, vector<128x128xbf16>, vector<128x128xf32> -> vector<128x128xf32>
    %119 = vector.broadcast %12 : vector<1x128xf32> to vector<128x128xf32>
    %120 = arith.addf %118, %119 : vector<128x128xf32>
    %121 = arith.truncf %115 : vector<128x128xf32> to vector<128x128xbf16>
    %c0_55 = arith.constant 0 : index
    %c0_56 = arith.constant 0 : index
    %122 = vector.load %arg15[%c0_55, %c0_56] : memref<128x128xbf16, #tpu.memory_space<vmem>>, vector<128x128xbf16>
    %cst_57 = arith.constant dense<0.000000e+00> : vector<128x128xf32>
    %123 = tpu.matmul %121, %122, %cst_57 {dimension_numbers = #tpu.dot_dimension_numbers<[1], [0], [0], [1], [0, 0, 1, 1], [], []>} : vector<128x128xbf16>, vector<128x128xbf16>, vector<128x128xf32> -> vector<128x128xf32>
    %124 = vector.broadcast %13 : vector<1x128xf32> to vector<128x128xf32>
    %125 = arith.addf %123, %124 : vector<128x128xf32>
    %126 = arith.truncf %120 : vector<128x128xf32> to vector<128x128xbf16>
    %cst_58 = arith.constant dense<0.000000e+00> : vector<128x128xf32>
    %127 = tpu.matmul %17, %126, %cst_58 {dimension_numbers = #tpu.dot_dimension_numbers<[1], [0], [0], [1], [0, 0, 1, 1], [], []>} : vector<128x128xbf16>, vector<128x128xbf16>, vector<128x128xf32> -> vector<128x128xf32>
    %128 = arith.truncf %125 : vector<128x128xf32> to vector<128x128xbf16>
    %cst_59 = arith.constant dense<0.000000e+00> : vector<128x128xf32>
    %129 = tpu.matmul %18, %128, %cst_59 {dimension_numbers = #tpu.dot_dimension_numbers<[1], [0], [0], [1], [0, 0, 1, 1], [], []>} : vector<128x128xbf16>, vector<128x128xbf16>, vector<128x128xf32> -> vector<128x128xf32>
    %130 = arith.addf %127, %129 : vector<128x128xf32>
    %131 = arith.addf %130, %71 : vector<128x128xf32>
    %cst_60 = arith.constant 2.000000e-01 : f32
    %132 = vector.broadcast %cst_60 : f32 to vector<128x128xf32>
    %133 = arith.mulf %132, %131 : vector<128x128xf32>
    %134 = arith.maximumf %131, %133 : vector<128x128xf32>
    %135 = vector.broadcast %14 : vector<1x128xf32> to vector<128x128xf32>
    %136 = arith.mulf %134, %135 : vector<128x128xf32>
    %cst_61 = arith.constant dense<0.000000e+00> : vector<128xf32>
    %137 = vector.multi_reduction <add>, %136, %cst_61 [1] : vector<128x128xf32> to vector<128xf32>
    %138 = vector.shape_cast %137 : vector<128xf32> to vector<128x1xf32>
    %139 = arith.extf %19 : vector<128x128xbf16> to vector<128x128xf32>
    %140 = arith.extf %17 : vector<128x128xbf16> to vector<128x128xf32>
    %141 = vector.broadcast %138 : vector<128x1xf32> to vector<128x128xf32>
    %142 = arith.mulf %141, %140 : vector<128x128xf32>
    %cst_62 = arith.constant dense<0.000000e+00> : vector<128x128xf32>
    %143 = tpu.matmul %139, %142, %cst_62 {dimension_numbers = #tpu.dot_dimension_numbers<[1], [0], [0], [1], [0, 0, 1, 1], [], []>} : vector<128x128xf32>, vector<128x128xf32>, vector<128x128xf32> -> vector<128x128xf32>
    %144 = arith.extf %20 : vector<128x128xbf16> to vector<128x128xf32>
    %145 = arith.addf %143, %144 : vector<128x128xf32>
    %cst_63 = arith.constant dense<0xFF800000> : vector<128xf32>
    %146 = vector.multi_reduction <maximumf>, %145, %cst_63 [1] : vector<128x128xf32> to vector<128xf32>
    %147 = vector.shape_cast %146 : vector<128xf32> to vector<128x1xf32>
    %148 = vector.broadcast %147 : vector<128x1xf32> to vector<128x128xf32>
    %149 = arith.subf %145, %148 : vector<128x128xf32>
    %150 = math.exp %149 : vector<128x128xf32>
    %cst_64 = arith.constant dense<0.000000e+00> : vector<128xf32>
    %151 = vector.multi_reduction <add>, %150, %cst_64 [1] : vector<128x128xf32> to vector<128xf32>
    %152 = vector.shape_cast %151 : vector<128xf32> to vector<128x1xf32>
    %153 = tpu.reciprocal %152 {approx = true} : vector<128x1xf32> -> vector<128x1xf32>
    %154 = vector.broadcast %153 : vector<128x1xf32> to vector<128x128xf32>
    %155 = arith.mulf %150, %154 : vector<128x128xf32>
    %156 = arith.truncf %155 : vector<128x128xf32> to vector<128x128xbf16>
    %cst_65 = arith.constant dense<0.000000e+00> : vector<128x128xf32>
    %157 = tpu.matmul %156, %126, %cst_65 {dimension_numbers = #tpu.dot_dimension_numbers<[1], [0], [0], [1], [0, 0, 1, 1], [], []>} : vector<128x128xbf16>, vector<128x128xbf16>, vector<128x128xf32> -> vector<128x128xf32>
    %158 = vector.broadcast %15 : vector<1x128xf32> to vector<128x128xf32>
    %159 = arith.addf %157, %158 : vector<128x128xf32>
    %cst_66 = arith.constant 0.000000e+00 : f32
    %160 = vector.broadcast %cst_66 : f32 to vector<128x128xf32>
    %161 = arith.maximumf %159, %160 : vector<128x128xf32>
    %162 = arith.truncf %161 : vector<128x128xf32> to vector<128x128xbf16>
    %c0_67 = arith.constant 0 : index
    %c0_68 = arith.constant 0 : index
    %163 = vector.load %arg17[%c0_67, %c0_68] : memref<128x128xbf16, #tpu.memory_space<vmem>>, vector<128x128xbf16>
    %cst_69 = arith.constant dense<0.000000e+00> : vector<128x128xf32>
    %164 = tpu.matmul %162, %163, %cst_69 {dimension_numbers = #tpu.dot_dimension_numbers<[1], [0], [0], [1], [0, 0, 1, 1], [], []>} : vector<128x128xbf16>, vector<128x128xbf16>, vector<128x128xf32> -> vector<128x128xf32>
    %165 = vector.broadcast %16 : vector<1x128xf32> to vector<128x128xf32>
    %166 = arith.addf %164, %165 : vector<128x128xf32>
    %c0_70 = arith.constant 0 : index
    %c0_71 = arith.constant 0 : index
    %167 = vector.load %arg19[%c0_70, %c0_71] : memref<128x128xf32, #tpu.memory_space<vmem>>, vector<128x128xf32>
    tpu.vector_store %arg19[%c0_70, %c0_71], %166 {strides = array<i32>} : memref<128x128xf32, #tpu.memory_space<vmem>>, vector<128x128xf32>,
    return
  }
}

</mosaic_0001>

<bundles_post_ra>
// kernel: tpu_custom_call.1
= control target key start
LH: loop header
LB: loop body
LE: loop exit
PB: predicated region body
PF: predicated region fallthrough
CT: control target
= control target key end

     0   :  { %s6394_s0 = inlined_call_operand.hbm [shape: bf16[128,128], index: 0, kind: input, shape index: {}]   ;;  %s6395_s1 = inlined_call_operand.hbm [shape: bf16[128,128], index: 1, kind: input, shape index: {}]   ;;  %s6396_s2 = inlined_call_operand.hbm [shape: bf16[128,128], index: 2, kind: input, shape index: {}]   ;;  %s6397_s3 = inlined_call_operand.hbm [shape: bf16[128,128], index: 3, kind: input, shape index: {}]   ;;  %s6398_s4 = inlined_call_operand.hbm [shape: bf16[128,128], index: 4, kind: input, shape index: {}]   ;;  %s6399_s5 = inlined_call_operand.hbm [shape: bf16[128,128], index: 5, kind: input, shape index: {}]   ;;  %s6400_s6 = inlined_call_operand.hbm [shape: bf16[128,128], index: 6, kind: input, shape index: {}]   ;;  %s6401_s7 = inlined_call_operand.hbm [shape: bf16[128,128], index: 7, kind: input, shape index: {}]   ;;  %s6402_s8 = inlined_call_operand.hbm [shape: bf16[128,128], index: 8, kind: input, shape index: {}]   ;;  %s6403_s9 = inlined_call_operand.hbm [shape: bf16[128,128], index: 9, kind: input, shape index: {}]   ;;  %s6404_s10 = inlined_call_operand.hbm [shape: bf16[128,128], index: 10, kind: input, shape index: {}]   ;;  %s6405_s11 = inlined_call_operand.hbm [shape: bf16[128,256], index: 11, kind: input, shape index: {}]   ;;  %s6406_s12 = inlined_call_operand.hbm [shape: bf16[128,128], index: 12, kind: input, shape index: {}]   ;;  %s6407_s13 = inlined_call_operand.hbm [shape: bf16[128,128], index: 13, kind: input, shape index: {}]   ;;  %s6408_s14 = inlined_call_operand.hbm [shape: bf16[128,128], index: 14, kind: input, shape index: {}]   ;;  %s6409_s15 = inlined_call_operand.hbm [shape: bf16[128,128], index: 15, kind: input, shape index: {}]   ;;  %s6410_s16 = inlined_call_operand.hbm [shape: bf16[128,256], index: 16, kind: input, shape index: {}]   ;;  %s6411_s17 = inlined_call_operand.hbm [shape: bf16[128,128], index: 17, kind: input, shape index: {}]   ;;  %s6412_s18 = inlined_call_operand.vmem [shape: f32[16,128], index: 18, kind: input, shape index: {}]   ;;  %s6413_s19 = inlined_call_operand.hbm [shape: f32[128,128], index: 19, kind: output, shape index: {}]  }
   0x1   :  { %6474 = sst [smem:[#allocation55_spill]] %s6394_s0 }
   0x2   :  { %6475 = sst [smem:[#allocation56_spill]] %s6395_s1 }
   0x3   :  { %6476 = sst [smem:[#allocation57_spill]] %s6396_s2 }
   0x4   :  { %6477 = sst [smem:[#allocation58_spill]] %s6397_s3 }
   0x5   :  { %24 = vsyncpa [#allocation3], 0 }
   0x6   :  { %25 = vsyncpa [#allocation6], 0 }
   0x7   :  { %26 = vsyncpa [#allocation9], 0 }
   0x8   :  { %27 = vsyncpa [#allocation12], 0 }
   0x9   :  { %28 = vsyncpa [#allocation15], 0 }
   0xa   :  { %29 = vsyncpa [#allocation18], 0 }
   0xb   :  { %30 = vsyncpa [#allocation21], 0 }
   0xc   :  { %31 = vsyncpa [#allocation24], 0 }
   0xd   :  { %32 = vsyncpa [#allocation27], 0 }
   0xe   :  { %33 = vsyncpa [#allocation30], 0 }
   0xf   :  { %34 = vsyncpa [#allocation4], 0  ;;  %s6478_s20 = sld [smem:[#allocation56_spill]]  ;;  %s5067_s1 = smov [#allocation5]  }
  0x10   :  { %s54_s22 = sshll.u32 %s5067_s1, 4  ;;  %s6479_s24 = sld [smem:[#allocation58_spill]]  ;;  %s55_s22 = int_to_ptr.vmem [resolvable:$true] %s54_s22 }
  0x11   :  { %s5068_s3 = smov 64   ;;  %s5069_s26 = smov 4  }
  0x12   :  { %s5070_s27 = smov [#allocation8]   ;;  %s104_s30 = sshll.u32 %s6399_s5, 4  ;;  %s105_s30 = int_to_ptr.hbm [resolvable:$true] %s104_s30 }
  0x13   :  { %s80_s28 = sshll.u32 %s5070_s27, 4  ;;  %s130_s2 = sshll.u32 %s6401_s7, 4  ;;  %s81_s28 = int_to_ptr.vmem [resolvable:$true] %s80_s28  ;;  %s131_s2 = int_to_ptr.hbm [resolvable:$true] %s130_s2 }
  0x14   :  { %s5071_s23 = smov [#allocation11]   ;;  %s156_s29 = sshll.u32 %s6403_s9, 4  ;;  %s157_s29 = int_to_ptr.hbm [resolvable:$true] %s156_s29 }
  0x15   :  { %s52_s21 = sshll.u32 %s6478_s20, 4  ;;  %s5073_s0 = smov [#allocation17]   ;;  %s53_s21 = int_to_ptr.hbm [resolvable:$true] %s52_s21 }
  0x16   :  { %s78_s25 = sshll.u32 %s6479_s24, 4  ;;  %s106_s24 = sshll.u32 %s5071_s23, 4  ;;  %s79_s25 = int_to_ptr.hbm [resolvable:$true] %s78_s25  ;;  %s107_s24 = int_to_ptr.vmem [resolvable:$true] %s106_s24 }
  0x17   :  { %60 = dma.hbm_to_vmem [thread:$0]  %s53_s21, 1024, %s55_s22, [#allocation6], %s5068_s3, %s5068_s3, %s5069_s26  }
  0x18   :  { %86 = dma.hbm_to_vmem [thread:$0]  %s79_s25, 1024, %s81_s28, [#allocation9], %s5068_s3, %s5068_s3, %s5069_s26  }
  0x19   :  { %112 = dma.hbm_to_vmem [thread:$0]  %s105_s30, 1024, %s107_s24, [#allocation12], %s5068_s3, %s5068_s3, %s5069_s26  }
  0x1a   :  { %s5072_s21 = smov [#allocation14]   ;;  %s182_s28 = sshll.u32 %s6405_s11, 4  ;;  %s183_s28 = int_to_ptr.hbm [resolvable:$true] %s182_s28 }
  0x1b   :  { %s132_s5 = sshll.u32 %s5072_s21, 4  ;;  %s158_s20 = sshll.u32 %s5073_s0, 4  ;;  %s133_s5 = int_to_ptr.vmem [resolvable:$true] %s132_s5  ;;  %s159_s20 = int_to_ptr.vmem [resolvable:$true] %s158_s20 }
  0x1c   :  { %138 = dma.hbm_to_vmem [thread:$0]  %s131_s2, 1024, %s133_s5, [#allocation15], %s5068_s3, %s5068_s3, %s5069_s26  }
  0x1d   :  { %164 = dma.hbm_to_vmem [thread:$0]  %s157_s29, 1024, %s159_s20, [#allocation18], %s5068_s3, %s5068_s3, %s5069_s26  }
  0x1e   :  { %s5074_s30 = smov [#allocation20]   ;;  %s5075_s1 = smov 128  }
  0x1f   :  { %s184_s9 = sshll.u32 %s5074_s30, 4  ;;  %s5076_s23 = smov 8   ;;  %s185_s9 = int_to_ptr.vmem [resolvable:$true] %s184_s9 }
  0x20   :  { %190 = dma.hbm_to_vmem [thread:$0]  %s183_s28, 2048, %s185_s9, [#allocation21], %s5075_s1, %s5075_s1, %s5076_s23  }
  0x21   :  { %s208_s11 = sshll.u32 %s6407_s13, 4  ;;  %s5077_s21 = smov [#allocation23]   ;;  %s209_s11 = int_to_ptr.hbm [resolvable:$true] %s208_s11 }
  0x22   :  { %s210_s5 = sshll.u32 %s5077_s21, 4  ;;  %s234_s29 = sshll.u32 %s6409_s15, 4  ;;  %s211_s5 = int_to_ptr.vmem [resolvable:$true] %s210_s5  ;;  %s235_s29 = int_to_ptr.hbm [resolvable:$true] %s234_s29 }
  0x23   :  { %216 = dma.hbm_to_vmem [thread:$0]  %s209_s11, 1024, %s211_s5, [#allocation24], %s5068_s3, %s5068_s3, %s5069_s26  }
  0x24   :  { %s5078_s7 = smov [#allocation26]   ;;  %s6480_s20 = sld [smem:[#allocation55_spill]] }
  0x25   :  { %s236_s25 = sshll.u32 %s5078_s7, 4  ;;  %s6481_s15 = sld [smem:[#allocation57_spill]]  ;;  %s237_s25 = int_to_ptr.vmem [resolvable:$true] %s236_s25 }
  0x26   :  { %242 = dma.hbm_to_vmem [thread:$0]  %s235_s29, 1024, %s237_s25, [#allocation27], %s5068_s3, %s5068_s3, %s5069_s26  }
  0x27   :  { %s5079_s24 = smov [#allocation2]   ;;  %s5080_s11 = smov [#allocation7]  }
  0x28   :  { %s41_s21 = sshll.u32 %s5079_s24, 4  ;;  %s67_s5 = sshll.u32 %s5080_s11, 4  ;;  %s42_s21 = int_to_ptr.vmem [resolvable:$true] %s41_s21  ;;  %s68_s5 = int_to_ptr.vmem [resolvable:$true] %s67_s5 }
  0x29   :  { %s91_s7 = sshll.u32 %s6398_s4, 4  ;;  %s117_s28 = sshll.u32 %s6400_s6, 4  ;;  %s92_s7 = int_to_ptr.hbm [resolvable:$true] %s91_s7  ;;  %s118_s28 = int_to_ptr.hbm [resolvable:$true] %s117_s28 }
  0x2a   :  { %s39_s30 = sshll.u32 %s6480_s20, 4  ;;  %s5081_s0 = smov [#allocation10]   ;;  %s40_s30 = int_to_ptr.hbm [resolvable:$true] %s39_s30 }
  0x2b   :  { %s65_s2 = sshll.u32 %s6481_s15, 4  ;;  %s93_s20 = sshll.u32 %s5081_s0, 4  ;;  %s66_s2 = int_to_ptr.hbm [resolvable:$true] %s65_s2  ;;  %s94_s20 = int_to_ptr.vmem [resolvable:$true] %s93_s20 }
  0x2c   :  { %47 = dma.hbm_to_vmem [thread:$0]  %s40_s30, 1024, %s42_s21, [#allocation3], %s5068_s3, %s5068_s3, %s5069_s26  }
  0x2d   :  { %73 = dma.hbm_to_vmem [thread:$0]  %s66_s2, 1024, %s68_s5, [#allocation6], %s5068_s3, %s5068_s3, %s5069_s26  }
  0x2e   :  { %99 = dma.hbm_to_vmem [thread:$0]  %s92_s7, 1024, %s94_s20, [#allocation9], %s5068_s3, %s5068_s3, %s5069_s26  }
  0x2f   :  { %s5082_s30 = smov [#allocation13]   ;;  %s143_s15 = sshll.u32 %s6402_s8, 4  ;;  %s144_s15 = int_to_ptr.hbm [resolvable:$true] %s143_s15 }
  0x30   :  { %s119_s4 = sshll.u32 %s5082_s30, 4  ;;  %s169_s24 = sshll.u32 %s6404_s10, 4  ;;  %s120_s4 = int_to_ptr.vmem [resolvable:$true] %s119_s4  ;;  %s170_s24 = int_to_ptr.hbm [resolvable:$true] %s169_s24 }
  0x31   :  { %125 = dma.hbm_to_vmem [thread:$0]  %s118_s28, 1024, %s120_s4, [#allocation12], %s5068_s3, %s5068_s3, %s5069_s26  }
  0x32   :  { %s5083_s21 = smov [#allocation16]   ;;  %s5084_s5 = smov [#allocation19]  }
  0x33   :  { %s145_s11 = sshll.u32 %s5083_s21, 4  ;;  %s171_s8 = sshll.u32 %s5084_s5, 4  ;;  %s146_s11 = int_to_ptr.vmem [resolvable:$true] %s145_s11  ;;  %s172_s8 = int_to_ptr.vmem [resolvable:$true] %s171_s8 }
  0x34   :  { %151 = dma.hbm_to_vmem [thread:$0]  %s144_s15, 1024, %s146_s11, [#allocation15], %s5068_s3, %s5068_s3, %s5069_s26  }
  0x35   :  { %s195_s7 = sshll.u32 %s6406_s12, 4  ;;  %s221_s25 = sshll.u32 %s6408_s14, 4  ;;  %s196_s7 = int_to_ptr.hbm [resolvable:$true] %s195_s7  ;;  %s222_s25 = int_to_ptr.hbm [resolvable:$true] %s221_s25 }
  0x36   :  { %177 = dma.hbm_to_vmem [thread:$0]  %s170_s24, 1024, %s172_s8, [#allocation18], %s5068_s3, %s5068_s3, %s5069_s26  }
  0x37   :  { %s5085_s28 = smov [#allocation22]   ;;  %s5086_s20 = smov [#allocation25]  }
  0x38   :  { %s197_s0 = sshll.u32 %s5085_s28, 4  ;;  %s223_s12 = sshll.u32 %s5086_s20, 4  ;;  %s198_s0 = int_to_ptr.vmem [resolvable:$true] %s197_s0  ;;  %s224_s12 = int_to_ptr.vmem [resolvable:$true] %s223_s12 }
  0x39   :  { %203 = dma.hbm_to_vmem [thread:$0]  %s196_s7, 1024, %s198_s0, [#allocation21], %s5068_s3, %s5068_s3, %s5069_s26  }
  0x3a   :  { %s247_s13 = sshll.u32 %s6410_s16, 4  ;;  %s260_s15 = sshll.u32 %s6411_s17, 4  ;;  %s248_s13 = int_to_ptr.hbm [resolvable:$true] %s247_s13  ;;  %s261_s15 = int_to_ptr.hbm [resolvable:$true] %s260_s15 }
  0x3b   :  { %229 = dma.hbm_to_vmem [thread:$0]  %s222_s25, 1024, %s224_s12, [#allocation24], %s5068_s3, %s5068_s3, %s5069_s26  }
  0x3c   :  { %s5087_s6 = smov [#allocation28]   ;;  %s5088_s24 = smov [#allocation29]  }
  0x3d   :  { %s249_s2 = sshll.u32 %s5087_s6, 4  ;;  %s262_s16 = sshll.u32 %s5088_s24, 4  ;;  %s250_s2 = int_to_ptr.vmem [resolvable:$true] %s249_s2  ;;  %s263_s16 = int_to_ptr.vmem [resolvable:$true] %s262_s16 }
  0x3e   :  { %255 = dma.hbm_to_vmem [thread:$0]  %s248_s13, 2048, %s250_s2, [#allocation27], %s5075_s1, %s5075_s1, %s5076_s23  }
  0x3f   :  { %268 = dma.hbm_to_vmem [thread:$0]  %s261_s15, 1024, %s263_s16, [#allocation30], %s5068_s3, %s5068_s3, %s5069_s26  }
  0x40   :  { %5045 = dma.done.wait [#allocation3], 1024  }
  0x41   :  { %5046 = vsyncadd [#allocation3], 4294966272 }
  0x42   :  { %5047 = dma.done.wait [#allocation6], 2048  }
  0x43   :  { %5048 = vsyncadd [#allocation6], 4294965248 }
  0x44   :  { %5049 = dma.done.wait [#allocation9], 2048  }
  0x45   :  { %5050 = vsyncadd [#allocation9], 4294965248 }
  0x46   :  { %5051 = dma.done.wait [#allocation12], 2048  }
  0x47   :  { %5052 = vsyncadd [#allocation12], 4294965248 }
  0x48   :  { %5053 = dma.done.wait [#allocation15], 2048  }
  0x49   :  { %5054 = vsyncadd [#allocation15], 4294965248 }
  0x4a   :  { %5055 = dma.done.wait [#allocation18], 2048  }
  0x4b   :  { %5056 = vsyncadd [#allocation18], 4294965248 }
  0x4c   :  { %5057 = dma.done.wait [#allocation21], 3072  }
  0x4d   :  { %5058 = vsyncadd [#allocation21], 4294964224 }
  0x4e   :  { %5059 = dma.done.wait [#allocation24], 2048  }
  0x4f   :  { %5060 = vsyncadd [#allocation24], 4294965248 }
  0x50   :  { %5061 = dma.done.wait [#allocation27], 3072  }
  0x51   :  { %5062 = vsyncadd [#allocation27], 4294964224 }
  0x52   :  { %5063 = dma.done.wait [#allocation30], 1024  }
  0x53   :  { %5064 = vsyncadd [#allocation30], 4294966272  ;;  %v3617_v0 = vld [vmem:[#allocation20 + $0x70] sm:$0xf]  ;;  %v4094_v1 = vld [vmem:[#allocation20 + $0x74] sm:$0xf0] }
  0x54   :  { %v3609_v2 = vld [vmem:[#allocation20 + $0x60] sm:$0xf]  ;;  %v3618_v3 = vor.u32 %v4094_v1, %v3617_v0  ;;  %v4092_v4 = vld [vmem:[#allocation20 + $0x64] sm:$0xf0]  ;;  %v3601_v6 = vld [vmem:[#allocation20 + $0x50] sm:$0xf] }
  0x55   :  { %v3610_v5 = vor.u32 %v4092_v4, %v3609_v2  ;;  %v4090_v7 = vld [vmem:[#allocation20 + $0x54] sm:$0xf0]  ;;  %v3593_v9 = vld [vmem:[#allocation20 + $0x40] sm:$0xf]  ;;  %v4088_v10 = vld [vmem:[#allocation20 + $0x44] sm:$0xf0] }
  0x56   :  { %4323 = vmatpush.bf16.msra.mxu1 %v3618_v3  ;;  %4325 = vmatpush.bf16.msra.mxu3 %v3618_v3  ;;  %v3602_v8 = vor.u32 %v4090_v7, %v3601_v6  ;;  %v3594_v11 = vor.u32 %v4088_v10, %v3593_v9  ;;  %v3585_v12 = vld [vmem:[#allocation20 + $0x30] sm:$0xf]  ;;  %v4086_v13 = vld [vmem:[#allocation20 + $0x34] sm:$0xf0]  ;;  %v3577_v15 = vld [vmem:[#allocation20 + $0x20] sm:$0xf] }
  0x57   :  { %4324 = vmatpush.bf16.msra.mxu2 %v3618_v3  ;;  %601 = vmatpush.bf16.msra.mxu0 %v3618_v3  ;;  %v3586_v14 = vor.u32 %v4086_v13, %v3585_v12  ;;  %v4084_v16 = vld [vmem:[#allocation20 + $0x24] sm:$0xf0]  ;;  %v3569_v18 = vld [vmem:[#allocation20 + $0x10] sm:$0xf]  ;;  %v4082_v19 = vld [vmem:[#allocation20 + $0x14] sm:$0xf0] }
  0x58   :  { %v3578_v17 = vor.u32 %v4084_v16, %v3577_v15  ;;  %v3570_v20 = vor.u32 %v4082_v19, %v3569_v18  ;;  %v3561_v21 = vld [vmem:[#allocation20] sm:$0xf]  ;;  %v4080_v22 = vld [vmem:[#allocation20 + $0x4] sm:$0xf0]  ;;  %v4093_v23 = vld [vmem:[#allocation20 + $0x74] sm:$0xf] }
  0x59   :  { %v3619_v24 = vld [vmem:[#allocation20 + $0x78] sm:$0xf0]  ;;  %v3562_v25 = vor.u32 %v4080_v22, %v3561_v21  ;;  %v4091_v27 = vld [vmem:[#allocation20 + $0x64] sm:$0xf]  ;;  %v3611_v28 = vld [vmem:[#allocation20 + $0x68] sm:$0xf0] }
  0x5a   :  { %4326 = vmatpush.bf16.msra.mxu1 %v3610_v5  ;;  %4328 = vmatpush.bf16.msra.mxu3 %v3610_v5  ;;  %v3622_v26 = vor.u32 %v4093_v23, %v3619_v24  ;;  %v4041_v29 = vld [vmem:[#allocation2 + $0x10] sm:$0xff]  ;;  %v4043_v31 = vld [vmem:[#allocation2 + $0x20] sm:$0xff]  ;;  %v3614_v32 = vor.u32 %v4091_v27, %v3611_v28  ;;  %v3603_v34 = vld [vmem:[#allocation20 + $0x58] sm:$0xf0]  ;;  %s3505_s28 = sshll.u32 %s6413_s19, 4  ;;  %s3506_s28 = int_to_ptr.hbm [resolvable:$true] %s3505_s28 }
  0x5b   :  { %4327 = vmatpush.bf16.msra.mxu2 %v3610_v5  ;;  %602 = vmatpush.bf16.msra.mxu0 %v3610_v5  ;;  %v4045_v30 = vld [vmem:[#allocation2 + $0x30] sm:$0xff]  ;;  %v4039_v35 = vld [vmem:[#allocation2] sm:$0xff]  ;;  %v3595_v38 = vld [vmem:[#allocation20 + $0x48] sm:$0xf0] }
  0x5c   :  { %v4089_v33 = vld [vmem:[#allocation20 + $0x54] sm:$0xf]  ;;  %v4087_v37 = vld [vmem:[#allocation20 + $0x44] sm:$0xf]  ;;  %v3587_v41 = vld [vmem:[#allocation20 + $0x38] sm:$0xf0] }
  0x5d   :  { %v3606_v36 = vor.u32 %v4089_v33, %v3603_v34  ;;  %v3598_v39 = vor.u32 %v4087_v37, %v3595_v38  ;;  %v4085_v40 = vld [vmem:[#allocation20 + $0x34] sm:$0xf]  ;;  %v4083_v43 = vld [vmem:[#allocation20 + $0x24] sm:$0xf]  ;;  %v3579_v44 = vld [vmem:[#allocation20 + $0x28] sm:$0xf0] }
  0x5e   :  { %4329 = vmatpush.bf16.msra.mxu1 %v3602_v8  ;;  %4331 = vmatpush.bf16.msra.mxu3 %v3602_v8  ;;  %v3590_v42 = vor.u32 %v4085_v40, %v3587_v41  ;;  %v4042_v45 = vld [vmem:[#allocation2 + $0x18] sm:$0xff]  ;;  %v4044_v47 = vld [vmem:[#allocation2 + $0x28] sm:$0xff]  ;;  %v3582_v48 = vor.u32 %v4083_v43, %v3579_v44  ;;  %v4081_v49 = vld [vmem:[#allocation20 + $0x14] sm:$0xf] }
  0x5f   :  { %4330 = vmatpush.bf16.msra.mxu2 %v3602_v8  ;;  %603 = vmatpush.bf16.msra.mxu0 %v3602_v8  ;;  %v4046_v46 = vld [vmem:[#allocation2 + $0x38] sm:$0xff]  ;;  %v4040_v51 = vld [vmem:[#allocation2 + $0x8] sm:$0xff]  ;;  %v4079_v53 = vld [vmem:[#allocation20 + $0x4] sm:$0xf] }
  0x60   :  { %v3571_v50 = vld [vmem:[#allocation20 + $0x18] sm:$0xf0]  ;;  %v3563_v54 = vld [vmem:[#allocation20 + $0x8] sm:$0xf0]  ;;  %v5301_v1 = vld [vmem:[%s6412_s18] sm:$0xff] }
  0x61   :  { %v3574_v52 = vor.u32 %v4081_v49, %v3571_v50  ;;  %v3566_v55 = vor.u32 %v4079_v53, %v3563_v54  ;;  %v699_v3 = vperm.slane %v5301_v1, 0  ;;  %v4095_v49 = vld [vmem:[#allocation7] sm:$0xff]  ;;  %v716_v50 = vperm.slane %v5301_v1, 1 }
  0x62   :  { %4332 = vmatpush.bf16.msra.mxu1 %v3594_v11  ;;  %4334 = vmatpush.bf16.msra.mxu3 %v3594_v11 }
  0x63   :  { %4333 = vmatpush.bf16.msra.mxu2 %v3594_v11  ;;  %604 = vmatpush.bf16.msra.mxu0 %v3594_v11 }
  0x66   :  { %4335 = vmatpush.bf16.msra.mxu1 %v3586_v14  ;;  %4337 = vmatpush.bf16.msra.mxu3 %v3586_v14 }
  0x67   :  { %4336 = vmatpush.bf16.msra.mxu2 %v3586_v14  ;;  %605 = vmatpush.bf16.msra.mxu0 %v3586_v14 }
  0x6a   :  { %4338 = vmatpush.bf16.msra.mxu1 %v3578_v17  ;;  %4340 = vmatpush.bf16.msra.mxu3 %v3578_v17 }
  0x6b   :  { %4339 = vmatpush.bf16.msra.mxu2 %v3578_v17  ;;  %606 = vmatpush.bf16.msra.mxu0 %v3578_v17 }
  0x6e   :  { %4341 = vmatpush.bf16.msra.mxu1 %v3570_v20  ;;  %4343 = vmatpush.bf16.msra.mxu3 %v3570_v20 }
  0x6f   :  { %4342 = vmatpush.bf16.msra.mxu2 %v3570_v20  ;;  %607 = vmatpush.bf16.msra.mxu0 %v3570_v20 }
  0x72   :  { %4344 = vmatpush.bf16.msra.mxu1 %v3562_v25  ;;  %4346 = vmatpush.bf16.msra.mxu3 %v3562_v25 }
  0x73   :  { %4345 = vmatpush.bf16.msra.mxu2 %v3562_v25  ;;  %608 = vmatpush.bf16.msra.mxu0 %v3562_v25 }
  0x75   :  { %619 = vmatmul.bf16.vlgmr.msra.gmra.mxu1 %v4041_v29  ;;  %639 = vmatmul.bf16.vlgmr.msra.gmra.mxu3 %v4045_v30 }
  0x76   :  { %650 = vmatpush.bf16.msrb.mxu1 %v3622_v26  ;;  %629 = vmatmul.bf16.vlgmr.msra.gmra.mxu2 %v4043_v31 }
  0x77   :  { %609 = vmatmul.bf16.vlgmr.msra.gmra.mxu0 %v4039_v35 }
  0x7a   :  { %651 = vmatpush.bf16.msrb.mxu1 %v3614_v32 }
  0x7e   :  { %652 = vmatpush.bf16.msrb.mxu1 %v3606_v36 }
  0x82   :  { %653 = vmatpush.bf16.msrb.mxu1 %v3598_v39 }
  0x85   :  { %624 = vmatmul.bf16.gmra.mxu1 %v4042_v45  ;;  %644 = vmatmul.bf16.gmra.mxu3 %v4046_v46 }
  0x86   :  { %654 = vmatpush.bf16.msrb.mxu1 %v3590_v42  ;;  %634 = vmatmul.bf16.gmra.mxu2 %v4044_v47 }
  0x87   :  { %614 = vmatmul.bf16.gmra.mxu0 %v4040_v51 }
  0x8a   :  { %655 = vmatpush.bf16.msrb.mxu1 %v3582_v48 }
  0x8e   :  { %656 = vmatpush.bf16.msrb.mxu1 %v3574_v52 }
  0x92   :  { %657 = vmatpush.bf16.msrb.mxu1 %v3566_v55 }
  0x95   :  { %658 = vmatmul.bf16.vlgmr.msrb.gmra.mxu1 %v4039_v35 }
  0xa5   :  { %663 = vmatmul.bf16.gmra.mxu1 %v4040_v51 }
  0xb5   :  { %668 = vmatmul.bf16.gmra.mxu1 %v4041_v29 }
  0xc5   :  { %673 = vmatmul.bf16.gmra.mxu1 %v4042_v45 }
  0xd5   :  { %678 = vmatmul.bf16.gmra.mxu1 %v4043_v31 }
  0xe5   :  { %683 = vmatmul.bf16.gmra.mxu1 %v4044_v47 }
  0xf2   :  { %v620_v56 = vpop.f32.mrf.mxu1 }
  0xf3   :  { %v704_v25 = vadd.f32 %v699_v3, %v620_v56 }
  0xf4   :  { %v610_v32 = vpop.f32.mrf.mxu0 }
  0xf5   :  { %688 = vmatmul.bf16.gmra.mxu1 %v4045_v30  ;;  %v700_v41 = vadd.f32 %v699_v3, %v610_v32 }
  0xf8   :  { %v640_v57 = vpop.f32.mrf.mxu3 }
  0xf9   :  { %v630_v58 = vpop.f32.mrf.mxu2  ;;  %v712_v6 = vadd.f32 %v699_v3, %v640_v57 }
  0xfa   :  { %v622_v59 = vpop.f32.mrf.mxu1  ;;  %v708_v15 = vadd.f32 %v699_v3, %v630_v58 }
  0xfb   :  { %v705_v23 = vadd.f32 %v699_v3, %v622_v59  ;;  %v4096_v59 = vld [vmem:[#allocation7 + $0x8] sm:$0xff] }
  0xfc   :  { %v612_v34 = vpop.f32.mrf.mxu0 }
  0xfd   :  { %v799_v26 = vpack.c.bf16 %v705_v23, %v704_v25  ;;  %v701_v42 = vadd.f32 %v699_v3, %v612_v34  ;;  %v4101_v23 = vld [vmem:[#allocation7 + $0x30] sm:$0xff]  ;;  %v4108_v25 = vld [vmem:[#allocation8 + $0x28] sm:$0xff] }
  0xff   :  { %v797_v45 = vpack.c.bf16 %v701_v42, %v700_v41 }
 0x100   :  { %v642_v60 = vpop.f32.mrf.mxu3 }
 0x101   :  { %v632_v61 = vpop.f32.mrf.mxu2  ;;  %v713_v7 = vadd.f32 %v699_v3, %v642_v60 }
 0x102   :  { %v625_v62 = vpop.f32.mrf.mxu1  ;;  %v709_v16 = vadd.f32 %v699_v3, %v632_v61 }
 0x103   :  { %v803_v14 = vpack.c.bf16 %v713_v7, %v712_v6  ;;  %v706_v21 = vadd.f32 %v699_v3, %v625_v62 }
 0x104   :  { %v801_v19 = vpack.c.bf16 %v709_v16, %v708_v15  ;;  %v615_v36 = vpop.f32.mrf.mxu0  ;;  %v4103_v16 = vld [vmem:[#allocation8] sm:$0xff] }
 0x105   :  { %693 = vmatmul.bf16.gmra.mxu1 %v4046_v46  ;;  %v702_v39 = vadd.f32 %v699_v3, %v615_v36 }
 0x108   :  { %v645_v63 = vpop.f32.mrf.mxu3 }
 0x109   :  { %v635_v0 = vpop.f32.mrf.mxu2  ;;  %v714_v4 = vadd.f32 %v699_v3, %v645_v63 }
 0x10a   :  { %v627_v2 = vpop.f32.mrf.mxu1  ;;  %v710_v12 = vadd.f32 %v699_v3, %v635_v0 }
 0x10b   :  { %v707_v20 = vadd.f32 %v699_v3, %v627_v2 }
 0x10c   :  { %v617_v38 = vpop.f32.mrf.mxu0 }
 0x10d   :  { %v800_v24 = vpack.c.bf16 %v707_v20, %v706_v21  ;;  %v703_v40 = vadd.f32 %v699_v3, %v617_v38  ;;  %v4099_v20 = vld [vmem:[#allocation7 + $0x20] sm:$0xff]  ;;  %v4105_v21 = vld [vmem:[#allocation8 + $0x10] sm:$0xff] }
 0x10f   :  { %v798_v43 = vpack.c.bf16 %v703_v40, %v702_v39 }
 0x110   :  { %v647_v5 = vpop.f32.mrf.mxu3 }
 0x111   :  { %v715_v8 = vadd.f32 %v699_v3, %v647_v5  ;;  %v637_v10 = vpop.f32.mrf.mxu2 }
 0x112   :  { %v5304_v9 = vpop.f32.mrf.mxu1  ;;  %v711_v13 = vadd.f32 %v699_v3, %v637_v10  ;;  %v4097_v10 = vld [vmem:[#allocation7 + $0x10] sm:$0xff] }
 0x113   :  { %v804_v11 = vpack.c.bf16 %v715_v8, %v714_v4 }
 0x114   :  { %v802_v17 = vpack.c.bf16 %v711_v13, %v710_v12 }
 0x115   :  { %958 = vmatpush.bf16.msrb.mxu3 %v804_v11  ;;  %1370 = vmatpush.bf16.msra.mxu1 %v804_v11 }
 0x119   :  { %959 = vmatpush.bf16.msrb.mxu3 %v803_v14  ;;  %1371 = vmatpush.bf16.msra.mxu1 %v803_v14  ;;  %v717_v14 = vadd.f32 %v716_v50, %v5304_v9  ;;  %v4107_v9 = vld [vmem:[#allocation8 + $0x20] sm:$0xff] }
 0x11a   :  { %v5306_v18 = vpop.f32.mrf.mxu1 }
 0x11b   :  { %v718_v12 = vadd.f32 %v716_v50, %v5306_v18  ;;  %v4106_v18 = vld [vmem:[#allocation8 + $0x18] sm:$0xff] }
 0x11d   :  { %960 = vmatpush.bf16.msrb.mxu3 %v802_v17  ;;  %1372 = vmatpush.bf16.msra.mxu1 %v802_v17  ;;  %v805_v15 = vpack.c.bf16 %v718_v12, %v717_v14  ;;  %v4098_v17 = vld [vmem:[#allocation7 + $0x18] sm:$0xff] }
 0x121   :  { %961 = vmatpush.bf16.msrb.mxu3 %v801_v19  ;;  %1373 = vmatpush.bf16.msra.mxu1 %v801_v19  ;;  %v4104_v19 = vld [vmem:[#allocation8 + $0x8] sm:$0xff] }
 0x122   :  { %v5308_v22 = vpop.f32.mrf.mxu1 }
 0x123   :  { %v719_v11 = vadd.f32 %v716_v50, %v5308_v22  ;;  %v4100_v22 = vld [vmem:[#allocation7 + $0x28] sm:$0xff] }
 0x125   :  { %962 = vmatpush.bf16.msrb.mxu3 %v800_v24  ;;  %1374 = vmatpush.bf16.msra.mxu1 %v800_v24  ;;  %v4102_v24 = vld [vmem:[#allocation7 + $0x38] sm:$0xff] }
 0x129   :  { %963 = vmatpush.bf16.msrb.mxu3 %v799_v26  ;;  %1375 = vmatpush.bf16.msra.mxu1 %v799_v26  ;;  %v4109_v26 = vld [vmem:[#allocation8 + $0x30] sm:$0xff] }
 0x12a   :  { %v666_v27 = vpop.f32.mrf.mxu1 }
 0x12b   :  { %v720_v7 = vadd.f32 %v716_v50, %v666_v27 }
 0x12d   :  { %964 = vmatpush.bf16.msrb.mxu3 %v798_v43  ;;  %1376 = vmatpush.bf16.msra.mxu1 %v798_v43  ;;  %v806_v13 = vpack.c.bf16 %v720_v7, %v719_v11 }
 0x131   :  { %965 = vmatpush.bf16.msrb.mxu3 %v797_v45  ;;  %1377 = vmatpush.bf16.msra.mxu1 %v797_v45 }
 0x132   :  { %v669_v28 = vpop.f32.mrf.mxu1 }
 0x133   :  { %v721_v6 = vadd.f32 %v716_v50, %v669_v28  ;;  %v4110_v28 = vld [vmem:[#allocation8 + $0x38] sm:$0xff] }
 0x134   :  { %966 = vmatmul.bf16.vlgmr.msrb.gmra.mxu3 %v4095_v49 }
 0x13a   :  { %v671_v29 = vpop.f32.mrf.mxu1 }
 0x13b   :  { %v722_v4 = vadd.f32 %v716_v50, %v671_v29 }
 0x13d   :  { %v807_v8 = vpack.c.bf16 %v722_v4, %v721_v6 }
 0x142   :  { %v674_v30 = vpop.f32.mrf.mxu1 }
 0x143   :  { %v723_v3 = vadd.f32 %v716_v50, %v674_v30 }
 0x144   :  { %971 = vmatmul.bf16.gmra.mxu3 %v4096_v59 }
 0x14a   :  { %v676_v31 = vpop.f32.mrf.mxu1 }
 0x14b   :  { %v724_v0 = vadd.f32 %v716_v50, %v676_v31 }
 0x14d   :  { %v808_v5 = vpack.c.bf16 %v724_v0, %v723_v3 }
 0x152   :  { %v679_v33 = vpop.f32.mrf.mxu1 }
 0x153   :  { %v725_v63 = vadd.f32 %v716_v50, %v679_v33 }
 0x154   :  { %976 = vmatmul.bf16.gmra.mxu3 %v4097_v10 }
 0x15a   :  { %v681_v35 = vpop.f32.mrf.mxu1 }
 0x15b   :  { %v726_v61 = vadd.f32 %v716_v50, %v681_v35 }
 0x15d   :  { %v809_v2 = vpack.c.bf16 %v726_v61, %v725_v63 }
 0x162   :  { %v684_v37 = vpop.f32.mrf.mxu1 }
 0x163   :  { %v727_v60 = vadd.f32 %v716_v50, %v684_v37 }
 0x164   :  { %981 = vmatmul.bf16.gmra.mxu3 %v4098_v17 }
 0x16a   :  { %v686_v44 = vpop.f32.mrf.mxu1 }
 0x16b   :  { %v728_v57 = vadd.f32 %v716_v50, %v686_v44 }
 0x16d   :  { %v810_v62 = vpack.c.bf16 %v728_v57, %v727_v60 }
 0x172   :  { %v689_v46 = vpop.f32.mrf.mxu1 }
 0x173   :  { %v729_v56 = vadd.f32 %v716_v50, %v689_v46 }
 0x174   :  { %986 = vmatmul.bf16.gmra.mxu3 %v4099_v20 }
 0x17a   :  { %v691_v47 = vpop.f32.mrf.mxu1 }
 0x17b   :  { %v730_v54 = vadd.f32 %v716_v50, %v691_v47 }
 0x17d   :  { %v811_v58 = vpack.c.bf16 %v730_v54, %v729_v56 }
 0x182   :  { %v694_v48 = vpop.f32.mrf.mxu1 }
 0x183   :  { %v731_v52 = vadd.f32 %v716_v50, %v694_v48 }
 0x184   :  { %991 = vmatmul.bf16.gmra.mxu3 %v4100_v22 }
 0x18a   :  { %v696_v51 = vpop.f32.mrf.mxu1 }
 0x18b   :  { %v732_v53 = vadd.f32 %v716_v50, %v696_v51 }
 0x18d   :  { %v812_v55 = vpack.c.bf16 %v732_v53, %v731_v52 }
 0x18f   :  { %861 = vmatpush.bf16.msrb.mxu2 %v812_v55 }
 0x193   :  { %862 = vmatpush.bf16.msrb.mxu2 %v811_v58  ;;  %v5327_v58 = vperm.slane %v5301_v1, 2 }
 0x194   :  { %996 = vmatmul.bf16.gmra.mxu3 %v4101_v23 }
 0x197   :  { %863 = vmatpush.bf16.msrb.mxu2 %v810_v62 }
 0x19b   :  { %864 = vmatpush.bf16.msrb.mxu2 %v809_v2 }
 0x19f   :  { %865 = vmatpush.bf16.msrb.mxu2 %v808_v5 }
 0x1a3   :  { %866 = vmatpush.bf16.msrb.mxu2 %v807_v8 }
 0x1a4   :  { %1001 = vmatmul.bf16.gmra.mxu3 %v4102_v24 }
 0x1a7   :  { %867 = vmatpush.bf16.msrb.mxu2 %v806_v13 }
 0x1ab   :  { %868 = vmatpush.bf16.msrb.mxu2 %v805_v15 }
 0x1ae   :  { %869 = vmatmul.bf16.vlgmr.msrb.gmra.mxu2 %v4103_v16 }
 0x1b7   :  { %v967_v27 = vpop.f32.mrf.mxu3 }
 0x1be   :  { %874 = vmatmul.bf16.gmra.mxu2 %v4104_v19 }
 0x1bf   :  { %v969_v29 = vpop.f32.mrf.mxu3 }
 0x1c7   :  { %v972_v30 = vpop.f32.mrf.mxu3 }
 0x1ce   :  { %879 = vmatmul.bf16.gmra.mxu2 %v4105_v21 }
 0x1cf   :  { %v5314_v32 = vpop.f32.mrf.mxu3 }
 0x1d7   :  { %v977_v35 = vpop.f32.mrf.mxu3 }
 0x1de   :  { %884 = vmatmul.bf16.gmra.mxu2 %v4106_v18 }
 0x1df   :  { %v979_v38 = vpop.f32.mrf.mxu3 }
 0x1e7   :  { %v982_v40 = vpop.f32.mrf.mxu3 }
 0x1ee   :  { %889 = vmatmul.bf16.gmra.mxu2 %v4107_v9 }
 0x1ef   :  { %v984_v44 = vpop.f32.mrf.mxu3 }
 0x1f7   :  { %v987_v47 = vpop.f32.mrf.mxu3 }
 0x1fe   :  { %894 = vmatmul.bf16.gmra.mxu2 %v4108_v25 }
 0x1ff   :  { %v5324_v49 = vpop.f32.mrf.mxu3 }
 0x207   :  { %v992_v51 = vpop.f32.mrf.mxu3 }
 0x20e   :  { %899 = vmatmul.bf16.gmra.mxu2 %v4109_v26 }
 0x20f   :  { %v994_v54 = vpop.f32.mrf.mxu3 }
 0x217   :  { %v997_v62 = vpop.f32.mrf.mxu3 }
 0x21e   :  { %904 = vmatmul.bf16.gmra.mxu2 %v4110_v28 }
 0x21f   :  { %v999_v10 = vpop.f32.mrf.mxu3 }
 0x227   :  { %v1002_v22 = vpop.f32.mrf.mxu3 }
 0x231   :  { %v870_v31 = vpop.f32.mrf.mxu2 }
 0x232   :  { %v5316_v33 = vadd.f32 %v967_v27, %v870_v31 }
 0x239   :  { %v872_v34 = vpop.f32.mrf.mxu2 }
 0x23a   :  { %v970_v20 = vadd.f32 %v969_v29, %v872_v34 }
 0x23c   :  { %v1008_v24 = vmul.f32 0.2, %v970_v20 }
 0x23e   :  { %v1024_v31 = vmax.f32 %v970_v20, %v1008_v24 }
 0x241   :  { %v875_v36 = vpop.f32.mrf.mxu2 }
 0x242   :  { %v5318_v37 = vadd.f32 %v972_v30, %v875_v36 }
 0x249   :  { %v5320_v39 = vpop.f32.mrf.mxu2 }
 0x251   :  { %v880_v41 = vpop.f32.mrf.mxu2 }
 0x252   :  { %v978_v42 = vadd.f32 %v977_v35, %v880_v41 }
 0x254   :  { %v1011_v11 = vmul.f32 0.2, %v978_v42 }
 0x256   :  { %v1027_v16 = vmax.f32 %v978_v42, %v1011_v11  ;;  %v1041_v42 = vmul.f32 %v5327_v58, %v1024_v31 }
 0x258   :  { %v1044_v9 = vmul.f32 %v5327_v58, %v1027_v16 }
 0x259   :  { %v882_v43 = vpop.f32.mrf.mxu2 }
 0x25a   :  { %v980_v27 = vadd.f32 %v979_v38, %v882_v43 }
 0x25c   :  { %v1012_v36 = vmul.f32 0.2, %v980_v27 }
 0x25e   :  { %v1028_v43 = vmax.f32 %v980_v27, %v1012_v36 }
 0x261   :  { %v885_v45 = vpop.f32.mrf.mxu2 }
 0x262   :  { %v5322_v46 = vadd.f32 %v982_v40, %v885_v45  ;;  %v1004_v40 = vpop.f32.mrf.mxu3 }
 0x269   :  { %v887_v48 = vpop.f32.mrf.mxu2 }
 0x26a   :  { %v985_v63 = vadd.f32 %v984_v44, %v887_v48  ;;  %v1009_v48 = vmul.f32 0.2, %v5318_v37 }
 0x26c   :  { %v1014_v3 = vmul.f32 0.2, %v985_v63 }
 0x26e   :  { %v1030_v8 = vmax.f32 %v985_v63, %v1014_v3 }
 0x270   :  { %v1047_v13 = vmul.f32 %v5327_v58, %v1030_v8  ;;  %v745_v8 = vld [vmem:[#allocation7 + $0x30] sm:$0xff]  }
 0x271   :  { %v890_v50 = vpop.f32.mrf.mxu2 }
 0x272   :  { %v988_v17 = vadd.f32 %v987_v47, %v890_v50 }
 0x274   :  { %v1015_v18 = vmul.f32 0.2, %v988_v17 }
 0x276   :  { %v1031_v28 = vmax.f32 %v988_v17, %v1015_v18  ;;  %v742_v17 = vld [vmem:[#allocation7 + $0x24] sm:$0xf] }
 0x277   :  { %v1113_v18 = vunpack.c.l.bf16 %v742_v17 }
 0x278   :  { %v1048_v34 = vmul.f32 %v5327_v58, %v1031_v28 }
 0x279   :  { %v892_v52 = vpop.f32.mrf.mxu2 }
 0x27a   :  { %v990_v45 = vadd.f32 %v5324_v49, %v892_v52  ;;  %v975_v52 = vadd.f32 %v5314_v32, %v5320_v39 }
 0x27c   :  { %v1016_v50 = vmul.f32 0.2, %v990_v45 }
 0x281   :  { %v895_v53 = vpop.f32.mrf.mxu2 }
 0x282   :  { %v993_v55 = vadd.f32 %v992_v51, %v895_v53  ;;  %v1045_v53 = vmul.f32 %v5327_v58, %v1028_v43  ;;  %v734_v43 = vld [vmem:[#allocation7 + $0x4] sm:$0xff]  }
 0x284   :  { %v1017_v56 = vmul.f32 0.2, %v993_v55 }
 0x286   :  { %v1033_v57 = vmax.f32 %v993_v55, %v1017_v56  ;;  %v1032_v55 = vmax.f32 %v990_v45, %v1016_v50  ;;  %v1013_v56 = vmul.f32 0.2, %v5322_v46 }
 0x288   :  { %v1050_v59 = vmul.f32 %v5327_v58, %v1033_v57  ;;  %v1049_v57 = vmul.f32 %v5327_v58, %v1032_v55 }
 0x289   :  { %v897_v60 = vpop.f32.mrf.mxu2 }
 0x28a   :  { %v995_v61 = vadd.f32 %v994_v54, %v897_v60  ;;  %1076 = vadd.xlane.f32.xlu2 %v1050_v59  ;;  %v1025_v54 = vmax.f32 %v5318_v37, %v1009_v48  ;;  %v1029_v59 = vmax.f32 %v5322_v46, %v1013_v56  ;;  %v1010_v60 = vmul.f32 0.2, %v975_v52  ;;  %v733_v56 = vld [vmem:[#allocation7] sm:$0xf] }
 0x28b   :  { %v1007_v37 = vmul.f32 0.2, %v5316_v33  ;;  %v1106_v48 = vunpack.c.h.bf16 %v734_v43 }
 0x28c   :  { %v1018_v0 = vmul.f32 0.2, %v995_v61  ;;  %v1042_v49 = vmul.f32 %v5327_v58, %v1025_v54 }
 0x28e   :  { %v1034_v2 = vmax.f32 %v995_v61, %v1018_v0  ;;  %v1046_v61 = vmul.f32 %v5327_v58, %v1029_v59  ;;  %v1023_v0 = vmax.f32 %v5316_v33, %v1007_v37  ;;  %v4232_v59 = vld [vmem:[#allocation10] sm:$0xff]  }
 0x28f   :  { %v4234_v37 = vunpack.c.h.bf16 %v4232_v59 }
 0x290   :  { %v1051_v4 = vmul.f32 %v5327_v58, %v1034_v2  ;;  %v1040_v2 = vmul.f32 %v5327_v58, %v1023_v0 }
 0x291   :  { %v900_v5 = vpop.f32.mrf.mxu2 }
 0x292   :  { %v998_v6 = vadd.f32 %v997_v62, %v900_v5  ;;  %1078 = vadd.xlane.f32.xlu2 %v1051_v4  ;;  %v1026_v62 = vmax.f32 %v975_v52, %v1010_v60  ;;  %v747_v5 = vld [vmem:[#allocation7 + $0x38] sm:$0xff]   ;;  %v1104_v52 = vunpack.c.l.bf16 %v733_v56 }
 0x294   :  { %v1019_v7 = vmul.f32 0.2, %v998_v6  ;;  %v1043_v63 = vmul.f32 %v5327_v58, %v1026_v62 }
 0x296   :  { %v1035_v1 = vmax.f32 %v998_v6, %v1019_v7  ;;  %v1119_v6 = vunpack.c.h.bf16 %v747_v5  ;;  %v1118_v7 = vunpack.c.l.bf16 %v747_v5 }
 0x298   :  { %v1052_v12 = vmul.f32 %v5327_v58, %v1035_v1  ;;  %v1117_v1 = vunpack.c.h.bf16 %v745_v8 }
 0x299   :  { %v902_v14 = vpop.f32.mrf.mxu2 }
 0x29a   :  { %v1000_v15 = vadd.f32 %v999_v10, %v902_v14  ;;  %1080 = vadd.xlane.f32.xlu1 %v1052_v12  ;;  %1070 = vadd.xlane.f32.xlu2 %v1047_v13  ;;  %v1116_v12 = vunpack.c.l.bf16 %v745_v8  ;;  %v743_v14 = vld [vmem:[#allocation7 + $0x28] sm:$0xff]  }
 0x29c   :  { %v1020_v19 = vmul.f32 0.2, %v1000_v15 }
 0x29e   :  { %v1036_v21 = vmax.f32 %v1000_v15, %v1020_v19  ;;  %v1115_v15 = vunpack.c.h.bf16 %v743_v14  ;;  %v1114_v19 = vunpack.c.l.bf16 %v743_v14 }
 0x2a0   :  { %v1053_v23 = vmul.f32 %v5327_v58, %v1036_v21 }
 0x2a1   :  { %v905_v25 = vpop.f32.mrf.mxu2 }
 0x2a2   :  { %v1003_v26 = vadd.f32 %v1002_v22, %v905_v25  ;;  %1082 = vadd.xlane.f32.xlu1 %v1053_v23  ;;  %1064 = vadd.xlane.f32.xlu2 %v1044_v9  ;;  %v740_v23 = vld [vmem:[#allocation7 + $0x1c] sm:$0xff]   ;;  %v739_v25 = vld [vmem:[#allocation7 + $0x18] sm:$0xf] }
 0x2a3   :  { %v1112_v24 = vunpack.c.h.bf16 %v740_v23  ;;  %v1110_v31 = vunpack.c.l.bf16 %v739_v25 }
 0x2a4   :  { %v1021_v30 = vmul.f32 0.2, %v1003_v26 }
 0x2a6   :  { %v1037_v35 = vmax.f32 %v1003_v26, %v1021_v30  ;;  %v1111_v26 = vunpack.c.l.bf16 %v740_v23  ;;  %v4315_v23 = vld [vmem:[#allocation10 + $0x38] sm:$0xff]  }
 0x2a8   :  { %v1054_v29 = vmul.f32 %v5327_v58, %v1037_v35  ;;  %v737_v35 = vld [vmem:[#allocation7 + $0x10] sm:$0xff]  }
 0x2a9   :  { %v907_v41 = vpop.f32.mrf.mxu2 }
 0x2aa   :  { %v1005_v44 = vadd.f32 %v1004_v40, %v907_v41  ;;  %1084 = vadd.xlane.f32.xlu0 %v1054_v29  ;;  %1072 = vadd.xlane.f32.xlu1 %v1048_v34  ;;  %v1109_v40 = vunpack.c.h.bf16 %v737_v35  ;;  %v736_v41 = vld [vmem:[#allocation7 + $0xc] sm:$0xf] }
 0x2ab   :  { %1058 = vadd.xlane.f32.xlu2 %v1041_v42  ;;  %v1108_v42 = vunpack.c.l.bf16 %v737_v35 }
 0x2ac   :  { %v1022_v38 = vmul.f32 0.2, %v1005_v44 }
 0x2ae   :  { %v1038_v47 = vmax.f32 %v1005_v44, %v1022_v38  ;;  %v1107_v38 = vunpack.c.l.bf16 %v736_v41  ;;  %v4318_v41 = vld [vmem:[#allocation11 + $0x18] sm:$0xff]  }
 0x2b0   :  { %v1055_v51 = vmul.f32 %v5327_v58, %v1038_v47 }
 0x2b2   :  { %1086 = vadd.xlane.f32.xlu0 %v1055_v51  ;;  %1066 = vadd.xlane.f32.xlu1 %v1045_v53  ;;  %v1105_v53 = vunpack.c.l.bf16 %v734_v43 }
 0x2ba   :  { %1074 = vadd.xlane.f32.xlu0 %v1049_v57  ;;  %1060 = vadd.xlane.f32.xlu1 %v1042_v49 }
 0x2c2   :  { %1068 = vadd.xlane.f32.xlu0 %v1046_v61  ;;  %v4233_v61 = vunpack.c.l.bf16 %v4232_v59 }
 0x2ca   :  { %1062 = vadd.xlane.f32.xlu0 %v1043_v63  ;;  %v4309_v63 = vld [vmem:[#allocation10 + $0x8] sm:$0xff]  }
 0x2cb   :  { %v4237_v0 = vunpack.c.l.bf16 %v4309_v63 }
 0x2d2   :  { %1056 = vadd.xlane.f32.xlu0 %v1040_v2  ;;  %v4238_v2 = vunpack.c.h.bf16 %v4309_v63 }
 0x2fd   :  { %v1077_v4 = vpop.xlane.xlu2 %1076 }
 0x2fe   :  { %v1130_v9 = vmul.f32 %v1114_v19, %v1077_v4 }
 0x305   :  { %v1079_v46 = vpop.xlane.xlu2 %1078 }
 0x306   :  { %v1131_v22 = vmul.f32 %v1115_v15, %v1079_v46 }
 0x30d   :  { %v1081_v3 = vpop.xlane.xlu1 %1080  ;;  %v1071_v16 = vpop.xlane.xlu2 %1070 }
 0x30e   :  { %v1132_v20 = vmul.f32 %v1116_v12, %v1081_v3  ;;  %v1127_v34 = vmul.f32 %v1111_v26, %v1071_v16  ;;  %v4310_v3 = vld [vmem:[#allocation10 + $0x10] sm:$0xff]   ;;  %v4264_v12 = vld [vmem:[#allocation11] sm:$0xff]  }
 0x30f   :  { %v4241_v4 = vunpack.c.l.bf16 %v4310_v3  ;;  %v4266_v16 = vunpack.c.h.bf16 %v4264_v12 }
 0x315   :  { %v1083_v39 = vpop.xlane.xlu1 %1082  ;;  %v1065_v36 = vpop.xlane.xlu2 %1064 }
 0x316   :  { %v1133_v58 = vmul.f32 %v1117_v1, %v1083_v39  ;;  %v1124_v47 = vmul.f32 %v1108_v42, %v1065_v36  ;;  %v4311_v39 = vld [vmem:[#allocation10 + $0x18] sm:$0xff]   ;;  %v4277_v42 = vunpack.c.l.bf16 %v4318_v41 }
 0x317   :  { %v4245_v46 = vunpack.c.l.bf16 %v4311_v39  ;;  %v4246_v5 = vunpack.c.h.bf16 %v4311_v39 }
 0x31d   :  { %v1085_v32 = vpop.xlane.xlu0 %1084  ;;  %v1073_v33 = vpop.xlane.xlu1 %1072 }
 0x31e   :  { %v1134_v13 = vmul.f32 %v1118_v7, %v1085_v32  ;;  %v1128_v30 = vmul.f32 %v1112_v24, %v1073_v33  ;;  %v1059_v55 = vpop.xlane.xlu2 %1058  ;;  %v4242_v32 = vunpack.c.h.bf16 %v4310_v3  ;;  %v4314_v33 = vld [vmem:[#allocation10 + $0x30] sm:$0xff]   ;;  %v4261_v24 = vunpack.c.l.bf16 %v4315_v23 }
 0x31f   :  { %v1121_v49 = vmul.f32 %v1105_v53, %v1059_v55  ;;  %v4258_v19 = vunpack.c.h.bf16 %v4314_v33 }
 0x325   :  { %v1087_v10 = vpop.xlane.xlu0 %1086  ;;  %v1067_v28 = vpop.xlane.xlu1 %1066 }
 0x326   :  { %v1135_v11 = vmul.f32 %v1119_v6, %v1087_v10  ;;  %v1125_v45 = vmul.f32 %v1109_v40, %v1067_v28  ;;  %v4312_v6 = vld [vmem:[#allocation10 + $0x20] sm:$0xff]   ;;  %v4313_v10 = vld [vmem:[#allocation10 + $0x28] sm:$0xff]  }
 0x327   :  { %v4249_v7 = vunpack.c.l.bf16 %v4312_v6  ;;  %v4250_v8 = vunpack.c.h.bf16 %v4312_v6  ;;  %v4253_v1 = vunpack.c.l.bf16 %v4313_v10 }
 0x328   :  { %1152 = vmatpush.msrb.mxu0 %v1135_v11  ;;  %v4254_v11 = vunpack.c.h.bf16 %v4313_v10 }
 0x32a   :  { %1153 = vmatpush.msrb.mxu0 %v1134_v13  ;;  %v4265_v13 = vunpack.c.l.bf16 %v4264_v12 }
 0x32c   :  { %1154 = vmatpush.msrb.mxu0 %v1133_v58  ;;  %v4257_v58 = vunpack.c.l.bf16 %v4314_v33 }
 0x32d   :  { %v1075_v21 = vpop.xlane.xlu0 %1074  ;;  %v1061_v50 = vpop.xlane.xlu1 %1060 }
 0x32e   :  { %1155 = vmatpush.msrb.mxu0 %v1132_v20  ;;  %v1129_v27 = vmul.f32 %v1113_v18, %v1075_v21  ;;  %v1122_v57 = vmul.f32 %v1106_v48, %v1061_v50  ;;  %v4316_v21 = vld [vmem:[#allocation11 + $0x8] sm:$0xff]   ;;  %v4319_v48 = vld [vmem:[#allocation11 + $0x20] sm:$0xff]  }
 0x32f   :  { %v4270_v25 = vunpack.c.h.bf16 %v4316_v21  ;;  %v4281_v50 = vunpack.c.l.bf16 %v4319_v48 }
 0x330   :  { %1156 = vmatpush.msrb.mxu0 %v1131_v22  ;;  %v4269_v22 = vunpack.c.l.bf16 %v4316_v21 }
 0x332   :  { %1157 = vmatpush.msrb.mxu0 %v1130_v9 }
 0x334   :  { %1158 = vmatpush.msrb.mxu0 %v1129_v27  ;;  %v4262_v27 = vunpack.c.h.bf16 %v4315_v23 }
 0x335   :  { %v1069_v29 = vpop.xlane.xlu0 %1068 }
 0x336   :  { %1159 = vmatpush.msrb.mxu0 %v1128_v30  ;;  %v1126_v44 = vmul.f32 %v1110_v31, %v1069_v29  ;;  %v4317_v30 = vld [vmem:[#allocation11 + $0x10] sm:$0xff]  }
 0x337   :  { %v4273_v31 = vunpack.c.l.bf16 %v4317_v30  ;;  %v4274_v29 = vunpack.c.h.bf16 %v4317_v30 }
 0x338   :  { %1160 = vmatpush.msrb.mxu0 %v1127_v34 }
 0x33a   :  { %1161 = vmatpush.msrb.mxu0 %v1126_v44 }
 0x33c   :  { %1162 = vmatpush.msrb.mxu0 %v1125_v45 }
 0x33d   :  { %v1063_v51 = vpop.xlane.xlu0 %1062 }
 0x33e   :  { %v1123_v54 = vmul.f32 %v1107_v38, %v1063_v51  ;;  %1163 = vmatpush.msrb.mxu0 %v1124_v47  ;;  %v4278_v38 = vunpack.c.h.bf16 %v4318_v41 }
 0x340   :  { %1164 = vmatpush.msrb.mxu0 %v1123_v54 }
 0x342   :  { %1165 = vmatpush.msrb.mxu0 %v1122_v57 }
 0x344   :  { %1166 = vmatpush.msrb.mxu0 %v1121_v49 }
 0x345   :  { %v1057_v60 = vpop.xlane.xlu0 %1056 }
 0x346   :  { %v1120_v62 = vmul.f32 %v1104_v52, %v1057_v60 }
 0x348   :  { %1167 = vmatpush.msrb.mxu0 %v1120_v62  ;;  %v4282_v62 = vunpack.c.h.bf16 %v4319_v48  ;;  %v4134_v48 = vld [vmem:[#allocation22 + $0x38] sm:$0xff] }
 0x349   :  { %1168 = vmatmul.f32.vlgmr.msrb.gmra.mxu0 %v4233_v61 }
 0x34a   :  { %1742 = vmatpush.bf16.msra.mxu0 %v4134_v48 }
 0x351   :  { %1171 = vmatmul.f32.gmra.mxu0 %v4234_v37 }
 0x359   :  { %1174 = vmatmul.f32.gmra.mxu0 %v4237_v0 }
 0x361   :  { %1177 = vmatmul.f32.gmra.mxu0 %v4238_v2  ;;  %v4320_v2 = vld [vmem:[#allocation11 + $0x28] sm:$0xff]  }
 0x362   :  { %v4286_v10 = vunpack.c.h.bf16 %v4320_v2 }
 0x369   :  { %1180 = vmatmul.f32.gmra.mxu0 %v4241_v4 }
 0x371   :  { %1183 = vmatmul.f32.gmra.mxu0 %v4242_v32  ;;  %v4285_v32 = vunpack.c.l.bf16 %v4320_v2 }
 0x379   :  { %1186 = vmatmul.f32.gmra.mxu0 %v4245_v46 }
 0x381   :  { %1189 = vmatmul.f32.gmra.mxu0 %v4246_v5 }
 0x389   :  { %1192 = vmatmul.f32.gmra.mxu0 %v4249_v7 }
 0x391   :  { %1195 = vmatmul.f32.gmra.mxu0 %v4250_v8 }
 0x399   :  { %1198 = vmatmul.f32.gmra.mxu0 %v4253_v1 }
 0x3a1   :  { %1201 = vmatmul.f32.gmra.mxu0 %v4254_v11 }
 0x3a9   :  { %1204 = vmatmul.f32.gmra.mxu0 %v4257_v58 }
 0x3b1   :  { %1207 = vmatmul.f32.gmra.mxu0 %v4258_v19 }
 0x3b9   :  { %1210 = vmatmul.f32.gmra.mxu0 %v4261_v24 }
 0x3c1   :  { %1213 = vmatmul.f32.gmra.mxu0 %v4262_v27 }
 0x3c6   :  { %v1169_v14 = vpop.f32.mrf.mxu0 }
 0x3c7   :  { %v1170_v15 = vadd.f32 %v4265_v13, %v1169_v14  ;;  %v4321_v14 = vld [vmem:[#allocation11 + $0x30] sm:$0xff]  }
 0x3c8   :  { %v4289_v58 = vunpack.c.l.bf16 %v4321_v14 }
 0x3c9   :  { %1217 = vmax.xlane.f32.xlu1 %v1170_v15 }
 0x3ce   :  { %v1172_v17 = vpop.f32.mrf.mxu0 }
 0x3cf   :  { %v1173_v20 = vadd.f32 %v4266_v16, %v1172_v17 }
 0x3d1   :  { %1219 = vmax.xlane.f32.xlu2 %v1173_v20 }
 0x3d6   :  { %v1175_v18 = vpop.f32.mrf.mxu0 }
 0x3d7   :  { %v1176_v9 = vadd.f32 %v4269_v22, %v1175_v18  ;;  %v4290_v18 = vunpack.c.h.bf16 %v4321_v14 }
 0x3d9   :  { %1221 = vmax.xlane.f32.xlu0 %v1176_v9 }
 0x3de   :  { %v1178_v26 = vpop.f32.mrf.mxu0 }
 0x3df   :  { %v1179_v28 = vadd.f32 %v4270_v25, %v1178_v26  ;;  %v4322_v25 = vld [vmem:[#allocation11 + $0x38] sm:$0xff]  }
 0x3e0   :  { %v4293_v30 = vunpack.c.l.bf16 %v4322_v25 }
 0x3e1   :  { %1223 = vmax.xlane.f32.xlu1 %v1179_v28 }
 0x3e6   :  { %v1181_v35 = vpop.f32.mrf.mxu0 }
 0x3e7   :  { %v1182_v36 = vadd.f32 %v4273_v31, %v1181_v35 }
 0x3e9   :  { %1225 = vmax.xlane.f32.xlu2 %v1182_v36 }
 0x3ee   :  { %v1184_v34 = vpop.f32.mrf.mxu0 }
 0x3ef   :  { %v5354_v40 = vadd.f32 %v4274_v29, %v1184_v34 }
 0x3f1   :  { %1227 = vmax.xlane.f32.xlu0 %v5354_v40 }
 0x3f6   :  { %v1187_v44 = vpop.f32.mrf.mxu0 }
 0x3f7   :  { %v5357_v45 = vadd.f32 %v4277_v42, %v1187_v44 }
 0x3f9   :  { %1229 = vmax.xlane.f32.xlu1 %v5357_v45 }
 0x3fe   :  { %v1190_v43 = vpop.f32.mrf.mxu0 }
 0x3ff   :  { %v5360_v47 = vadd.f32 %v4278_v38, %v1190_v43 }
 0x401   :  { %1231 = vmax.xlane.f32.xlu2 %v5360_v47 }
 0x406   :  { %v1193_v51 = vpop.f32.mrf.mxu0 }
 0x407   :  { %v5363_v53 = vadd.f32 %v4281_v50, %v1193_v51  ;;  %v4133_v51 = vld [vmem:[#allocation22 + $0x30] sm:$0xff] }
 0x408   :  { %1743 = vmatpush.bf16.msra.mxu0 %v4133_v51 }
 0x409   :  { %1233 = vmax.xlane.f32.xlu2 %v5363_v53 }
 0x40e   :  { %v1196_v56 = vpop.f32.mrf.mxu0 }
 0x40f   :  { %v5369_v63 = vadd.f32 %v4282_v62, %v1196_v56 }
 0x416   :  { %v1199_v61 = vpop.f32.mrf.mxu0 }
 0x417   :  { %v5375_v5 = vadd.f32 %v4285_v32, %v1199_v61 }
 0x41e   :  { %v1202_v39 = vpop.f32.mrf.mxu0 }
 0x41f   :  { %v5381_v12 = vadd.f32 %v4286_v10, %v1202_v39 }
 0x426   :  { %v1205_v1 = vpop.f32.mrf.mxu0 }
 0x427   :  { %v5387_v17 = vadd.f32 %v4289_v58, %v1205_v1  ;;  %v4127_v1 = vld [vmem:[#allocation22] sm:$0xff] }
 0x43c   :  { %v1218_v54 = vpop.xlane.xlu1 %1217 }
 0x43d   :  { %v1249_v55 = vsub.f32 %v1170_v15, %v1218_v54  ;;  %v4132_v54 = vld [vmem:[#allocation22 + $0x28] sm:$0xff] }
 0x43e   :  { %1744 = vmatpush.bf16.msra.mxu0 %v4132_v54 }
 0x43f   :  { %v1265_v57 = vmul.f32 1.442695, %v1249_v55 }
 0x441   :  { %4370 = vpow2.f32 %v1265_v57 }
 0x444   :  { %v1220_v49 = vpop.xlane.xlu2 %1219 }
 0x445   :  { %v1250_v52 = vsub.f32 %v1173_v20, %v1220_v49  ;;  %v1208_v20 = vpop.f32.mrf.mxu0  ;;  %v4131_v49 = vld [vmem:[#allocation22 + $0x20] sm:$0xff] }
 0x446   :  { %1745 = vmatpush.bf16.msra.mxu0 %v4131_v49  ;;  %v4567_v49 = vld [vmem:[#allocation2 + $0x28] sm:$0xff] }
 0x447   :  { %v5366_v59 = vpop.eup %4370  ;;  %v1267_v60 = vmul.f32 1.442695, %v1250_v52 }
 0x448   :  { %1297 = vadd.xlane.f32.xlu0 %v5366_v59 }
 0x449   :  { %4372 = vpow2.f32 %v1267_v60  ;;  %v4130_v60 = vld [vmem:[#allocation22 + $0x18] sm:$0xff] }
 0x44a   :  { %1746 = vmatpush.bf16.msra.mxu0 %v4130_v60 }
 0x44c   :  { %v1222_v37 = vpop.xlane.xlu0 %1221 }
 0x44d   :  { %v1251_v0 = vsub.f32 %v1176_v9, %v1222_v37  ;;  %v5394_v9 = vadd.f32 %v4290_v18, %v1208_v20 }
 0x44f   :  { %v5371_v3 = vpop.eup %4372  ;;  %v1269_v4 = vmul.f32 1.442695, %v1251_v0 }
 0x450   :  { %1299 = vadd.xlane.f32.xlu1 %v5371_v3  ;;  %1235 = vmax.xlane.f32.xlu0 %v5369_v63 }
 0x451   :  { %4374 = vpow2.f32 %v1269_v4 }
 0x454   :  { %v1224_v46 = vpop.xlane.xlu1 %1223 }
 0x455   :  { %v1252_v6 = vsub.f32 %v1179_v28, %v1224_v46  ;;  %v1211_v28 = vpop.f32.mrf.mxu0  ;;  %v4129_v46 = vld [vmem:[#allocation22 + $0x10] sm:$0xff] }
 0x456   :  { %v5401_v35 = vadd.f32 %v4293_v30, %v1211_v28  ;;  %1747 = vmatpush.bf16.msra.mxu0 %v4129_v46  ;;  %v4141_v46 = vld [vmem:[#allocation23 + $0x30] sm:$0xff] }
 0x457   :  { %v5377_v7 = vpop.eup %4374  ;;  %v1271_v8 = vmul.f32 1.442695, %v1252_v6  ;;  %v4128_v6 = vld [vmem:[#allocation22 + $0x8] sm:$0xff] }
 0x458   :  { %1301 = vadd.xlane.f32.xlu1 %v5377_v7  ;;  %1237 = vmax.xlane.f32.xlu0 %v5375_v5 }
 0x459   :  { %4376 = vpow2.f32 %v1271_v8 }
 0x45a   :  { %1748 = vmatpush.bf16.msra.mxu0 %v4128_v6  ;;  %v4140_v6 = vld [vmem:[#allocation23 + $0x28] sm:$0xff] }
 0x45c   :  { %v1226_v11 = vpop.xlane.xlu2 %1225 }
 0x45d   :  { %v1253_v13 = vsub.f32 %v1182_v36, %v1226_v11  ;;  %v1214_v41 = vpop.f32.mrf.mxu0 }
 0x45e   :  { %1749 = vmatpush.bf16.msra.mxu0 %v4127_v1 }
 0x45f   :  { %v5383_v33 = vpop.eup %4376  ;;  %v1273_v15 = vmul.f32 1.442695, %v1253_v13 }
 0x460   :  { %1239 = vmax.xlane.f32.xlu1 %v5381_v12  ;;  %1303 = vadd.xlane.f32.xlu2 %v5383_v33 }
 0x461   :  { %4378 = vpow2.f32 %v1273_v15 }
 0x464   :  { %v1228_v16 = vpop.xlane.xlu0 %1227 }
 0x465   :  { %v1254_v19 = vsub.f32 %v5354_v40, %v1228_v16  ;;  %v4294_v40 = vunpack.c.h.bf16 %v4322_v25 }
 0x467   :  { %v5390_v21 = vpop.eup %4378  ;;  %v1275_v22 = vmul.f32 1.442695, %v1254_v19  ;;  %v5408_v44 = vadd.f32 %v4294_v40, %v1214_v41  ;;  %v4562_v19 = vld [vmem:[#allocation2] sm:$0xff] }
 0x468   :  { %1241 = vmax.xlane.f32.xlu1 %v5387_v17  ;;  %1305 = vadd.xlane.f32.xlu2 %v5390_v21 }
 0x469   :  { %4380 = vpow2.f32 %v1275_v22  ;;  %1750 = vmatmul.bf16.vlgmr.msra.gmra.mxu0 %v4562_v19 }
 0x46c   :  { %v1230_v23 = vpop.xlane.xlu1 %1229 }
 0x46d   :  { %v1255_v24 = vsub.f32 %v5357_v45, %v1230_v23 }
 0x46f   :  { %v5397_v26 = vpop.eup %4380  ;;  %v1277_v27 = vmul.f32 1.442695, %v1255_v24 }
 0x470   :  { %1307 = vadd.xlane.f32.xlu0 %v5397_v26  ;;  %1243 = vmax.xlane.f32.xlu2 %v5394_v9 }
 0x471   :  { %4382 = vpow2.f32 %v1277_v27 }
 0x474   :  { %v1232_v31 = vpop.xlane.xlu2 %1231 }
 0x475   :  { %v1256_v36 = vsub.f32 %v5360_v47, %v1232_v31 }
 0x477   :  { %v5404_v29 = vpop.eup %4382  ;;  %v1279_v34 = vmul.f32 1.442695, %v1256_v36 }
 0x478   :  { %1245 = vmax.xlane.f32.xlu2 %v5401_v35  ;;  %1309 = vadd.xlane.f32.xlu0 %v5404_v29 }
 0x479   :  { %4384 = vpow2.f32 %v1279_v34  ;;  %v4563_v34 = vld [vmem:[#allocation2 + $0x8] sm:$0xff] }
 0x47a   :  { %1755 = vmatmul.bf16.gmra.mxu0 %v4563_v34 }
 0x47c   :  { %v1234_v42 = vpop.xlane.xlu2 %1233 }
 0x47d   :  { %v1257_v45 = vsub.f32 %v5363_v53, %v1234_v42 }
 0x47f   :  { %v5411_v38 = vpop.eup %4384  ;;  %v1281_v43 = vmul.f32 1.442695, %v1257_v45 }
 0x480   :  { %1311 = vadd.xlane.f32.xlu1 %v5411_v38  ;;  %1247 = vmax.xlane.f32.xlu0 %v5408_v44 }
 0x481   :  { %4386 = vpow2.f32 %v1281_v43 }
 0x487   :  { %v5415_v47 = vpop.eup %4386 }
 0x488   :  { %1313 = vadd.xlane.f32.xlu1 %v5415_v47 }
 0x4bb   :  { %v1298_v50 = vpop.xlane.xlu0 %1297 }
 0x4bc   :  { %4388 = vrcp.f32 %v1298_v50 }
 0x4c2   :  { %v4389_v52 = vpop.eup %4388 }
 0x4c3   :  { %v1236_v53 = vpop.xlane.xlu0 %1235  ;;  %v1300_v55 = vpop.xlane.xlu1 %1299  ;;  %v1345_v62 = vmul.f32 %v4389_v52, %v5366_v59  ;;  %v4568_v52 = vld [vmem:[#allocation2 + $0x30] sm:$0xff] }
 0x4c4   :  { %v1258_v56 = vsub.f32 %v5369_v63, %v1236_v53  ;;  %4390 = vrcp.f32 %v1300_v55  ;;  %v4564_v53 = vld [vmem:[#allocation2 + $0x10] sm:$0xff] }
 0x4c5   :  { %1760 = vmatmul.bf16.gmra.mxu0 %v4564_v53 }
 0x4c6   :  { %v1283_v57 = vmul.f32 1.442695, %v1258_v56 }
 0x4c8   :  { %4392 = vpow2.f32 %v1283_v57  ;;  %v4566_v57 = vld [vmem:[#allocation2 + $0x20] sm:$0xff] }
 0x4ca   :  { %v4391_v61 = vpop.eup %4390 }
 0x4cb   :  { %v1346_v37 = vmul.f32 %v4391_v61, %v5371_v3  ;;  %v1238_v0 = vpop.xlane.xlu0 %1237  ;;  %v1302_v2 = vpop.xlane.xlu1 %1301 }
 0x4cc   :  { %v1259_v4 = vsub.f32 %v5375_v5, %v1238_v0  ;;  %v4569_v0 = vld [vmem:[#allocation2 + $0x38] sm:$0xff] }
 0x4cd   :  { %v1361_v32 = vpack.c.bf16 %v1346_v37, %v1345_v62 }
 0x4ce   :  { %v5422_v63 = vpop.eup %4392  ;;  %v1285_v39 = vmul.f32 1.442695, %v1259_v4 }
 0x4cf   :  { %1315 = vadd.xlane.f32.xlu2 %v5422_v63  ;;  %1378 = vmatmul.bf16.vlgmr.msra.gmra.mxu1 %v1361_v32  ;;  %v4142_v32 = vld [vmem:[#allocation23 + $0x38] sm:$0xff] }
 0x4d0   :  { %4394 = vpow2.f32 %v1285_v39  ;;  %1904 = vmatpush.bf16.msrb.mxu1 %v4142_v32 }
 0x4d1   :  { %4396 = vrcp.f32 %v1302_v2 }
 0x4d3   :  { %v1304_v59 = vpop.xlane.xlu2 %1303  ;;  %v1240_v8 = vpop.xlane.xlu1 %1239 }
 0x4d4   :  { %4398 = vrcp.f32 %v1304_v59  ;;  %v1260_v3 = vsub.f32 %v5381_v12, %v1240_v8  ;;  %1905 = vmatpush.bf16.msrb.mxu1 %v4141_v46  ;;  %v4117_v46 = vld [vmem:[#allocation28 + $0x34] sm:$0xf] }
 0x4d6   :  { %v5426_v5 = vpop.eup %4394  ;;  %v1287_v10 = vmul.f32 1.442695, %v1260_v3 }
 0x4d7   :  { %1317 = vadd.xlane.f32.xlu0 %v5426_v5  ;;  %v4397_v11 = vpop.eup %4396 }
 0x4d8   :  { %4400 = vpow2.f32 %v1287_v10  ;;  %v1347_v58 = vmul.f32 %v4397_v11, %v5377_v7  ;;  %1906 = vmatpush.bf16.msrb.mxu1 %v4140_v6  ;;  %v3747_v6 = vld [vmem:[#allocation28 + $0x38] sm:$0xf0] }
 0x4da   :  { %v4399_v13 = vpop.eup %4398 }
 0x4db   :  { %v1306_v14 = vpop.xlane.xlu2 %1305  ;;  %v1242_v15 = vpop.xlane.xlu1 %1241  ;;  %v1348_v16 = vmul.f32 %v4399_v13, %v5383_v33  ;;  %v4138_v13 = vld [vmem:[#allocation23 + $0x18] sm:$0xff] }
 0x4dc   :  { %v1261_v12 = vsub.f32 %v5387_v17, %v1242_v15  ;;  %v4137_v15 = vld [vmem:[#allocation23 + $0x10] sm:$0xff] }
 0x4dd   :  { %v1362_v20 = vpack.c.bf16 %v1348_v16, %v1347_v58  ;;  %v4136_v16 = vld [vmem:[#allocation23 + $0x8] sm:$0xff] }
 0x4de   :  { %v5432_v22 = vpop.eup %4400  ;;  %v1289_v18 = vmul.f32 1.442695, %v1261_v12 }
 0x4df   :  { %1383 = vmatmul.bf16.gmra.mxu1 %v1362_v20  ;;  %1319 = vadd.xlane.f32.xlu1 %v5432_v22 }
 0x4e0   :  { %4402 = vpow2.f32 %v1289_v18 }
 0x4e1   :  { %4404 = vrcp.f32 %v1306_v14 }
 0x4e3   :  { %v1308_v23 = vpop.xlane.xlu0 %1307  ;;  %v1244_v24 = vpop.xlane.xlu2 %1243 }
 0x4e4   :  { %4406 = vrcp.f32 %v1308_v23  ;;  %v1262_v7 = vsub.f32 %v5394_v9, %v1244_v24 }
 0x4e6   :  { %v5436_v25 = vpop.eup %4402  ;;  %v1291_v33 = vmul.f32 1.442695, %v1262_v7  ;;  %v5456_v8 = vpop.f32.mrf.mxu0 }
 0x4e7   :  { %1321 = vadd.xlane.f32.xlu2 %v5436_v25  ;;  %v4405_v17 = vpop.eup %4404 }
 0x4e8   :  { %4408 = vpow2.f32 %v1291_v33  ;;  %v1349_v31 = vmul.f32 %v4405_v17, %v5390_v21 }
 0x4ea   :  { %v4407_v27 = vpop.eup %4406 }
 0x4eb   :  { %v1246_v28 = vpop.xlane.xlu2 %1245  ;;  %v1310_v30 = vpop.xlane.xlu0 %1309  ;;  %v1350_v36 = vmul.f32 %v4407_v27, %v5397_v26 }
 0x4ec   :  { %v1263_v40 = vsub.f32 %v5401_v35, %v1246_v28 }
 0x4ed   :  { %v1363_v41 = vpack.c.bf16 %v1350_v36, %v1349_v31 }
 0x4ee   :  { %v5442_v9 = vpop.eup %4408  ;;  %v1293_v42 = vmul.f32 1.442695, %v1263_v40  ;;  %v5460_v14 = vpop.f32.mrf.mxu0 }
 0x4ef   :  { %1323 = vadd.xlane.f32.xlu0 %v5442_v9  ;;  %1388 = vmatmul.bf16.gmra.mxu1 %v1363_v41 }
 0x4f0   :  { %4410 = vpow2.f32 %v1293_v42 }
 0x4f1   :  { %4412 = vrcp.f32 %v1310_v30 }
 0x4f3   :  { %v1248_v45 = vpop.xlane.xlu0 %1247  ;;  %v1312_v43 = vpop.xlane.xlu1 %1311 }
 0x4f4   :  { %v1264_v48 = vsub.f32 %v5408_v44, %v1248_v45  ;;  %4414 = vrcp.f32 %v1312_v43  ;;  %v4565_v44 = vld [vmem:[#allocation2 + $0x18] sm:$0xff] }
 0x4f5   :  { %1765 = vmatmul.bf16.gmra.mxu0 %v4565_v44 }
 0x4f6   :  { %v5446_v21 = vpop.eup %4410  ;;  %v1295_v26 = vmul.f32 1.442695, %v1264_v48  ;;  %v4048_v48 = vld [vmem:[#allocation5 + $0x8] sm:$0xff] }
 0x4f7   :  { %1325 = vadd.xlane.f32.xlu1 %v5446_v21  ;;  %v4413_v35 = vpop.eup %4412  ;;  %v5462_v12 = vpop.f32.mrf.mxu0 }
 0x4f8   :  { %4416 = vpow2.f32 %v1295_v26  ;;  %v1351_v51 = vmul.f32 %v4413_v35, %v5404_v29 }
 0x4fa   :  { %v4415_v50 = vpop.eup %4414 }
 0x4fb   :  { %v1352_v54 = vmul.f32 %v4415_v50, %v5411_v38  ;;  %v1314_v60 = vpop.xlane.xlu1 %1313 }
 0x4fc   :  { %4418 = vrcp.f32 %v1314_v60  ;;  %v3771_v60 = vld [vmem:[#allocation28 + $0x68] sm:$0xf0] }
 0x4fd   :  { %v1364_v55 = vpack.c.bf16 %v1352_v54, %v1351_v51  ;;  %v4049_v51 = vld [vmem:[#allocation5 + $0x10] sm:$0xff] }
 0x4fe   :  { %v5451_v56 = vpop.eup %4416 }
 0x4ff   :  { %1327 = vadd.xlane.f32.xlu2 %v5451_v56  ;;  %1393 = vmatmul.bf16.gmra.mxu1 %v1364_v55  ;;  %v5466_v7 = vpop.f32.mrf.mxu0  ;;  %v4125_v55 = vld [vmem:[#allocation28 + $0x74] sm:$0xf] }
 0x502   :  { %v4419_v38 = vpop.eup %4418 }
 0x503   :  { %v1353_v62 = vmul.f32 %v4419_v38, %v5415_v47  ;;  %v4139_v47 = vld [vmem:[#allocation23 + $0x20] sm:$0xff] }
 0x504   :  { %1907 = vmatpush.bf16.msrb.mxu1 %v4139_v47 }
 0x505   :  { %1770 = vmatmul.bf16.gmra.mxu0 %v4566_v57 }
 0x508   :  { %1908 = vmatpush.bf16.msrb.mxu1 %v4138_v13 }
 0x50c   :  { %1909 = vmatpush.bf16.msrb.mxu1 %v4137_v15 }
 0x510   :  { %1910 = vmatpush.bf16.msrb.mxu1 %v4136_v16  ;;  %v3731_v16 = vld [vmem:[#allocation28 + $0x18] sm:$0xf0] }
 0x515   :  { %1775 = vmatmul.bf16.gmra.mxu0 %v4567_v49 }
 0x525   :  { %1780 = vmatmul.bf16.gmra.mxu0 %v4568_v52  ;;  %v4123_v52 = vld [vmem:[#allocation28 + $0x64] sm:$0xf] }
 0x526   :  { %v3774_v38 = vor.u32 %v4123_v52, %v3771_v60 }
 0x535   :  { %1785 = vmatmul.bf16.gmra.mxu0 %v4569_v0 }
 0x542   :  { %v1316_v29 = vpop.xlane.xlu2 %1315  ;;  %v5468_v27 = vpop.f32.mrf.mxu0 }
 0x543   :  { %4420 = vrcp.f32 %v1316_v29  ;;  %v4050_v29 = vld [vmem:[#allocation5 + $0x18] sm:$0xff] }
 0x549   :  { %v4421_v61 = vpop.eup %4420 }
 0x54a   :  { %v1354_v37 = vmul.f32 %v4421_v61, %v5422_v63  ;;  %v1318_v4 = vpop.xlane.xlu0 %1317  ;;  %v5474_v34 = vpop.f32.mrf.mxu0  ;;  %v4121_v61 = vld [vmem:[#allocation28 + $0x54] sm:$0xf] }
 0x54b   :  { %4422 = vrcp.f32 %v1318_v4  ;;  %v3755_v4 = vld [vmem:[#allocation28 + $0x48] sm:$0xf0] }
 0x54c   :  { %v1365_v2 = vpack.c.bf16 %v1354_v37, %v1353_v62  ;;  %v5472_v36 = vpop.f32.mrf.mxu1  ;;  %v3763_v62 = vld [vmem:[#allocation28 + $0x58] sm:$0xf0] }
 0x54d   :  { %v3766_v37 = vor.u32 %v4121_v61, %v3763_v62  ;;  %v3769_v61 = vld [vmem:[#allocation28 + $0x60] sm:$0xf]  ;;  %v4124_v62 = vld [vmem:[#allocation28 + $0x64] sm:$0xf0] }
 0x54e   :  { %1398 = vmatmul.bf16.gmra.mxu1 %v1365_v2  ;;  %v4119_v2 = vld [vmem:[#allocation28 + $0x44] sm:$0xf] }
 0x54f   :  { %v3758_v32 = vor.u32 %v4119_v2, %v3755_v4  ;;  %v4122_v4 = vld [vmem:[#allocation28 + $0x54] sm:$0xf0] }
 0x551   :  { %v4423_v59 = vpop.eup %4422 }
 0x552   :  { %v1320_v39 = vpop.xlane.xlu1 %1319  ;;  %v1355_v63 = vmul.f32 %v4423_v59, %v5426_v5  ;;  %v4135_v5 = vld [vmem:[#allocation23] sm:$0xff]  ;;  %v3750_v59 = vor.u32 %v4117_v46, %v3747_v6 }
 0x553   :  { %4424 = vrcp.f32 %v1320_v39  ;;  %1911 = vmatpush.bf16.msrb.mxu1 %v4135_v5 }
 0x554   :  { %v5476_v40 = vpop.f32.mrf.mxu1 }
 0x559   :  { %v4425_v3 = vpop.eup %4424 }
 0x55a   :  { %v1356_v10 = vmul.f32 %v4425_v3, %v5432_v22  ;;  %v1322_v11 = vpop.xlane.xlu2 %1321  ;;  %v4115_v3 = vld [vmem:[#allocation28 + $0x24] sm:$0xf] }
 0x55b   :  { %4426 = vrcp.f32 %v1322_v11  ;;  %v5501_v11 = vld [vmem:[%s6412_s18] sm:$0xff] }
 0x55c   :  { %v1366_v1 = vpack.c.bf16 %v1356_v10, %v1355_v63  ;;  %v5482_v45 = vpop.f32.mrf.mxu1  ;;  %v3739_v63 = vld [vmem:[#allocation28 + $0x28] sm:$0xf0]  ;;  %v4051_v10 = vld [vmem:[#allocation5 + $0x20] sm:$0xff]  ;;  %v1693_v13 = vperm.slane %v5501_v11, 4 }
 0x55e   :  { %1403 = vmatmul.bf16.gmra.mxu1 %v1366_v1  ;;  %v3742_v1 = vor.u32 %v4115_v3, %v3739_v63  ;;  %v1754_v46 = vadd.f32 %v5460_v14, %v1693_v13  ;;  %v3745_v63 = vld [vmem:[#allocation28 + $0x30] sm:$0xf]  ;;  %v4116_v14 = vld [vmem:[#allocation28 + $0x24] sm:$0xf0] }
 0x561   :  { %v4427_v19 = vpop.eup %4426 }
 0x562   :  { %v1324_v58 = vpop.xlane.xlu0 %1323  ;;  %v1357_v22 = vmul.f32 %v4427_v19, %v5436_v25 }
 0x563   :  { %4428 = vrcp.f32 %v1324_v58  ;;  %v4113_v58 = vld [vmem:[#allocation28 + $0x14] sm:$0xf] }
 0x564   :  { %v3734_v19 = vor.u32 %v4113_v58, %v3731_v16 }
 0x569   :  { %v4429_v20 = vpop.eup %4428 }
 0x56a   :  { %v1358_v18 = vmul.f32 %v4429_v20, %v5442_v9  ;;  %v1326_v24 = vpop.xlane.xlu1 %1325  ;;  %v4047_v9 = vld [vmem:[#allocation5] sm:$0xff] }
 0x56b   :  { %4430 = vrcp.f32 %v1326_v24  ;;  %v4111_v24 = vld [vmem:[#allocation28 + $0x4] sm:$0xf] }
 0x56c   :  { %v1367_v23 = vpack.c.bf16 %v1358_v18, %v1357_v22 }
 0x56e   :  { %1408 = vmatmul.bf16.gmra.mxu1 %v1367_v23 }
 0x571   :  { %v4431_v17 = vpop.eup %4430 }
 0x572   :  { %v1328_v33 = vpop.xlane.xlu2 %1327  ;;  %v1359_v30 = vmul.f32 %v4431_v17, %v5446_v21  ;;  %v5478_v41 = vpop.f32.mrf.mxu0 }
 0x573   :  { %4432 = vrcp.f32 %v1328_v33  ;;  %v5486_v21 = vpop.f32.mrf.mxu1  ;;  %v3723_v33 = vld [vmem:[#allocation28 + $0x8] sm:$0xf0] }
 0x574   :  { %v3726_v17 = vor.u32 %v4111_v24, %v3723_v33 }
 0x579   :  { %v4433_v28 = vpop.eup %4432 }
 0x57a   :  { %v1360_v31 = vmul.f32 %v4433_v28, %v5451_v56  ;;  %v5480_v42 = vpop.f32.mrf.mxu0  ;;  %v3779_v56 = vld [vmem:[#allocation28 + $0x78] sm:$0xf0] }
 0x57b   :  { %v5490_v35 = vpop.f32.mrf.mxu1  ;;  %v3782_v44 = vor.u32 %v4125_v55, %v3779_v56  ;;  %v4052_v56 = vld [vmem:[#allocation5 + $0x28] sm:$0xff]  ;;  %v1769_v52 = vadd.f32 %v5480_v42, %v1693_v13  ;;  %v3770_v42 = vor.u32 %v4124_v62, %v3769_v61  ;;  %v4061_v61 = vld [vmem:[#allocation19 + $0x30] sm:$0xff] }
 0x57c   :  { %v1368_v25 = vpack.c.bf16 %v1360_v31, %v1359_v30 }
 0x57d   :  { %1628 = vmatpush.bf16.msra.mxu3 %v3782_v44 }
 0x57e   :  { %1413 = vmatmul.bf16.gmra.mxu1 %v1368_v25 }
 0x581   :  { %1629 = vmatpush.bf16.msra.mxu3 %v3774_v38 }
 0x582   :  { %v5484_v43 = vpop.f32.mrf.mxu0 }
 0x583   :  { %v5492_v54 = vpop.f32.mrf.mxu1 }
 0x585   :  { %1630 = vmatpush.bf16.msra.mxu3 %v3766_v37  ;;  %v1757_v37 = vadd.f32 %v5462_v12, %v1693_v13  ;;  %v4120_v12 = vld [vmem:[#allocation28 + $0x44] sm:$0xf0] }
 0x589   :  { %1631 = vmatpush.bf16.msra.mxu3 %v3758_v32  ;;  %v1752_v32 = vadd.f32 %v5456_v8, %v1693_v13  ;;  %v3737_v8 = vld [vmem:[#allocation28 + $0x20] sm:$0xf] }
 0x58a   :  { %v5488_v26 = vpop.f32.mrf.mxu0  ;;  %v3738_v16 = vor.u32 %v4116_v14, %v3737_v8 }
 0x58b   :  { %v5494_v49 = vpop.f32.mrf.mxu1 }
 0x58d   :  { %1632 = vmatpush.bf16.msra.mxu3 %v3750_v59  ;;  %v4053_v59 = vld [vmem:[#allocation5 + $0x30] sm:$0xff] }
 0x58e   :  { %1912 = vmatmul.bf16.vlgmr.msrb.gmra.mxu1 %v4047_v9 }
 0x591   :  { %1633 = vmatpush.bf16.msra.mxu3 %v3742_v1  ;;  %v1953_v1 = vpack.c.bf16 %v1754_v46, %v1752_v32 }
 0x592   :  { %v1776_v50 = vpop.f32.mrf.mxu0 }
 0x593   :  { %v5496_v39 = vpop.f32.mrf.mxu1  ;;  %v1777_v31 = vadd.f32 %v1776_v50, %v1693_v13  ;;  %v3777_v50 = vld [vmem:[#allocation28 + $0x70] sm:$0xf] }
 0x595   :  { %1634 = vmatpush.bf16.msra.mxu3 %v3734_v19  ;;  %v3729_v19 = vld [vmem:[#allocation28 + $0x10] sm:$0xf] }
 0x599   :  { %1635 = vmatpush.bf16.msra.mxu3 %v3726_v17  ;;  %v4055_v17 = vld [vmem:[#allocation19] sm:$0xff] }
 0x59a   :  { %v1778_v53 = vpop.f32.mrf.mxu0 }
 0x59b   :  { %v1779_v25 = vadd.f32 %v1778_v53, %v1693_v13  ;;  %v4126_v53 = vld [vmem:[#allocation28 + $0x74] sm:$0xf0] }
 0x59c   :  { %1636 = vmatmul.bf16.vlgmr.msra.gmra.mxu3 %v4055_v17 }
 0x59d   :  { %v1958_v55 = vpack.c.bf16 %v1779_v25, %v1777_v31  ;;  %v4056_v25 = vld [vmem:[#allocation19 + $0x8] sm:$0xff] }
 0x59e   :  { %1917 = vmatmul.bf16.gmra.mxu1 %v4048_v48  ;;  %v1772_v48 = vadd.f32 %v5484_v43, %v1693_v13  ;;  %v1762_v43 = vadd.f32 %v5468_v27, %v1693_v13  ;;  %v3761_v27 = vld [vmem:[#allocation28 + $0x50] sm:$0xf] }
 0x5a2   :  { %v1781_v57 = vpop.f32.mrf.mxu0 }
 0x5a3   :  { %v1782_v22 = vadd.f32 %v1781_v57, %v1693_v13  ;;  %v1767_v57 = vadd.f32 %v5478_v41, %v1693_v13 }
 0x5a5   :  { %v1956_v38 = vpack.c.bf16 %v1769_v52, %v1767_v57  ;;  %v4058_v57 = vld [vmem:[#allocation19 + $0x18] sm:$0xff] }
 0x5aa   :  { %v1783_v0 = vpop.f32.mrf.mxu0 }
 0x5ab   :  { %v1784_v18 = vadd.f32 %v1783_v0, %v1693_v13  ;;  %v1759_v0 = vadd.f32 %v5466_v7, %v1693_v13 }
 0x5ac   :  { %1641 = vmatmul.bf16.gmra.mxu3 %v4056_v25 }
 0x5ad   :  { %v1959_v9 = vpack.c.bf16 %v1784_v18, %v1782_v22  ;;  %v1954_v6 = vpack.c.bf16 %v1759_v0, %v1757_v37  ;;  %v4054_v22 = vld [vmem:[#allocation5 + $0x38] sm:$0xff]  ;;  %v3721_v18 = vld [vmem:[#allocation28] sm:$0xf] }
 0x5ae   :  { %1922 = vmatmul.bf16.gmra.mxu1 %v4049_v51  ;;  %v1774_v51 = vadd.f32 %v5488_v26, %v1693_v13  ;;  %v1764_v26 = vadd.f32 %v5474_v34, %v1693_v13  ;;  %v3762_v34 = vor.u32 %v4122_v4, %v3761_v27  ;;  %v4062_v37 = vld [vmem:[#allocation19 + $0x38] sm:$0xff]  ;;  %v4063_v27 = vld [vmem:[#allocation13] sm:$0xff] }
 0x5b0   :  { %v1957_v60 = vpack.c.bf16 %v1774_v51, %v1772_v48  ;;  %v1955_v2 = vpack.c.bf16 %v1764_v26, %v1762_v43  ;;  %v4057_v51 = vld [vmem:[#allocation19 + $0x10] sm:$0xff]  ;;  %v4060_v43 = vld [vmem:[#allocation19 + $0x28] sm:$0xff] }
 0x5b2   :  { %v1786_v47 = vpop.f32.mrf.mxu0 }
 0x5b3   :  { %v1787_v5 = vadd.f32 %v1786_v47, %v1693_v13  ;;  %v3753_v47 = vld [vmem:[#allocation28 + $0x40] sm:$0xf] }
 0x5b4   :  { %v3754_v7 = vor.u32 %v4120_v12, %v3753_v47 }
 0x5ba   :  { %v1788_v20 = vpop.f32.mrf.mxu0 }
 0x5bb   :  { %v1789_v23 = vadd.f32 %v1788_v20, %v1693_v13 }
 0x5bc   :  { %1646 = vmatmul.bf16.gmra.mxu3 %v4057_v51 }
 0x5bd   :  { %v1960_v30 = vpack.c.bf16 %v1789_v23, %v1787_v5  ;;  %v4114_v5 = vld [vmem:[#allocation28 + $0x14] sm:$0xf0]  ;;  %v4112_v23 = vld [vmem:[#allocation28 + $0x4] sm:$0xf0] }
 0x5be   :  { %1927 = vmatmul.bf16.gmra.mxu1 %v4050_v29  ;;  %v3778_v29 = vor.u32 %v4126_v53, %v3777_v50  ;;  %v3730_v20 = vor.u32 %v4114_v5, %v3729_v19  ;;  %v3722_v33 = vor.u32 %v4112_v23, %v3721_v18  ;;  %v4059_v50 = vld [vmem:[#allocation19 + $0x20] sm:$0xff] }
 0x5bf   :  { %2114 = vmatpush.bf16.msrb.mxu3 %v1960_v30  ;;  %2542 = vmatpush.bf16.msra.mxu1 %v1960_v30 }
 0x5c0   :  { %1579 = vmatpush.bf16.msra.mxu2 %v3778_v29 }
 0x5c3   :  { %2115 = vmatpush.bf16.msrb.mxu3 %v1959_v9  ;;  %2543 = vmatpush.bf16.msra.mxu1 %v1959_v9 }
 0x5c4   :  { %1580 = vmatpush.bf16.msra.mxu2 %v3770_v42 }
 0x5c7   :  { %2116 = vmatpush.bf16.msrb.mxu3 %v1958_v55  ;;  %2544 = vmatpush.bf16.msra.mxu1 %v1958_v55 }
 0x5c8   :  { %1581 = vmatpush.bf16.msra.mxu2 %v3762_v34  ;;  %v1807_v34 = vperm.slane %v5501_v11, 5 }
 0x5cb   :  { %v5504_v15 = vpop.f32.mrf.mxu1  ;;  %2117 = vmatpush.bf16.msrb.mxu3 %v1957_v60  ;;  %2545 = vmatpush.bf16.msra.mxu1 %v1957_v60 }
 0x5cc   :  { %1582 = vmatpush.bf16.msra.mxu2 %v3754_v7  ;;  %1651 = vmatmul.bf16.gmra.mxu3 %v4058_v57 }
 0x5ce   :  { %1932 = vmatmul.bf16.gmra.mxu1 %v4051_v10  ;;  %v4118_v10 = vld [vmem:[#allocation28 + $0x34] sm:$0xf0] }
 0x5cf   :  { %2118 = vmatpush.bf16.msrb.mxu3 %v1956_v38  ;;  %2546 = vmatpush.bf16.msra.mxu1 %v1956_v38  ;;  %v3746_v58 = vor.u32 %v4118_v10, %v3745_v63 }
 0x5d1   :  { %1583 = vmatpush.bf16.msra.mxu2 %v3746_v58 }
 0x5d3   :  { %v5506_v28 = vpop.f32.mrf.mxu1  ;;  %2119 = vmatpush.bf16.msrb.mxu3 %v1955_v2  ;;  %2547 = vmatpush.bf16.msra.mxu1 %v1955_v2 }
 0x5d5   :  { %1584 = vmatpush.bf16.msra.mxu2 %v3738_v16 }
 0x5d7   :  { %2120 = vmatpush.bf16.msrb.mxu3 %v1954_v6  ;;  %2548 = vmatpush.bf16.msra.mxu1 %v1954_v6 }
 0x5d9   :  { %1585 = vmatpush.bf16.msra.mxu2 %v3730_v20 }
 0x5db   :  { %v5510_v44 = vpop.f32.mrf.mxu1  ;;  %2121 = vmatpush.bf16.msrb.mxu3 %v1953_v1  ;;  %2549 = vmatpush.bf16.msra.mxu1 %v1953_v1  ;;  %v4064_v1 = vld [vmem:[#allocation13 + $0x8] sm:$0xff] }
 0x5dc   :  { %1656 = vmatmul.bf16.gmra.mxu3 %v4059_v50 }
 0x5dd   :  { %1586 = vmatpush.bf16.msra.mxu2 %v3722_v33 }
 0x5de   :  { %1937 = vmatmul.bf16.gmra.mxu1 %v4052_v56 }
 0x5e0   :  { %1587 = vmatmul.bf16.vlgmr.msra.gmra.mxu2 %v4055_v17 }
 0x5e3   :  { %v5516_v41 = vpop.f32.mrf.mxu1 }
 0x5eb   :  { %v5522_v3 = vpop.f32.mrf.mxu1 }
 0x5ec   :  { %1661 = vmatmul.bf16.gmra.mxu3 %v4060_v43 }
 0x5ee   :  { %1942 = vmatmul.bf16.gmra.mxu1 %v4053_v59 }
 0x5f0   :  { %1592 = vmatmul.bf16.gmra.mxu2 %v4056_v25 }
 0x5f3   :  { %v5524_v13 = vpop.f32.mrf.mxu1 }
 0x5fb   :  { %v5526_v24 = vpop.f32.mrf.mxu1 }
 0x5fc   :  { %1666 = vmatmul.bf16.gmra.mxu3 %v4061_v61 }
 0x5fe   :  { %1947 = vmatmul.bf16.gmra.mxu1 %v4054_v22 }
 0x600   :  { %1597 = vmatmul.bf16.gmra.mxu2 %v4057_v51 }
 0x603   :  { %v5528_v30 = vpop.f32.mrf.mxu1 }
 0x60b   :  { %v5530_v31 = vpop.f32.mrf.mxu1 }
 0x60c   :  { %1671 = vmatmul.bf16.gmra.mxu3 %v4062_v37 }
 0x610   :  { %1602 = vmatmul.bf16.gmra.mxu2 %v4058_v57 }
 0x613   :  { %v5532_v9 = vpop.f32.mrf.mxu1 }
 0x61b   :  { %v5534_v48 = vpop.f32.mrf.mxu1 }
 0x61c   :  { %2122 = vmatmul.bf16.vlgmr.msrb.gmra.mxu3 %v4063_v27 }
 0x61f   :  { %v5536_v4 = vpop.f32.mrf.mxu3 }
 0x620   :  { %1607 = vmatmul.bf16.gmra.mxu2 %v4059_v50  ;;  %6482 = vst [vmem:[#allocation43_spill] sm:$0xff] %v5536_v4 }
 0x623   :  { %v1920_v55 = vpop.f32.mrf.mxu1 }
 0x624   :  { %v1921_v57 = vadd.f32 %v1920_v55, %v1807_v34 }
 0x627   :  { %v5539_v7 = vpop.f32.mrf.mxu3 }
 0x628   :  { %6483 = vst [vmem:[#allocation44_spill] sm:$0xff] %v5539_v7 }
 0x62b   :  { %v1923_v56 = vpop.f32.mrf.mxu1 }
 0x62c   :  { %2127 = vmatmul.bf16.gmra.mxu3 %v4064_v1  ;;  %v1924_v25 = vadd.f32 %v1923_v56, %v1807_v34 }
 0x62f   :  { %v5543_v5 = vpop.f32.mrf.mxu3 }
 0x630   :  { %1612 = vmatmul.bf16.gmra.mxu2 %v4060_v43  ;;  %6484 = vst [vmem:[#allocation45_spill] sm:$0xff] %v5543_v5  ;;  %v4065_v43 = vld [vmem:[#allocation13 + $0x10] sm:$0xff] }
 0x633   :  { %v1925_v52 = vpop.f32.mrf.mxu1 }
 0x634   :  { %v1926_v23 = vadd.f32 %v1925_v52, %v1807_v34 }
 0x636   :  { %v1963_v50 = vpack.c.bf16 %v1926_v23, %v1924_v25  ;;  %v4147_v25 = vld [vmem:[#allocation25 + $0x20] sm:$0xff] }
 0x637   :  { %v5547_v51 = vpop.f32.mrf.mxu3 }
 0x638   :  { %6485 = vst [vmem:[#allocation46_spill] sm:$0xff] %v5547_v51 }
 0x63b   :  { %v1928_v60 = vpop.f32.mrf.mxu1 }
 0x63c   :  { %v1929_v18 = vadd.f32 %v1928_v60, %v1807_v34  ;;  %2132 = vmatmul.bf16.gmra.mxu3 %v4065_v43  ;;  %v1914_v60 = vadd.f32 %v5530_v31, %v1807_v34 }
 0x640   :  { %1617 = vmatmul.bf16.gmra.mxu2 %v4061_v61  ;;  %v4071_v61 = vld [vmem:[#allocation14] sm:$0xff] }
 0x643   :  { %v1930_v53 = vpop.f32.mrf.mxu1 }
 0x644   :  { %v1931_v20 = vadd.f32 %v1930_v53, %v1807_v34 }
 0x646   :  { %v1964_v33 = vpack.c.bf16 %v1931_v20, %v1929_v18  ;;  %v4149_v20 = vld [vmem:[#allocation25 + $0x30] sm:$0xff]  ;;  %v4148_v18 = vld [vmem:[#allocation25 + $0x28] sm:$0xff] }
 0x64b   :  { %v1933_v29 = vpop.f32.mrf.mxu1 }
 0x64c   :  { %v1934_v19 = vadd.f32 %v1933_v29, %v1807_v34  ;;  %v1919_v29 = vadd.f32 %v5534_v48, %v1807_v34  ;;  %v4066_v48 = vld [vmem:[#allocation13 + $0x18] sm:$0xff] }
 0x64d   :  { %2137 = vmatmul.bf16.gmra.mxu3 %v4066_v48 }
 0x64e   :  { %v1962_v53 = vpack.c.bf16 %v1921_v57, %v1919_v29  ;;  %v4076_v57 = vld [vmem:[#allocation14 + $0x28] sm:$0xff]  ;;  %v4145_v29 = vld [vmem:[#allocation25 + $0x10] sm:$0xff] }
 0x650   :  { %1622 = vmatmul.bf16.gmra.mxu2 %v4062_v37 }
 0x653   :  { %v1935_v26 = vpop.f32.mrf.mxu1 }
 0x654   :  { %v1936_v14 = vadd.f32 %v1935_v26, %v1807_v34  ;;  %v1916_v26 = vadd.f32 %v5532_v9, %v1807_v34 }
 0x656   :  { %v1965_v22 = vpack.c.bf16 %v1936_v14, %v1934_v19  ;;  %v1961_v56 = vpack.c.bf16 %v1916_v26, %v1914_v60  ;;  %v4150_v19 = vld [vmem:[#allocation25 + $0x38] sm:$0xff]  ;;  %v4143_v60 = vld [vmem:[#allocation25] sm:$0xff] }
 0x65b   :  { %v1938_v38 = vpop.f32.mrf.mxu1 }
 0x65c   :  { %v1939_v58 = vadd.f32 %v1938_v38, %v1807_v34  ;;  %v5554_v38 = vpop.f32.mrf.mxu3 }
 0x663   :  { %v1940_v62 = vpop.f32.mrf.mxu1  ;;  %v5541_v8 = vpop.f32.mrf.mxu2 }
 0x664   :  { %v1941_v63 = vadd.f32 %v1940_v62, %v1807_v34  ;;  %v5556_v55 = vpop.f32.mrf.mxu3 }
 0x666   :  { %v1966_v16 = vpack.c.bf16 %v1941_v63, %v1939_v58  ;;  %v4075_v58 = vld [vmem:[#allocation14 + $0x20] sm:$0xff] }
 0x66b   :  { %v1943_v42 = vpop.f32.mrf.mxu1  ;;  %v5545_v17 = vpop.f32.mrf.mxu2 }
 0x66c   :  { %v1944_v12 = vadd.f32 %v1943_v42, %v1807_v34  ;;  %v5560_v9 = vpop.f32.mrf.mxu3  ;;  %v4072_v42 = vld [vmem:[#allocation14 + $0x8] sm:$0xff] }
 0x66d   :  { %6486 = vst [vmem:[#allocation47_spill] sm:$0xff] %v5560_v9 }
 0x673   :  { %v1945_v0 = vpop.f32.mrf.mxu1  ;;  %v5552_v52 = vpop.f32.mrf.mxu2 }
 0x674   :  { %v1946_v59 = vadd.f32 %v1945_v0, %v1807_v34  ;;  %v5564_v31 = vpop.f32.mrf.mxu3  ;;  %v4067_v0 = vld [vmem:[#allocation13 + $0x20] sm:$0xff] }
 0x675   :  { %2142 = vmatmul.bf16.gmra.mxu3 %v4067_v0 }
 0x676   :  { %v1967_v10 = vpack.c.bf16 %v1946_v59, %v1944_v12  ;;  %v4074_v12 = vld [vmem:[#allocation14 + $0x18] sm:$0xff] }
 0x67b   :  { %v1948_v2 = vpop.f32.mrf.mxu1  ;;  %v5558_v62 = vpop.f32.mrf.mxu2 }
 0x67c   :  { %v1949_v46 = vadd.f32 %v1948_v2, %v1807_v34  ;;  %v5568_v27 = vpop.f32.mrf.mxu3 }
 0x683   :  { %v1950_v32 = vpop.f32.mrf.mxu1  ;;  %v5562_v37 = vpop.f32.mrf.mxu2 }
 0x684   :  { %v1951_v6 = vadd.f32 %v1950_v32, %v1807_v34  ;;  %v4073_v34 = vld [vmem:[#allocation14 + $0x10] sm:$0xff] }
 0x686   :  { %v1968_v47 = vpack.c.bf16 %v1951_v6, %v1949_v46  ;;  %v5572_v46 = vpop.f32.mrf.mxu3  ;;  %v4068_v6 = vld [vmem:[#allocation13 + $0x28] sm:$0xff] }
 0x687   :  { %6487 = vst [vmem:[#allocation48_spill] sm:$0xff] %v5572_v46  ;;  %2147 = vmatmul.bf16.gmra.mxu3 %v4068_v6 }
 0x688   :  { %2017 = vmatpush.bf16.msrb.mxu2 %v1968_v47 }
 0x68b   :  { %v5566_v2 = vpop.f32.mrf.mxu2 }
 0x68c   :  { %2018 = vmatpush.bf16.msrb.mxu2 %v1967_v10  ;;  %v4069_v10 = vld [vmem:[#allocation13 + $0x30] sm:$0xff] }
 0x68e   :  { %v5574_v59 = vpop.f32.mrf.mxu3 }
 0x690   :  { %2019 = vmatpush.bf16.msrb.mxu2 %v1966_v16 }
 0x693   :  { %v5570_v32 = vpop.f32.mrf.mxu2 }
 0x694   :  { %2020 = vmatpush.bf16.msrb.mxu2 %v1965_v22  ;;  %v4070_v22 = vld [vmem:[#allocation13 + $0x38] sm:$0xff] }
 0x696   :  { %v5578_v63 = vpop.f32.mrf.mxu3 }
 0x697   :  { %2152 = vmatmul.bf16.gmra.mxu3 %v4069_v10  ;;  %v5605_v10 = vperm.slane %v5501_v11, 3 }
 0x698   :  { %2021 = vmatpush.bf16.msrb.mxu2 %v1964_v33 }
 0x69b   :  { %v5576_v47 = vpop.f32.mrf.mxu2 }
 0x69c   :  { %2022 = vmatpush.bf16.msrb.mxu2 %v1963_v50  ;;  %v4146_v50 = vld [vmem:[#allocation25 + $0x18] sm:$0xff] }
 0x69e   :  { %v5582_v14 = vpop.f32.mrf.mxu3 }
 0x6a0   :  { %2023 = vmatpush.bf16.msrb.mxu2 %v1962_v53  ;;  %v4144_v53 = vld [vmem:[#allocation25 + $0x8] sm:$0xff] }
 0x6a3   :  { %v5580_v1 = vpop.f32.mrf.mxu2 }
 0x6a4   :  { %2024 = vmatpush.bf16.msrb.mxu2 %v1961_v56 }
 0x6a6   :  { %v5586_v23 = vpop.f32.mrf.mxu3 }
 0x6a7   :  { %2025 = vmatmul.bf16.vlgmr.msrb.gmra.mxu2 %v4071_v61  ;;  %2157 = vmatmul.bf16.gmra.mxu3 %v4070_v22  ;;  %v4077_v61 = vld [vmem:[#allocation14 + $0x30] sm:$0xff] }
 0x6a8   :  { %2680 = vmatpush.bf16.msra.mxu2 %v4150_v19  ;;  %v1380_v19 = vadd.f32 %v5472_v36, %v5605_v10 }
 0x6ab   :  { %v5584_v16 = vpop.f32.mrf.mxu2 }
 0x6ac   :  { %2681 = vmatpush.bf16.msra.mxu2 %v4149_v20 }
 0x6ae   :  { %v5590_v43 = vpop.f32.mrf.mxu3 }
 0x6b0   :  { %2682 = vmatpush.bf16.msra.mxu2 %v4148_v18 }
 0x6b3   :  { %v5588_v33 = vpop.f32.mrf.mxu2 }
 0x6b4   :  { %2683 = vmatpush.bf16.msra.mxu2 %v4147_v25  ;;  %v1419_v25 = vmax.f32 %v1380_v19, 0.0 }
 0x6b6   :  { %v5594_v56 = vpop.f32.mrf.mxu3 }
 0x6b7   :  { %2030 = vmatmul.bf16.gmra.mxu2 %v4072_v42 }
 0x6b8   :  { %2684 = vmatpush.bf16.msra.mxu2 %v4146_v50 }
 0x6bb   :  { %v5592_v26 = vpop.f32.mrf.mxu2 }
 0x6bc   :  { %2685 = vmatpush.bf16.msra.mxu2 %v4145_v29 }
 0x6be   :  { %v2123_v42 = vpop.f32.mrf.mxu3 }
 0x6c0   :  { %2686 = vmatpush.bf16.msra.mxu2 %v4144_v53 }
 0x6c3   :  { %v5596_v48 = vpop.f32.mrf.mxu2 }
 0x6c4   :  { %2687 = vmatpush.bf16.msra.mxu2 %v4143_v60  ;;  %v1387_v60 = vadd.f32 %v5486_v21, %v5605_v10  ;;  %v1390_v21 = vadd.f32 %v5490_v35, %v5605_v10 }
 0x6c6   :  { %v5600_v6 = vpop.f32.mrf.mxu3 }
 0x6c7   :  { %2035 = vmatmul.bf16.gmra.mxu2 %v4073_v34  ;;  %v4078_v34 = vld [vmem:[#allocation14 + $0x38] sm:$0xff] }
 0x6cb   :  { %v5598_v0 = vpop.f32.mrf.mxu2 }
 0x6ce   :  { %v2128_v20 = vpop.f32.mrf.mxu3 }
 0x6d6   :  { %v5613_v29 = vpop.f32.mrf.mxu3 }
 0x6d7   :  { %2040 = vmatmul.bf16.gmra.mxu2 %v4074_v12  ;;  %v5602_v12 = vpop.f32.mrf.mxu2 }
 0x6df   :  { %v5611_v18 = vpop.f32.mrf.mxu2 }
 0x6e7   :  { %2045 = vmatmul.bf16.gmra.mxu2 %v4075_v58  ;;  %v1382_v58 = vadd.f32 %v5476_v40, %v5605_v10  ;;  %v1385_v40 = vadd.f32 %v5482_v45, %v5605_v10 }
 0x6e9   :  { %v1420_v22 = vmax.f32 %v1382_v58, 0.0  ;;  %v2133_v58 = vpop.f32.mrf.mxu3 }
 0x6f7   :  { %2050 = vmatmul.bf16.gmra.mxu2 %v4076_v57  ;;  %v2607_v57 = vpack.c.bf16 %v1420_v22, %v1419_v25  ;;  %v5627_v25 = vpop.f32.mrf.mxu3 }
 0x707   :  { %2055 = vmatmul.bf16.gmra.mxu2 %v4077_v61  ;;  %v1422_v61 = vmax.f32 %v1387_v60, 0.0 }
 0x717   :  { %2060 = vmatmul.bf16.gmra.mxu2 %v4078_v34  ;;  %v1421_v34 = vmax.f32 %v1385_v40, 0.0  ;;  %v2138_v40 = vpop.f32.mrf.mxu3 }
 0x719   :  { %v2608_v4 = vpack.c.bf16 %v1422_v61, %v1421_v34 }
 0x71f   :  { %v2140_v35 = vpop.f32.mrf.mxu3 }
 0x727   :  { %2688 = vmatmul.bf16.vlgmr.msra.gmra.mxu2 %v2607_v57 }
 0x72a   :  { %v2026_v50 = vpop.f32.mrf.mxu2 }
 0x72b   :  { %v5615_v53 = vadd.f32 %v2123_v42, %v2026_v50  ;;  %v1392_v42 = vadd.f32 %v5492_v54, %v5605_v10  ;;  %v1423_v50 = vmax.f32 %v1390_v21, 0.0  ;;  %v1395_v54 = vadd.f32 %v5494_v49, %v5605_v10 }
 0x72d   :  { %v1424_v57 = vmax.f32 %v1392_v42, 0.0  ;;  %v1425_v42 = vmax.f32 %v1395_v54, 0.0 }
 0x72f   :  { %v2609_v60 = vpack.c.bf16 %v1424_v57, %v1423_v50  ;;  %v5643_v50 = vpop.f32.mrf.mxu3 }
 0x732   :  { %v5621_v36 = vpop.f32.mrf.mxu2 }
 0x737   :  { %2693 = vmatmul.bf16.gmra.mxu2 %v2608_v4  ;;  %v5649_v9 = vpop.f32.mrf.mxu3 }
 0x73a   :  { %v2031_v19 = vpop.f32.mrf.mxu2 }
 0x73b   :  { %v5623_v22 = vadd.f32 %v2128_v20, %v2031_v19  ;;  %v1397_v20 = vadd.f32 %v5496_v39, %v5605_v10  ;;  %v1400_v39 = vadd.f32 %v5504_v15, %v5605_v10 }
 0x73d   :  { %v1426_v34 = vmax.f32 %v1397_v20, 0.0 }
 0x73f   :  { %v2610_v51 = vpack.c.bf16 %v1426_v34, %v1425_v42  ;;  %v2148_v34 = vpop.f32.mrf.mxu3 }
 0x742   :  { %v5631_v45 = vpop.f32.mrf.mxu2 }
 0x747   :  { %2698 = vmatmul.bf16.gmra.mxu2 %v2609_v60 }
 0x74a   :  { %v2036_v61 = vpop.f32.mrf.mxu2 }
 0x74b   :  { %v5633_v4 = vadd.f32 %v2133_v58, %v2036_v61  ;;  %v1402_v58 = vadd.f32 %v5506_v28, %v5605_v10  ;;  %v1427_v61 = vmax.f32 %v1400_v39, 0.0  ;;  %v2150_v39 = vpop.f32.mrf.mxu3 }
 0x74d   :  { %v1428_v60 = vmax.f32 %v1402_v58, 0.0 }
 0x74f   :  { %v2611_v20 = vpack.c.bf16 %v1428_v60, %v1427_v61  ;;  %v1412_v61 = vadd.f32 %v5524_v13, %v5605_v10 }
 0x752   :  { %v5639_v19 = vpop.f32.mrf.mxu2 }
 0x757   :  { %2703 = vmatmul.bf16.gmra.mxu2 %v2610_v51  ;;  %v1407_v51 = vadd.f32 %v5516_v41, %v5605_v10  ;;  %v1410_v41 = vadd.f32 %v5522_v3, %v5605_v10 }
 0x759   :  { %v1430_v42 = vmax.f32 %v1407_v51, 0.0  ;;  %v5663_v51 = vperm.slane %v5501_v11, 6  ;;  %v1417_v11 = vadd.f32 %v5528_v30, %v5605_v10 }
 0x75a   :  { %v2041_v21 = vpop.f32.mrf.mxu2 }
 0x75b   :  { %v5641_v57 = vadd.f32 %v2138_v40, %v2041_v21  ;;  %v1405_v40 = vadd.f32 %v5510_v44, %v5605_v10  ;;  %v1432_v44 = vmax.f32 %v1412_v61, 0.0 }
 0x75d   :  { %v1429_v21 = vmax.f32 %v1405_v40, 0.0 }
 0x75f   :  { %v2612_v15 = vpack.c.bf16 %v1430_v42, %v1429_v21  ;;  %v1431_v42 = vmax.f32 %v1410_v41, 0.0 }
 0x761   :  { %v2613_v13 = vpack.c.bf16 %v1432_v44, %v1431_v42 }
 0x762   :  { %v2043_v49 = vpop.f32.mrf.mxu2 }
 0x763   :  { %v2141_v42 = vadd.f32 %v2140_v35, %v2043_v49 }
 0x767   :  { %2708 = vmatmul.bf16.gmra.mxu2 %v2611_v20 }
 0x76a   :  { %v2046_v54 = vpop.f32.mrf.mxu2 }
 0x772   :  { %v5655_v28 = vpop.f32.mrf.mxu2 }
 0x777   :  { %2713 = vmatmul.bf16.gmra.mxu2 %v2612_v15 }
 0x77a   :  { %v2051_v58 = vpop.f32.mrf.mxu2 }
 0x77b   :  { %v2149_v60 = vadd.f32 %v2148_v34, %v2051_v58  ;;  %v2153_v34 = vpop.f32.mrf.mxu3 }
 0x77d   :  { %v2173_v20 = vadd.f32 %v2149_v60, %v5588_v33 }
 0x77f   :  { %v2189_v5 = vmul.f32 0.2, %v2173_v20 }
 0x781   :  { %v2205_v7 = vmax.f32 %v2173_v20, %v2189_v5  ;;  %v1434_v20 = vmax.f32 %v1417_v11, 0.0 }
 0x782   :  { %v2053_v40 = vpop.f32.mrf.mxu2 }
 0x783   :  { %v2151_v21 = vadd.f32 %v2150_v39, %v2053_v40  ;;  %v2222_v15 = vmul.f32 %v5663_v51, %v2205_v7  ;;  %v2155_v39 = vpop.f32.mrf.mxu3  ;;  %v1415_v7 = vadd.f32 %v5526_v24, %v5605_v10  ;;  %v2144_v10 = vadd.f32 %v5643_v50, %v2046_v54 }
 0x784   :  { %v2136_v50 = vadd.f32 %v5627_v25, %v5639_v19 }
 0x785   :  { %v2174_v58 = vadd.f32 %v2151_v21, %v5592_v26  ;;  %2248 = vadd.xlane.f32.xlu2 %v2222_v15  ;;  %v1433_v40 = vmax.f32 %v1415_v7, 0.0 }
 0x787   :  { %2718 = vmatmul.bf16.gmra.mxu2 %v2613_v13  ;;  %v2190_v33 = vmul.f32 0.2, %v2174_v58  ;;  %v2614_v30 = vpack.c.bf16 %v1434_v20, %v1433_v40 }
 0x789   :  { %v2206_v60 = vmax.f32 %v2174_v58, %v2190_v33 }
 0x78a   :  { %v2056_v3 = vpop.f32.mrf.mxu2 }
 0x78b   :  { %v2154_v46 = vadd.f32 %v2153_v34, %v2056_v3  ;;  %v2223_v5 = vmul.f32 %v5663_v51, %v2206_v60  ;;  %v2158_v58 = vpop.f32.mrf.mxu3  ;;  %v2171_v3 = vadd.f32 %v2144_v10, %v5580_v1  ;;  %v2146_v1 = vadd.f32 %v5649_v9, %v5655_v28 }
 0x78c   :  { %v2131_v10 = vadd.f32 %v5613_v29, %v5631_v45  ;;  %v2163_v29 = vadd.f32 %v5615_v53, %v5541_v8  ;;  %v4158_v8 = vld [vmem:[#allocation26 + $0x38] sm:$0xff] }
 0x78d   :  { %v2175_v61 = vadd.f32 %v2154_v46, %v5596_v48  ;;  %2250 = vadd.xlane.f32.xlu1 %v2223_v5  ;;  %v2170_v46 = vadd.f32 %v2141_v42, %v5576_v47  ;;  %2802 = vmatpush.bf16.msra.mxu3 %v4158_v8 }
 0x78f   :  { %v2191_v26 = vmul.f32 0.2, %v2175_v61  ;;  %v2186_v35 = vmul.f32 0.2, %v2170_v46 }
 0x791   :  { %v2207_v41 = vmax.f32 %v2175_v61, %v2191_v26  ;;  %v2202_v47 = vmax.f32 %v2170_v46, %v2186_v35  ;;  %v2126_v61 = vadd.f32 %v5600_v6, %v5621_v36  ;;  %v2168_v36 = vadd.f32 %v2136_v50, %v5566_v2 }
 0x792   :  { %v2058_v44 = vpop.f32.mrf.mxu2 }
 0x793   :  { %v2156_v21 = vadd.f32 %v2155_v39, %v2058_v44  ;;  %v2224_v15 = vmul.f32 %v5663_v51, %v2207_v41  ;;  %v2160_v54 = vpop.f32.mrf.mxu3  ;;  %v2164_v6 = vadd.f32 %v2126_v61, %v5545_v17  ;;  %v2172_v44 = vadd.f32 %v2146_v1, %v5584_v16  ;;  %v4153_v1 = vld [vmem:[#allocation26 + $0x10] sm:$0xff] }
 0x794   :  { %v2184_v28 = vmul.f32 0.2, %v2168_v36  ;;  %v2165_v17 = vadd.f32 %v5623_v22, %v5552_v52 }
 0x795   :  { %v2176_v34 = vadd.f32 %v2156_v21, %v5598_v0  ;;  %2252 = vadd.xlane.f32.xlu0 %v2224_v15  ;;  %v2167_v0 = vadd.f32 %v5633_v4, %v5562_v37  ;;  %v2187_v37 = vmul.f32 0.2, %v2171_v3  ;;  %v2180_v21 = vmul.f32 0.2, %v2164_v6 }
 0x796   :  { %v2200_v16 = vmax.f32 %v2168_v36, %v2184_v28  ;;  %v4151_v36 = vld [vmem:[#allocation26] sm:$0xff]  ;;  %v5738_v28 = vld [vmem:[%s6412_s18 + $0x8] sm:$0xff] }
 0x797   :  { %2723 = vmatmul.bf16.gmra.mxu2 %v2614_v30  ;;  %v2192_v48 = vmul.f32 0.2, %v2176_v34  ;;  %v2183_v39 = vmul.f32 0.2, %v2167_v0  ;;  %v2203_v19 = vmax.f32 %v2171_v3, %v2187_v37  ;;  %v2196_v2 = vmax.f32 %v2164_v6, %v2180_v21 }
 0x798   :  { %v2169_v30 = vadd.f32 %v5641_v57, %v5570_v32  ;;  %v2166_v32 = vadd.f32 %v2131_v10, %v5558_v62 }
 0x799   :  { %v2208_v13 = vmax.f32 %v2176_v34, %v2192_v48  ;;  %v2199_v25 = vmax.f32 %v2167_v0, %v2183_v39  ;;  %v2220_v9 = vmul.f32 %v5663_v51, %v2203_v19  ;;  %v2188_v34 = vmul.f32 0.2, %v2172_v44 }
 0x79a   :  { %v2061_v24 = vpop.f32.mrf.mxu2  ;;  %v2182_v0 = vmul.f32 0.2, %v2166_v32 }
 0x79b   :  { %v2159_v33 = vadd.f32 %v2158_v58, %v2061_v24  ;;  %v2225_v60 = vmul.f32 %v5663_v51, %v2208_v13  ;;  %v2216_v15 = vmul.f32 %v5663_v51, %v2199_v25  ;;  %v2204_v46 = vmax.f32 %v2172_v44, %v2188_v34 }
 0x79c   :  { %v2181_v58 = vmul.f32 0.2, %v2165_v17  ;;  %v2213_v13 = vmul.f32 %v5663_v51, %v2196_v2  ;;  %v2217_v24 = vmul.f32 %v5663_v51, %v2200_v16  ;;  %v2198_v45 = vmax.f32 %v2166_v32, %v2182_v0  ;;  %v5745_v16 = vld [vmem:[#allocation13 + $0x30] sm:$0xff]  }
 0x79d   :  { %v2177_v49 = vadd.f32 %v2159_v33, %v5602_v12  ;;  %2254 = vadd.xlane.f32.xlu2 %v2225_v60  ;;  %v2219_v12 = vmul.f32 %v5663_v51, %v2202_v47  ;;  %v2185_v33 = vmul.f32 0.2, %v2169_v30  ;;  %v2221_v60 = vmul.f32 %v5663_v51, %v2204_v46 }
 0x79e   :  { %v2197_v52 = vmax.f32 %v2165_v17, %v2181_v58  ;;  %v2179_v47 = vmul.f32 0.2, %v2163_v29  ;;  %v5743_v2 = vperm.slane %v5738_v28, 0  ;;  %v6458_v46 = vunpack.c.h.bf16 %v5745_v16 }
 0x79f   :  { %v2193_v5 = vmul.f32 0.2, %v2177_v49  ;;  %v2201_v22 = vmax.f32 %v2169_v30, %v2185_v33  ;;  %v6456_v33 = vunpack.c.l.bf16 %v5745_v16 }
 0x7a0   :  { %v2214_v35 = vmul.f32 %v5663_v51, %v2197_v52  ;;  %v2195_v62 = vmax.f32 %v2163_v29, %v2179_v47  ;;  %v5755_v52 = vld [vmem:[#allocation13 + $0x28] sm:$0xff]   ;;  %v5762_v47 = vld [vmem:[#allocation13 + $0x24] sm:$0xf] }
 0x7a1   :  { %v2209_v11 = vmax.f32 %v2177_v49, %v2193_v5  ;;  %v2218_v49 = vmul.f32 %v5663_v51, %v2201_v22  ;;  %v2215_v5 = vmul.f32 %v5663_v51, %v2198_v45 }
 0x7a2   :  { %v2063_v7 = vpop.f32.mrf.mxu2  ;;  %v2212_v61 = vmul.f32 %v5663_v51, %v2195_v62 }
 0x7a3   :  { %v2161_v26 = vadd.f32 %v2160_v54, %v2063_v7  ;;  %v2226_v20 = vmul.f32 %v5663_v51, %v2209_v11  ;;  %v4157_v7 = vld [vmem:[#allocation26 + $0x30] sm:$0xff] }
 0x7a4   :  { %2803 = vmatpush.bf16.msra.mxu3 %v4157_v7 }
 0x7a5   :  { %v2178_v4 = vadd.f32 %v2161_v26, %v5611_v18  ;;  %2242 = vadd.xlane.f32.xlu2 %v2219_v12  ;;  %2256 = vadd.xlane.f32.xlu1 %v2226_v20  ;;  %v4156_v26 = vld [vmem:[#allocation26 + $0x28] sm:$0xff]  ;;  %v4155_v20 = vld [vmem:[#allocation26 + $0x20] sm:$0xff] }
 0x7a7   :  { %v2194_v41 = vmul.f32 0.2, %v2178_v4 }
 0x7a8   :  { %2804 = vmatpush.bf16.msra.mxu3 %v4156_v26 }
 0x7a9   :  { %v2210_v40 = vmax.f32 %v2178_v4, %v2194_v41  ;;  %v4152_v4 = vld [vmem:[#allocation26 + $0x8] sm:$0xff] }
 0x7aa   :  { %v5694_v42 = vpop.f32.mrf.mxu2 }
 0x7ab   :  { %v2227_v18 = vmul.f32 %v5663_v51, %v2210_v40  ;;  %v4154_v51 = vld [vmem:[#allocation26 + $0x18] sm:$0xff] }
 0x7ac   :  { %2805 = vmatpush.bf16.msra.mxu3 %v4155_v20  ;;  %v6451_v20 = vunpack.c.l.bf16 %v5762_v47 }
 0x7ad   :  { %2236 = vadd.xlane.f32.xlu2 %v2216_v15  ;;  %2244 = vadd.xlane.f32.xlu1 %v2220_v9 }
 0x7ae   :  { %2258 = vadd.xlane.f32.xlu0 %v2227_v18  ;;  %v5733_v18 = vld [vmem:[#allocation13 + $0x38] sm:$0xff]  }
 0x7af   :  { %v6461_v34 = vunpack.c.h.bf16 %v5733_v18  ;;  %v6460_v17 = vunpack.c.l.bf16 %v5733_v18 }
 0x7b0   :  { %2806 = vmatpush.bf16.msra.mxu3 %v4154_v51 }
 0x7b2   :  { %v5703_v48 = vpop.f32.mrf.mxu2 }
 0x7b4   :  { %2807 = vmatpush.bf16.msra.mxu3 %v4153_v1  ;;  %v5772_v1 = vld [vmem:[#allocation13 + $0x1c] sm:$0xff]  }
 0x7b5   :  { %2230 = vadd.xlane.f32.xlu2 %v2213_v13  ;;  %2238 = vadd.xlane.f32.xlu1 %v2217_v24 }
 0x7b6   :  { %2246 = vadd.xlane.f32.xlu0 %v2221_v60 }
 0x7b8   :  { %2808 = vmatpush.bf16.msra.mxu3 %v4152_v4 }
 0x7ba   :  { %v5711_v57 = vpop.f32.mrf.mxu2 }
 0x7bc   :  { %2809 = vmatpush.bf16.msra.mxu3 %v4151_v36  ;;  %v6448_v36 = vunpack.c.h.bf16 %v5772_v1 }
 0x7bd   :  { %2232 = vadd.xlane.f32.xlu1 %v2214_v35 }
 0x7be   :  { %2240 = vadd.xlane.f32.xlu0 %v2218_v49  ;;  %v6455_v49 = vunpack.c.h.bf16 %v5755_v52 }
 0x7c2   :  { %v5717_v3 = vpop.f32.mrf.mxu2 }
 0x7c6   :  { %2234 = vadd.xlane.f32.xlu0 %v2215_v5  ;;  %v6453_v5 = vunpack.c.l.bf16 %v5755_v52 }
 0x7ca   :  { %v5720_v11 = vpop.f32.mrf.mxu2 }
 0x7ce   :  { %2228 = vadd.xlane.f32.xlu0 %v2212_v61 }
 0x7d2   :  { %v5723_v39 = vpop.f32.mrf.mxu2 }
 0x7da   :  { %v5725_v50 = vpop.f32.mrf.mxu2 }
 0x7e2   :  { %v5727_v54 = vpop.f32.mrf.mxu2 }
 0x7ea   :  { %v5729_v53 = vpop.f32.mrf.mxu2 }
 0x7f2   :  { %v5731_v12 = vpop.f32.mrf.mxu2 }
 0x7f8   :  { %v2249_v44 = vpop.xlane.xlu2 %2248 }
 0x7f9   :  { %v2302_v4 = vmul.f32 %v6453_v5, %v2249_v44 }
 0x7fa   :  { %v2714_v37 = vpop.f32.mrf.mxu2 }
 0x7fb   :  { %v2715_v51 = vadd.f32 %v2714_v37, %v5743_v2 }
 0x800   :  { %v2251_v41 = vpop.xlane.xlu1 %2250 }
 0x801   :  { %v2303_v26 = vmul.f32 %v6455_v49, %v2251_v41  ;;  %v6447_v41 = vunpack.c.l.bf16 %v5772_v1 }
 0x802   :  { %v2716_v6 = vpop.f32.mrf.mxu2 }
 0x803   :  { %v2717_v61 = vadd.f32 %v2716_v6, %v5743_v2  ;;  %v2712_v6 = vadd.f32 %v5731_v12, %v5743_v2 }
 0x808   :  { %v2253_v40 = vpop.xlane.xlu0 %2252 }
 0x809   :  { %v2304_v62 = vmul.f32 %v6456_v33, %v2253_v40  ;;  %v2710_v40 = vadd.f32 %v5729_v53, %v5743_v2 }
 0x80a   :  { %v2719_v25 = vpop.f32.mrf.mxu2 }
 0x80b   :  { %v2720_v29 = vadd.f32 %v2719_v25, %v5743_v2  ;;  %v2856_v25 = vpack.c.bf16 %v2717_v61, %v2715_v51 }
 0x810   :  { %v2255_v9 = vpop.xlane.xlu2 %2254 }
 0x811   :  { %v2305_v0 = vmul.f32 %v6458_v46, %v2255_v9  ;;  %v2855_v9 = vpack.c.bf16 %v2712_v6, %v2710_v40 }
 0x812   :  { %v2721_v19 = vpop.f32.mrf.mxu2 }
 0x813   :  { %v2722_v32 = vadd.f32 %v2721_v19, %v5743_v2  ;;  %v5779_v19 = vld [vmem:[#allocation13 + $0x18] sm:$0xf] }
 0x814   :  { %v6444_v12 = vunpack.c.l.bf16 %v5779_v19 }
 0x815   :  { %v2857_v8 = vpack.c.bf16 %v2722_v32, %v2720_v29  ;;  %v2700_v29 = vadd.f32 %v5720_v11, %v5743_v2 }
 0x818   :  { %v2257_v15 = vpop.xlane.xlu1 %2256  ;;  %v2243_v45 = vpop.xlane.xlu2 %2242 }
 0x819   :  { %v2306_v60 = vmul.f32 %v6460_v17, %v2257_v15  ;;  %v2707_v15 = vadd.f32 %v5727_v54, %v5743_v2  ;;  %v2299_v53 = vmul.f32 %v6447_v41, %v2243_v45  ;;  %v5810_v45 = vld [vmem:[#allocation13 + $0x4] sm:$0xff]  }
 0x81a   :  { %v2724_v21 = vpop.f32.mrf.mxu2  ;;  %v6439_v61 = vunpack.c.h.bf16 %v5810_v45  ;;  %v6438_v51 = vunpack.c.l.bf16 %v5810_v45 }
 0x81b   :  { %v2725_v24 = vadd.f32 %v2724_v21, %v5743_v2 }
 0x820   :  { %v2245_v22 = vpop.xlane.xlu1 %2244 }
 0x821   :  { %v2259_v30 = vpop.xlane.xlu0 %2258  ;;  %v2300_v44 = vmul.f32 %v6448_v36, %v2245_v22  ;;  %v2702_v22 = vadd.f32 %v5723_v39, %v5743_v2  ;;  %v2697_v39 = vadd.f32 %v5717_v3, %v5743_v2 }
 0x822   :  { %v2307_v58 = vmul.f32 %v6461_v34, %v2259_v30  ;;  %v2726_v13 = vpop.f32.mrf.mxu2  ;;  %v5791_v30 = vld [vmem:[#allocation13 + $0x10] sm:$0xff]  }
 0x823   :  { %v2727_v10 = vadd.f32 %v2726_v13, %v5743_v2  ;;  %v6442_v54 = vunpack.c.l.bf16 %v5791_v30 }
 0x824   :  { %2324 = vmatpush.msrb.mxu0 %v2307_v58  ;;  %v2237_v58 = vpop.xlane.xlu2 %2236 }
 0x825   :  { %v2858_v35 = vpack.c.bf16 %v2727_v10, %v2725_v24  ;;  %v6443_v24 = vunpack.c.h.bf16 %v5791_v30  ;;  %v2705_v10 = vadd.f32 %v5725_v50, %v5743_v2 }
 0x826   :  { %2325 = vmatpush.msrb.mxu0 %v2306_v60  ;;  %v5798_v60 = vld [vmem:[#allocation13 + $0xc] sm:$0xf] }
 0x827   :  { %2916 = vmatpush.bf16.msrb.mxu1 %v2858_v35  ;;  %3296 = vmatpush.bf16.msrb.mxu3 %v2858_v35  ;;  %v2854_v35 = vpack.c.bf16 %v2707_v15, %v2705_v10  ;;  %v6441_v50 = vunpack.c.l.bf16 %v5798_v60  ;;  %v2690_v15 = vadd.f32 %v5694_v42, %v5743_v2  ;;  %v5843_v42 = vld [vmem:[#allocation16 + $0x8] sm:$0xff]  }
 0x828   :  { %2326 = vmatpush.msrb.mxu0 %v2305_v0  ;;  %v2239_v21 = vpop.xlane.xlu1 %2238  ;;  %v6428_v10 = vunpack.c.h.bf16 %v5843_v42 }
 0x829   :  { %v2247_v7 = vpop.xlane.xlu0 %2246  ;;  %v2297_v0 = vmul.f32 %v6443_v24, %v2239_v21 }
 0x82a   :  { %2327 = vmatpush.msrb.mxu0 %v2304_v62  ;;  %v2301_v37 = vmul.f32 %v6451_v20, %v2247_v7  ;;  %v2296_v62 = vmul.f32 %v6442_v54, %v2237_v58 }
 0x82b   :  { %2917 = vmatpush.bf16.msrb.mxu1 %v2857_v8  ;;  %3297 = vmatpush.bf16.msrb.mxu3 %v2857_v8  ;;  %v2853_v8 = vpack.c.bf16 %v2702_v22, %v2700_v29 }
 0x82c   :  { %2328 = vmatpush.msrb.mxu0 %v2303_v26  ;;  %v2231_v6 = vpop.xlane.xlu2 %2230 }
 0x82d   :  { %v2293_v21 = vmul.f32 %v6438_v51, %v2231_v6  ;;  %v5881_v6 = vld [vmem:[#allocation17] sm:$0xff]  }
 0x82e   :  { %2329 = vmatpush.msrb.mxu0 %v2302_v4  ;;  %v2695_v4 = vadd.f32 %v5711_v57, %v5743_v2  ;;  %v5831_v57 = vld [vmem:[#allocation16] sm:$0xff]  }
 0x82f   :  { %2918 = vmatpush.bf16.msrb.mxu1 %v2856_v25  ;;  %3298 = vmatpush.bf16.msrb.mxu3 %v2856_v25  ;;  %v5822_v25 = vld [vmem:[#allocation13] sm:$0xf] }
 0x830   :  { %2330 = vmatpush.msrb.mxu0 %v2301_v37  ;;  %v2233_v7 = vpop.xlane.xlu1 %2232  ;;  %v2692_v37 = vadd.f32 %v5703_v48, %v5743_v2  ;;  %v2852_v40 = vpack.c.bf16 %v2697_v39, %v2695_v4  ;;  %v6431_v2 = vunpack.c.l.bf16 %v5843_v42  ;;  %v5867_v39 = vld [vmem:[#allocation16 + $0x20] sm:$0xff]  }
 0x831   :  { %v2241_v13 = vpop.xlane.xlu0 %2240  ;;  %v2294_v3 = vmul.f32 %v6439_v61, %v2233_v7  ;;  %v6418_v7 = vunpack.c.h.bf16 %v5867_v39 }
 0x832   :  { %2331 = vmatpush.msrb.mxu0 %v2300_v44  ;;  %v2298_v32 = vmul.f32 %v6444_v12, %v2241_v13  ;;  %v6437_v44 = vunpack.c.l.bf16 %v5822_v25  ;;  %v6435_v13 = vunpack.c.l.bf16 %v5831_v57 }
 0x833   :  { %2919 = vmatpush.bf16.msrb.mxu1 %v2855_v9  ;;  %3299 = vmatpush.bf16.msrb.mxu3 %v2855_v9  ;;  %v2851_v9 = vpack.c.bf16 %v2692_v37, %v2690_v15  ;;  %v5886_v37 = vld [vmem:[#allocation16 + $0x30] sm:$0xff]  }
 0x834   :  { %2332 = vmatpush.msrb.mxu0 %v2299_v53  ;;  %v6434_v53 = vunpack.c.h.bf16 %v5831_v57 }
 0x836   :  { %2333 = vmatpush.msrb.mxu0 %v2298_v32  ;;  %v5851_v32 = vld [vmem:[#allocation16 + $0x10] sm:$0xff]  }
 0x837   :  { %2920 = vmatpush.bf16.msrb.mxu1 %v2854_v35  ;;  %3300 = vmatpush.bf16.msrb.mxu3 %v2854_v35  ;;  %v6427_v22 = vunpack.c.l.bf16 %v5851_v32  ;;  %v6426_v35 = vunpack.c.h.bf16 %v5851_v32 }
 0x838   :  { %2334 = vmatpush.msrb.mxu0 %v2297_v0  ;;  %v5859_v0 = vld [vmem:[#allocation16 + $0x18] sm:$0xff]  }
 0x839   :  { %v2235_v26 = vpop.xlane.xlu0 %2234  ;;  %v6423_v29 = vunpack.c.l.bf16 %v5859_v0 }
 0x83a   :  { %v2295_v11 = vmul.f32 %v6441_v50, %v2235_v26  ;;  %2335 = vmatpush.msrb.mxu0 %v2296_v62  ;;  %v6422_v62 = vunpack.c.h.bf16 %v5859_v0  ;;  %v5875_v26 = vld [vmem:[#allocation16 + $0x28] sm:$0xff]  }
 0x83b   :  { %2921 = vmatpush.bf16.msrb.mxu1 %v2853_v8  ;;  %3301 = vmatpush.bf16.msrb.mxu3 %v2853_v8  ;;  %v6419_v8 = vunpack.c.l.bf16 %v5867_v39  ;;  %v6414_v4 = vunpack.c.h.bf16 %v5875_v26 }
 0x83c   :  { %2336 = vmatpush.msrb.mxu0 %v2295_v11  ;;  %v6415_v11 = vunpack.c.l.bf16 %v5875_v26 }
 0x83e   :  { %2337 = vmatpush.msrb.mxu0 %v2294_v3  ;;  %v6416_v3 = vunpack.c.l.bf16 %v5881_v6 }
 0x83f   :  { %2922 = vmatpush.bf16.msrb.mxu1 %v2852_v40  ;;  %3302 = vmatpush.bf16.msrb.mxu3 %v2852_v40 }
 0x840   :  { %2338 = vmatpush.msrb.mxu0 %v2293_v21  ;;  %v6417_v21 = vunpack.c.l.bf16 %v5886_v37 }
 0x841   :  { %v2229_v58 = vpop.xlane.xlu0 %2228 }
 0x842   :  { %v2292_v48 = vmul.f32 %v6437_v44, %v2229_v58 }
 0x843   :  { %2923 = vmatpush.bf16.msrb.mxu1 %v2851_v9  ;;  %3303 = vmatpush.bf16.msrb.mxu3 %v2851_v9  ;;  %v6420_v9 = vunpack.c.h.bf16 %v5881_v6 }
 0x844   :  { %2339 = vmatpush.msrb.mxu0 %v2292_v48  ;;  %v6421_v48 = vunpack.c.h.bf16 %v5886_v37 }
 0x845   :  { %2340 = vmatmul.f32.vlgmr.msrb.gmra.mxu0 %v6435_v13 }
 0x84d   :  { %2343 = vmatmul.f32.gmra.mxu0 %v6434_v53 }
 0x855   :  { %2346 = vmatmul.f32.gmra.mxu0 %v6431_v2 }
 0x85d   :  { %2349 = vmatmul.f32.gmra.mxu0 %v6428_v10 }
 0x865   :  { %2352 = vmatmul.f32.gmra.mxu0 %v6427_v22 }
 0x86d   :  { %2355 = vmatmul.f32.gmra.mxu0 %v6426_v35 }
 0x875   :  { %2358 = vmatmul.f32.gmra.mxu0 %v6423_v29  ;;  %v5913_v29 = vld [vmem:[#allocation17 + $0x10] sm:$0xff]  }
 0x876   :  { %v6433_v35 = vunpack.c.h.bf16 %v5913_v29 }
 0x87d   :  { %2361 = vmatmul.f32.gmra.mxu0 %v6422_v62 }
 0x885   :  { %2364 = vmatmul.f32.gmra.mxu0 %v6419_v8 }
 0x88d   :  { %2367 = vmatmul.f32.gmra.mxu0 %v6418_v7 }
 0x895   :  { %2370 = vmatmul.f32.gmra.mxu0 %v6415_v11  ;;  %v5897_v11 = vld [vmem:[#allocation17 + $0x8] sm:$0xff]  }
 0x89d   :  { %2373 = vmatmul.f32.gmra.mxu0 %v6414_v4 }
 0x8a5   :  { %2376 = vmatmul.f32.gmra.mxu0 %v6417_v21 }
 0x8ad   :  { %2379 = vmatmul.f32.gmra.mxu0 %v6421_v48 }
 0x8c2   :  { %v2341_v40 = vpop.f32.mrf.mxu0 }
 0x8c3   :  { %v2342_v15 = vadd.f32 %v6416_v3, %v2341_v40  ;;  %v6424_v40 = vunpack.c.l.bf16 %v5897_v11  ;;  %v5902_v3 = vld [vmem:[#allocation16 + $0x38] sm:$0xff]  }
 0x8c4   :  { %v6425_v7 = vunpack.c.l.bf16 %v5902_v3  ;;  %v6430_v48 = vunpack.c.h.bf16 %v5902_v3 }
 0x8c5   :  { %2389 = vmax.xlane.f32.xlu1 %v2342_v15 }
 0x8c6   :  { %2382 = vmatmul.f32.gmra.mxu0 %v6425_v7 }
 0x8ca   :  { %v2344_v58 = vpop.f32.mrf.mxu0 }
 0x8cb   :  { %v2345_v4 = vadd.f32 %v6420_v9, %v2344_v58  ;;  %v6429_v58 = vunpack.c.h.bf16 %v5897_v11 }
 0x8cd   :  { %2391 = vmax.xlane.f32.xlu2 %v2345_v4 }
 0x8ce   :  { %2385 = vmatmul.f32.gmra.mxu0 %v6430_v48 }
 0x8d2   :  { %v2347_v21 = vpop.f32.mrf.mxu0 }
 0x8d3   :  { %v2348_v8 = vadd.f32 %v6424_v40, %v2347_v21  ;;  %v6432_v21 = vunpack.c.l.bf16 %v5913_v29 }
 0x8d5   :  { %2393 = vmax.xlane.f32.xlu0 %v2348_v8 }
 0x8da   :  { %v2350_v9 = vpop.f32.mrf.mxu0 }
 0x8db   :  { %v2351_v62 = vadd.f32 %v6429_v58, %v2350_v9  ;;  %v5925_v9 = vld [vmem:[#allocation17 + $0x18] sm:$0xff]  }
 0x8dc   :  { %6488 = vst [vmem:[#allocation49_spill] sm:$0xff] %v5925_v9  ;;  %v6436_v58 = vunpack.c.l.bf16 %v5925_v9 }
 0x8dd   :  { %2395 = vmax.xlane.f32.xlu1 %v2351_v62 }
 0x8e2   :  { %v2353_v40 = vpop.f32.mrf.mxu0 }
 0x8e3   :  { %v2354_v7 = vadd.f32 %v6432_v21, %v2353_v40  ;;  %v6440_v40 = vunpack.c.h.bf16 %v5925_v9 }
 0x8e5   :  { %2397 = vmax.xlane.f32.xlu2 %v2354_v7 }
 0x8ea   :  { %v2356_v22 = vpop.f32.mrf.mxu0 }
 0x8eb   :  { %v5923_v10 = vadd.f32 %v6433_v35, %v2356_v22  ;;  %v5939_v35 = vld [vmem:[#allocation17 + $0x20] sm:$0xff]  }
 0x8ec   :  { %6489 = vst [vmem:[#allocation50_spill] sm:$0xff] %v5939_v35  ;;  %v6445_v53 = vunpack.c.l.bf16 %v5939_v35  ;;  %v6446_v12 = vunpack.c.h.bf16 %v5939_v35 }
 0x8ed   :  { %2399 = vmax.xlane.f32.xlu0 %v5923_v10 }
 0x8f2   :  { %v2359_v48 = vpop.f32.mrf.mxu0 }
 0x8f3   :  { %v5931_v2 = vadd.f32 %v6436_v58, %v2359_v48 }
 0x8f5   :  { %2401 = vmax.xlane.f32.xlu1 %v5931_v2 }
 0x8fa   :  { %v2362_v21 = vpop.f32.mrf.mxu0 }
 0x8fb   :  { %v5937_v22 = vadd.f32 %v6440_v40, %v2362_v21 }
 0x8fd   :  { %2403 = vmax.xlane.f32.xlu2 %v5937_v22 }
 0x902   :  { %v2365_v13 = vpop.f32.mrf.mxu0 }
 0x903   :  { %v5945_v48 = vadd.f32 %v6445_v53, %v2365_v13 }
 0x905   :  { %2405 = vmax.xlane.f32.xlu2 %v5945_v48 }
 0x90a   :  { %v2368_v51 = vpop.f32.mrf.mxu0 }
 0x90b   :  { %v5954_v53 = vadd.f32 %v6446_v12, %v2368_v51 }
 0x912   :  { %v2371_v24 = vpop.f32.mrf.mxu0 }
 0x938   :  { %v2390_v58 = vpop.xlane.xlu1 %2389 }
 0x939   :  { %v2421_v44 = vsub.f32 %v2342_v15, %v2390_v58  ;;  %v5956_v58 = vld [vmem:[#allocation17 + $0x28] sm:$0xff]  }
 0x93a   :  { %6490 = vst [vmem:[#allocation51_spill] sm:$0xff] %v5956_v58 }
 0x93b   :  { %v2437_v61 = vmul.f32 1.442695, %v2421_v44 }
 0x93d   :  { %4434 = vpow2.f32 %v2437_v61 }
 0x940   :  { %v2392_v21 = vpop.xlane.xlu2 %2391 }
 0x941   :  { %v2422_v40 = vsub.f32 %v2345_v4, %v2392_v21  ;;  %v6449_v4 = vunpack.c.l.bf16 %v5956_v58 }
 0x943   :  { %v5948_v50 = vpop.eup %4434  ;;  %v2439_v54 = vmul.f32 1.442695, %v2422_v40  ;;  %v2374_v40 = vpop.f32.mrf.mxu0  ;;  %v5965_v21 = vadd.f32 %v6449_v4, %v2371_v24  ;;  %v5976_v24 = vld [vmem:[#allocation17 + $0x30] sm:$0xff]  }
 0x944   :  { %2469 = vadd.xlane.f32.xlu0 %v5948_v50  ;;  %6491 = vst [vmem:[#allocation52_spill] sm:$0xff] %v5976_v24 }
 0x945   :  { %4436 = vpow2.f32 %v2439_v54 }
 0x948   :  { %v2394_v13 = vpop.xlane.xlu0 %2393 }
 0x949   :  { %v2423_v15 = vsub.f32 %v2348_v8, %v2394_v13 }
 0x94b   :  { %v5958_v61 = vpop.eup %4436  ;;  %v2441_v44 = vmul.f32 1.442695, %v2423_v15  ;;  %v6450_v15 = vunpack.c.h.bf16 %v5956_v58  ;;  %v2377_v12 = vpop.f32.mrf.mxu0 }
 0x94c   :  { %2471 = vadd.xlane.f32.xlu1 %v5958_v61  ;;  %2407 = vmax.xlane.f32.xlu0 %v5954_v53 }
 0x94d   :  { %4438 = vpow2.f32 %v2441_v44  ;;  %v5974_v44 = vadd.f32 %v6450_v15, %v2374_v40 }
 0x950   :  { %v2396_v54 = vpop.xlane.xlu1 %2395 }
 0x951   :  { %v2424_v51 = vsub.f32 %v2351_v62, %v2396_v54 }
 0x953   :  { %v5967_v8 = vpop.eup %4438  ;;  %v2443_v13 = vmul.f32 1.442695, %v2424_v51  ;;  %v6452_v51 = vunpack.c.l.bf16 %v5976_v24 }
 0x954   :  { %2473 = vadd.xlane.f32.xlu1 %v5967_v8  ;;  %2409 = vmax.xlane.f32.xlu0 %v5965_v21 }
 0x955   :  { %4440 = vpow2.f32 %v2443_v13  ;;  %v5985_v4 = vadd.f32 %v6452_v51, %v2377_v12  ;;  %v5998_v51 = vld [vmem:[#allocation17 + $0x38] sm:$0xff]  }
 0x956   :  { %6492 = vst [vmem:[#allocation53_spill] sm:$0xff] %v5998_v51  ;;  %v6457_v5 = vunpack.c.l.bf16 %v5998_v51 }
 0x958   :  { %v2398_v41 = vpop.xlane.xlu2 %2397 }
 0x959   :  { %v2425_v36 = vsub.f32 %v2354_v7, %v2398_v41  ;;  %v2380_v41 = vpop.f32.mrf.mxu0 }
 0x95b   :  { %v5978_v62 = vpop.eup %4440  ;;  %v2445_v54 = vmul.f32 1.442695, %v2425_v36  ;;  %v6454_v36 = vunpack.c.h.bf16 %v5976_v24 }
 0x95c   :  { %2411 = vmax.xlane.f32.xlu1 %v5974_v44  ;;  %2475 = vadd.xlane.f32.xlu2 %v5978_v62 }
 0x95d   :  { %4442 = vpow2.f32 %v2445_v54  ;;  %v5995_v54 = vadd.f32 %v6454_v36, %v2380_v41 }
 0x960   :  { %v2400_v13 = vpop.xlane.xlu0 %2399 }
 0x961   :  { %v2426_v40 = vsub.f32 %v5923_v10, %v2400_v13 }
 0x963   :  { %v5988_v7 = vpop.eup %4442  ;;  %v2447_v15 = vmul.f32 1.442695, %v2426_v40  ;;  %v2383_v40 = vpop.f32.mrf.mxu0 }
 0x964   :  { %2413 = vmax.xlane.f32.xlu1 %v5985_v4  ;;  %2477 = vadd.xlane.f32.xlu2 %v5988_v7  ;;  %v6007_v41 = vadd.f32 %v6457_v5, %v2383_v40 }
 0x965   :  { %4444 = vpow2.f32 %v2447_v15 }
 0x968   :  { %v2402_v20 = vpop.xlane.xlu1 %2401 }
 0x969   :  { %v2427_v12 = vsub.f32 %v5931_v2, %v2402_v20 }
 0x96b   :  { %v6000_v10 = vpop.eup %4444  ;;  %v2449_v13 = vmul.f32 1.442695, %v2427_v12  ;;  %v6459_v12 = vunpack.c.h.bf16 %v5998_v51  ;;  %v2386_v49 = vpop.f32.mrf.mxu0 }
 0x96c   :  { %2479 = vadd.xlane.f32.xlu0 %v6000_v10  ;;  %2415 = vmax.xlane.f32.xlu2 %v5995_v54 }
 0x96d   :  { %4446 = vpow2.f32 %v2449_v13  ;;  %v6017_v13 = vadd.f32 %v6459_v12, %v2386_v49 }
 0x970   :  { %v2404_v15 = vpop.xlane.xlu2 %2403 }
 0x971   :  { %v2428_v20 = vsub.f32 %v5937_v22, %v2404_v15 }
 0x973   :  { %v6010_v2 = vpop.eup %4446  ;;  %v2451_v36 = vmul.f32 1.442695, %v2428_v20 }
 0x974   :  { %2417 = vmax.xlane.f32.xlu2 %v6007_v41  ;;  %2481 = vadd.xlane.f32.xlu0 %v6010_v2 }
 0x975   :  { %4448 = vpow2.f32 %v2451_v36 }
 0x978   :  { %v2406_v33 = vpop.xlane.xlu2 %2405 }
 0x979   :  { %v2429_v40 = vsub.f32 %v5945_v48, %v2406_v33 }
 0x97b   :  { %v6020_v5 = vpop.eup %4448  ;;  %v2453_v22 = vmul.f32 1.442695, %v2429_v40 }
 0x97c   :  { %2483 = vadd.xlane.f32.xlu1 %v6020_v5  ;;  %2419 = vmax.xlane.f32.xlu0 %v6017_v13 }
 0x97d   :  { %4450 = vpow2.f32 %v2453_v22 }
 0x983   :  { %v6024_v15 = vpop.eup %4450 }
 0x984   :  { %2485 = vadd.xlane.f32.xlu1 %v6024_v15 }
 0x9b7   :  { %v2470_v36 = vpop.xlane.xlu0 %2469 }
 0x9b8   :  { %4452 = vrcp.f32 %v2470_v36 }
 0x9be   :  { %v4453_v48 = vpop.eup %4452 }
 0x9bf   :  { %v2408_v20 = vpop.xlane.xlu0 %2407  ;;  %v2472_v46 = vpop.xlane.xlu1 %2471  ;;  %v2517_v12 = vmul.f32 %v4453_v48, %v5948_v50 }
 0x9c0   :  { %v2430_v49 = vsub.f32 %v5954_v53, %v2408_v20  ;;  %4454 = vrcp.f32 %v2472_v46 }
 0x9c2   :  { %v2455_v33 = vmul.f32 1.442695, %v2430_v49 }
 0x9c4   :  { %4456 = vpow2.f32 %v2455_v33 }
 0x9c6   :  { %v4455_v40 = vpop.eup %4454 }
 0x9c7   :  { %v2518_v17 = vmul.f32 %v4455_v40, %v5958_v61  ;;  %v2410_v22 = vpop.xlane.xlu0 %2409  ;;  %v2474_v34 = vpop.xlane.xlu1 %2473 }
 0x9c8   :  { %v2431_v51 = vsub.f32 %v5965_v21, %v2410_v22 }
 0x9c9   :  { %v2533_v24 = vpack.c.bf16 %v2518_v17, %v2517_v12 }
 0x9ca   :  { %v6031_v58 = vpop.eup %4456  ;;  %v2457_v36 = vmul.f32 1.442695, %v2431_v51 }
 0x9cb   :  { %2487 = vadd.xlane.f32.xlu2 %v6031_v58  ;;  %2550 = vmatmul.bf16.vlgmr.msra.gmra.mxu1 %v2533_v24 }
 0x9cc   :  { %4458 = vpow2.f32 %v2457_v36 }
 0x9cd   :  { %4460 = vrcp.f32 %v2474_v34 }
 0x9cf   :  { %v2476_v46 = vpop.xlane.xlu2 %2475  ;;  %v2412_v53 = vpop.xlane.xlu1 %2411 }
 0x9d0   :  { %4462 = vrcp.f32 %v2476_v46  ;;  %v2432_v50 = vsub.f32 %v5974_v44, %v2412_v53 }
 0x9d2   :  { %v6035_v20 = vpop.eup %4458  ;;  %v2459_v61 = vmul.f32 1.442695, %v2432_v50 }
 0x9d3   :  { %2489 = vadd.xlane.f32.xlu0 %v6035_v20  ;;  %v4461_v21 = vpop.eup %4460 }
 0x9d4   :  { %4464 = vpow2.f32 %v2459_v61  ;;  %v2519_v49 = vmul.f32 %v4461_v21, %v5967_v8 }
 0x9d6   :  { %v4463_v17 = vpop.eup %4462 }
 0x9d7   :  { %v2478_v12 = vpop.xlane.xlu2 %2477  ;;  %v2414_v51 = vpop.xlane.xlu1 %2413  ;;  %v2520_v24 = vmul.f32 %v4463_v17, %v5978_v62 }
 0x9d8   :  { %v2433_v34 = vsub.f32 %v5985_v4, %v2414_v51 }
 0x9d9   :  { %v2534_v33 = vpack.c.bf16 %v2520_v24, %v2519_v49 }
 0x9da   :  { %v6041_v48 = vpop.eup %4464  ;;  %v2461_v44 = vmul.f32 1.442695, %v2433_v34 }
 0x9db   :  { %2555 = vmatmul.bf16.gmra.mxu1 %v2534_v33  ;;  %2491 = vadd.xlane.f32.xlu1 %v6041_v48 }
 0x9dc   :  { %4466 = vpow2.f32 %v2461_v44 }
 0x9dd   :  { %4468 = vrcp.f32 %v2478_v12 }
 0x9df   :  { %v2480_v40 = vpop.xlane.xlu0 %2479  ;;  %v2416_v22 = vpop.xlane.xlu2 %2415 }
 0x9e0   :  { %4470 = vrcp.f32 %v2480_v40  ;;  %v2434_v36 = vsub.f32 %v5995_v54, %v2416_v22 }
 0x9e2   :  { %v6045_v46 = vpop.eup %4466  ;;  %v2463_v8 = vmul.f32 1.442695, %v2434_v36 }
 0x9e3   :  { %2493 = vadd.xlane.f32.xlu2 %v6045_v46  ;;  %v4469_v4 = vpop.eup %4468 }
 0x9e4   :  { %4472 = vpow2.f32 %v2463_v8  ;;  %v2521_v61 = vmul.f32 %v4469_v4, %v5988_v7 }
 0x9e6   :  { %v4471_v62 = vpop.eup %4470 }
 0x9e7   :  { %v2418_v53 = vpop.xlane.xlu2 %2417  ;;  %v2482_v50 = vpop.xlane.xlu0 %2481  ;;  %v2522_v21 = vmul.f32 %v4471_v62, %v6000_v10 }
 0x9e8   :  { %v2435_v17 = vsub.f32 %v6007_v41, %v2418_v53 }
 0x9e9   :  { %v2535_v12 = vpack.c.bf16 %v2522_v21, %v2521_v61 }
 0x9ea   :  { %v6051_v51 = vpop.eup %4472  ;;  %v2465_v54 = vmul.f32 1.442695, %v2435_v17 }
 0x9eb   :  { %2495 = vadd.xlane.f32.xlu0 %v6051_v51  ;;  %2560 = vmatmul.bf16.gmra.mxu1 %v2535_v12 }
 0x9ec   :  { %4474 = vpow2.f32 %v2465_v54 }
 0x9ed   :  { %4476 = vrcp.f32 %v2482_v50 }
 0x9ef   :  { %v2420_v49 = vpop.xlane.xlu0 %2419  ;;  %v2484_v24 = vpop.xlane.xlu1 %2483 }
 0x9f0   :  { %v2436_v34 = vsub.f32 %v6017_v13, %v2420_v49  ;;  %4478 = vrcp.f32 %v2484_v24 }
 0x9f2   :  { %v6055_v33 = vpop.eup %4474  ;;  %v2467_v7 = vmul.f32 1.442695, %v2436_v34 }
 0x9f3   :  { %2497 = vadd.xlane.f32.xlu1 %v6055_v33  ;;  %v4477_v10 = vpop.eup %4476 }
 0x9f4   :  { %4480 = vpow2.f32 %v2467_v7  ;;  %v2523_v44 = vmul.f32 %v4477_v10, %v6010_v2 }
 0x9f6   :  { %v4479_v41 = vpop.eup %4478 }
 0x9f7   :  { %v2524_v40 = vmul.f32 %v4479_v41, %v6020_v5  ;;  %v2486_v13 = vpop.xlane.xlu1 %2485  ;;  %v4571_v5 = vld [vmem:[%s6412_s18] sm:$0xff] }
 0x9f8   :  { %4482 = vrcp.f32 %v2486_v13  ;;  %v6068_v17 = vperm.slane %v4571_v5, 7 }
 0x9f9   :  { %v2536_v22 = vpack.c.bf16 %v2524_v40, %v2523_v44 }
 0x9fa   :  { %v6060_v36 = vpop.eup %4480 }
 0x9fb   :  { %2499 = vadd.xlane.f32.xlu2 %v6060_v36  ;;  %2565 = vmatmul.bf16.gmra.mxu1 %v2536_v22 }
 0x9fe   :  { %v4483_v4 = vpop.eup %4482 }
 0x9ff   :  { %v2525_v53 = vmul.f32 %v4483_v4, %v6024_v15 }
 0xa3e   :  { %v2488_v8 = vpop.xlane.xlu2 %2487 }
 0xa3f   :  { %4484 = vrcp.f32 %v2488_v8 }
 0xa45   :  { %v4485_v62 = vpop.eup %4484 }
 0xa46   :  { %v2526_v50 = vmul.f32 %v4485_v62, %v6031_v58  ;;  %v2490_v21 = vpop.xlane.xlu0 %2489 }
 0xa47   :  { %4486 = vrcp.f32 %v2490_v21 }
 0xa48   :  { %v2551_v61 = vpop.f32.mrf.mxu1  ;;  %v2537_v2 = vpack.c.bf16 %v2526_v50, %v2525_v53 }
 0xa49   :  { %v2552_v54 = vadd.f32 %v2551_v61, %v6068_v17 }
 0xa4a   :  { %2570 = vmatmul.bf16.gmra.mxu1 %v2537_v2 }
 0xa4b   :  { %v2591_v58 = vmax.f32 %v2552_v54, 0.0 }
 0xa4d   :  { %v4487_v24 = vpop.eup %4486 }
 0xa4e   :  { %v2492_v12 = vpop.xlane.xlu1 %2491  ;;  %v2527_v41 = vmul.f32 %v4487_v24, %v6035_v20 }
 0xa4f   :  { %4488 = vrcp.f32 %v2492_v12 }
 0xa50   :  { %v2553_v49 = vpop.f32.mrf.mxu1 }
 0xa51   :  { %v2554_v15 = vadd.f32 %v2553_v49, %v6068_v17 }
 0xa53   :  { %v2592_v34 = vmax.f32 %v2554_v15, 0.0 }
 0xa55   :  { %v4489_v7 = vpop.eup %4488  ;;  %v2729_v10 = vpack.c.bf16 %v2592_v34, %v2591_v58 }
 0xa56   :  { %v2528_v44 = vmul.f32 %v4489_v7, %v6041_v48  ;;  %v2494_v13 = vpop.xlane.xlu2 %2493 }
 0xa57   :  { %2810 = vmatmul.bf16.vlgmr.msra.gmra.mxu3 %v2729_v10  ;;  %4490 = vrcp.f32 %v2494_v13 }
 0xa58   :  { %v2556_v40 = vpop.f32.mrf.mxu1  ;;  %v2538_v22 = vpack.c.bf16 %v2528_v44, %v2527_v41 }
 0xa59   :  { %v2557_v4 = vadd.f32 %v2556_v40, %v6068_v17 }
 0xa5a   :  { %2575 = vmatmul.bf16.gmra.mxu1 %v2538_v22 }
 0xa5b   :  { %v2593_v61 = vmax.f32 %v2557_v4, 0.0 }
 0xa5d   :  { %v4491_v50 = vpop.eup %4490 }
 0xa5e   :  { %v2496_v8 = vpop.xlane.xlu0 %2495  ;;  %v2529_v48 = vmul.f32 %v4491_v50, %v6045_v46 }
 0xa5f   :  { %4492 = vrcp.f32 %v2496_v8 }
 0xa60   :  { %v2558_v62 = vpop.f32.mrf.mxu1 }
 0xa61   :  { %v2559_v53 = vadd.f32 %v2558_v62, %v6068_v17 }
 0xa63   :  { %v2594_v2 = vmax.f32 %v2559_v53, 0.0 }
 0xa65   :  { %v4493_v21 = vpop.eup %4492  ;;  %v2730_v20 = vpack.c.bf16 %v2594_v2, %v2593_v61  ;;  %v4572_v2 = vld [vmem:[#allocation13] sm:$0xff] }
 0xa66   :  { %v2530_v5 = vmul.f32 %v4493_v21, %v6051_v51  ;;  %v2498_v49 = vpop.xlane.xlu1 %2497  ;;  %v4573_v21 = vld [vmem:[#allocation13 + $0x8] sm:$0xff] }
 0xa67   :  { %2815 = vmatmul.bf16.gmra.mxu3 %v2730_v20  ;;  %4494 = vrcp.f32 %v2498_v49 }
 0xa68   :  { %v2561_v12 = vpop.f32.mrf.mxu1  ;;  %v2539_v54 = vpack.c.bf16 %v2530_v5, %v2529_v48  ;;  %v4576_v48 = vld [vmem:[#allocation13 + $0x20] sm:$0xff] }
 0xa69   :  { %v2562_v24 = vadd.f32 %v2561_v12, %v6068_v17 }
 0xa6a   :  { %2580 = vmatmul.bf16.gmra.mxu1 %v2539_v54 }
 0xa6b   :  { %v2595_v10 = vmax.f32 %v2562_v24, 0.0 }
 0xa6d   :  { %v4495_v7 = vpop.eup %4494 }
 0xa6e   :  { %v2500_v15 = vpop.xlane.xlu2 %2499  ;;  %v2531_v51 = vmul.f32 %v4495_v7, %v6055_v33  ;;  %v4574_v33 = vld [vmem:[#allocation13 + $0x10] sm:$0xff] }
 0xa6f   :  { %4496 = vrcp.f32 %v2500_v15 }
 0xa70   :  { %v2563_v58 = vpop.f32.mrf.mxu1 }
 0xa71   :  { %v2564_v34 = vadd.f32 %v2563_v58, %v6068_v17 }
 0xa73   :  { %v2596_v41 = vmax.f32 %v2564_v34, 0.0  ;;  %v4577_v34 = vld [vmem:[#allocation13 + $0x28] sm:$0xff] }
 0xa75   :  { %v4497_v44 = vpop.eup %4496  ;;  %v2731_v46 = vpack.c.bf16 %v2596_v41, %v2595_v10 }
 0xa76   :  { %v2532_v40 = vmul.f32 %v4497_v44, %v6060_v36  ;;  %v4575_v36 = vld [vmem:[#allocation13 + $0x18] sm:$0xff] }
 0xa77   :  { %2820 = vmatmul.bf16.gmra.mxu3 %v2731_v46 }
 0xa78   :  { %v2566_v22 = vpop.f32.mrf.mxu1  ;;  %v2540_v13 = vpack.c.bf16 %v2532_v40, %v2531_v51 }
 0xa79   :  { %v2567_v8 = vadd.f32 %v2566_v22, %v6068_v17  ;;  %v4578_v22 = vld [vmem:[#allocation13 + $0x30] sm:$0xff] }
 0xa7a   :  { %2585 = vmatmul.bf16.gmra.mxu1 %v2540_v13 }
 0xa7b   :  { %v2597_v53 = vmax.f32 %v2567_v8, 0.0 }
 0xa80   :  { %v2568_v4 = vpop.f32.mrf.mxu1 }
 0xa81   :  { %v2569_v62 = vadd.f32 %v2568_v4, %v6068_v17 }
 0xa83   :  { %v2598_v50 = vmax.f32 %v2569_v62, 0.0 }
 0xa85   :  { %v2732_v61 = vpack.c.bf16 %v2598_v50, %v2597_v53 }
 0xa87   :  { %2825 = vmatmul.bf16.gmra.mxu3 %v2732_v61 }
 0xa8a   :  { %2924 = vmatmul.bf16.vlgmr.msrb.gmra.mxu1 %v4572_v2  ;;  %v4579_v2 = vld [vmem:[#allocation13 + $0x38] sm:$0xff] }
 0xa9a   :  { %2929 = vmatmul.bf16.gmra.mxu1 %v4573_v21 }
 0xaaa   :  { %2934 = vmatmul.bf16.gmra.mxu1 %v4574_v33 }
 0xaba   :  { %2939 = vmatmul.bf16.gmra.mxu1 %v4575_v36 }
 0xac7   :  { %v2571_v20 = vpop.f32.mrf.mxu1 }
 0xac8   :  { %v2572_v5 = vadd.f32 %v2571_v20, %v6068_v17 }
 0xaca   :  { %2944 = vmatmul.bf16.gmra.mxu1 %v4576_v48  ;;  %v2599_v49 = vmax.f32 %v2572_v5, 0.0 }
 0xacf   :  { %v2573_v12 = vpop.f32.mrf.mxu1 }
 0xad0   :  { %v2574_v54 = vadd.f32 %v2573_v12, %v6068_v17 }
 0xad2   :  { %v2600_v15 = vmax.f32 %v2574_v54, 0.0 }
 0xad4   :  { %v2733_v24 = vpack.c.bf16 %v2600_v15, %v2599_v49 }
 0xad6   :  { %2830 = vmatmul.bf16.gmra.mxu3 %v2733_v24 }
 0xad7   :  { %v2576_v58 = vpop.f32.mrf.mxu1 }
 0xad8   :  { %v2577_v7 = vadd.f32 %v2576_v58, %v6068_v17 }
 0xada   :  { %2949 = vmatmul.bf16.gmra.mxu1 %v4577_v34  ;;  %v2601_v44 = vmax.f32 %v2577_v7, 0.0  ;;  %v2811_v12 = vpop.f32.mrf.mxu3 }
 0xadf   :  { %v2578_v10 = vpop.f32.mrf.mxu1 }
 0xae0   :  { %v2579_v41 = vadd.f32 %v2578_v10, %v6068_v17 }
 0xae2   :  { %v2602_v46 = vmax.f32 %v2579_v41, 0.0  ;;  %v2813_v54 = vpop.f32.mrf.mxu3 }
 0xae4   :  { %v2734_v51 = vpack.c.bf16 %v2602_v46, %v2601_v44 }
 0xae6   :  { %2835 = vmatmul.bf16.gmra.mxu3 %v2734_v51 }
 0xae7   :  { %v2581_v40 = vpop.f32.mrf.mxu1 }
 0xae8   :  { %v2582_v13 = vadd.f32 %v2581_v40, %v6068_v17 }
 0xaea   :  { %2954 = vmatmul.bf16.gmra.mxu1 %v4578_v22  ;;  %v2603_v62 = vmax.f32 %v2582_v13, 0.0  ;;  %v2816_v49 = vpop.f32.mrf.mxu3 }
 0xaef   :  { %v2583_v8 = vpop.f32.mrf.mxu1 }
 0xaf0   :  { %v2584_v4 = vadd.f32 %v2583_v8, %v6068_v17 }
 0xaf2   :  { %v2604_v53 = vmax.f32 %v2584_v4, 0.0  ;;  %v2818_v15 = vpop.f32.mrf.mxu3 }
 0xaf4   :  { %v2735_v50 = vpack.c.bf16 %v2604_v53, %v2603_v62 }
 0xaf6   :  { %2840 = vmatmul.bf16.gmra.mxu3 %v2735_v50 }
 0xaf7   :  { %v2586_v61 = vpop.f32.mrf.mxu1 }
 0xaf8   :  { %v2587_v21 = vadd.f32 %v2586_v61, %v6068_v17 }
 0xafa   :  { %2959 = vmatmul.bf16.gmra.mxu1 %v4579_v2  ;;  %v2605_v20 = vmax.f32 %v2587_v21, 0.0  ;;  %v2821_v24 = vpop.f32.mrf.mxu3 }
 0xaff   :  { %v2588_v33 = vpop.f32.mrf.mxu1 }
 0xb00   :  { %v2589_v36 = vadd.f32 %v2588_v33, %v6068_v17  ;;  %v2753_v17 = vperm.slane %v5738_v28, 1 }
 0xb02   :  { %v2606_v48 = vmax.f32 %v2589_v36, 0.0  ;;  %v2823_v58 = vpop.f32.mrf.mxu3 }
 0xb03   :  { %v2824_v28 = vadd.f32 %v2823_v58, %v2753_v17  ;;  %v4583_v58 = vld [vmem:[#allocation14 + $0x18] sm:$0xff] }
 0xb04   :  { %v2736_v5 = vpack.c.bf16 %v2606_v48, %v2605_v20 }
 0xb06   :  { %2845 = vmatmul.bf16.gmra.mxu3 %v2736_v5 }
 0xb0a   :  { %v2826_v34 = vpop.f32.mrf.mxu3 }
 0xb0b   :  { %v2827_v35 = vadd.f32 %v2826_v34, %v2753_v17  ;;  %v4582_v34 = vld [vmem:[#allocation14 + $0x10] sm:$0xff] }
 0xb12   :  { %v2828_v7 = vpop.f32.mrf.mxu3 }
 0xb13   :  { %v2829_v48 = vadd.f32 %v2828_v7, %v2753_v17  ;;  %v4581_v7 = vld [vmem:[#allocation14 + $0x8] sm:$0xff] }
 0xb15   :  { %v2862_v9 = vpack.c.bf16 %v2829_v48, %v2827_v35  ;;  %v4584_v35 = vld [vmem:[#allocation14 + $0x20] sm:$0xff] }
 0xb59   :  { %v2831_v10 = vpop.f32.mrf.mxu3 }
 0xb5a   :  { %v2832_v20 = vadd.f32 %v2831_v10, %v2753_v17  ;;  %v4580_v10 = vld [vmem:[#allocation14] sm:$0xff] }
 0xb61   :  { %v2833_v41 = vpop.f32.mrf.mxu3 }
 0xb62   :  { %v2834_v33 = vadd.f32 %v2833_v41, %v2753_v17 }
 0xb64   :  { %v2863_v5 = vpack.c.bf16 %v2834_v33, %v2832_v20 }
 0xb69   :  { %v2836_v44 = vpop.f32.mrf.mxu3 }
 0xb6a   :  { %v2837_v21 = vadd.f32 %v2836_v44, %v2753_v17  ;;  %v2812_v44 = vadd.f32 %v2811_v12, %v2753_v17  ;;  %v4587_v12 = vld [vmem:[#allocation14 + $0x38] sm:$0xff] }
 0xb71   :  { %v2838_v46 = vpop.f32.mrf.mxu3 }
 0xb72   :  { %v2839_v61 = vadd.f32 %v2838_v46, %v2753_v17  ;;  %v2814_v46 = vadd.f32 %v2813_v54, %v2753_v17 }
 0xb74   :  { %v2864_v36 = vpack.c.bf16 %v2839_v61, %v2837_v21  ;;  %v2859_v41 = vpack.c.bf16 %v2814_v46, %v2812_v44 }
 0xb79   :  { %v2841_v51 = vpop.f32.mrf.mxu3 }
 0xb7a   :  { %v2842_v50 = vadd.f32 %v2841_v51, %v2753_v17  ;;  %v2817_v51 = vadd.f32 %v2816_v49, %v2753_v17  ;;  %v2925_v49 = vpop.f32.mrf.mxu1 }
 0xb81   :  { %v2843_v40 = vpop.f32.mrf.mxu3 }
 0xb82   :  { %v2844_v62 = vadd.f32 %v2843_v40, %v2753_v17  ;;  %v2819_v40 = vadd.f32 %v2818_v15, %v2753_v17  ;;  %v4586_v15 = vld [vmem:[#allocation14 + $0x30] sm:$0xff]  ;;  %v6093_v54 = vpop.f32.mrf.mxu1 }
 0xb84   :  { %v2865_v2 = vpack.c.bf16 %v2844_v62, %v2842_v50 }
 0xb89   :  { %v2846_v22 = vpop.f32.mrf.mxu3 }
 0xb8a   :  { %v2847_v8 = vadd.f32 %v2846_v22, %v2753_v17  ;;  %v2822_v22 = vadd.f32 %v2821_v24, %v2753_v17  ;;  %v2930_v24 = vpop.f32.mrf.mxu1 }
 0xb91   :  { %v2848_v13 = vpop.f32.mrf.mxu3 }
 0xb92   :  { %v2849_v4 = vadd.f32 %v2848_v13, %v2753_v17  ;;  %v2861_v13 = vpack.c.bf16 %v2824_v28, %v2822_v22 }
 0xb94   :  { %v2866_v53 = vpack.c.bf16 %v2849_v4, %v2847_v8  ;;  %v2860_v8 = vpack.c.bf16 %v2819_v40, %v2817_v51  ;;  %v6095_v4 = vpop.f32.mrf.mxu1 }
 0xb96   :  { %2867 = vmatpush.bf16.msra.mxu0 %v2866_v53 }
 0xb9a   :  { %2868 = vmatpush.bf16.msra.mxu0 %v2865_v2 }
 0xb9c   :  { %v2935_v50 = vpop.f32.mrf.mxu1 }
 0xb9e   :  { %2869 = vmatpush.bf16.msra.mxu0 %v2864_v36 }
 0xba2   :  { %2870 = vmatpush.bf16.msra.mxu0 %v2863_v5 }
 0xba4   :  { %v2937_v21 = vpop.f32.mrf.mxu1 }
 0xba6   :  { %2871 = vmatpush.bf16.msra.mxu0 %v2862_v9  ;;  %v4585_v9 = vld [vmem:[#allocation14 + $0x28] sm:$0xff] }
 0xbaa   :  { %2872 = vmatpush.bf16.msra.mxu0 %v2861_v13 }
 0xbac   :  { %v2940_v36 = vpop.f32.mrf.mxu1 }
 0xbae   :  { %2873 = vmatpush.bf16.msra.mxu0 %v2860_v8 }
 0xbb2   :  { %2874 = vmatpush.bf16.msra.mxu0 %v2859_v41 }
 0xbb4   :  { %v2942_v28 = vpop.f32.mrf.mxu1 }
 0xbb5   :  { %2875 = vmatmul.bf16.vlgmr.msra.gmra.mxu0 %v4580_v10 }
 0xbbc   :  { %v2945_v13 = vpop.f32.mrf.mxu1 }
 0xbc4   :  { %v2947_v46 = vpop.f32.mrf.mxu1 }
 0xbc5   :  { %2880 = vmatmul.bf16.gmra.mxu0 %v4581_v7 }
 0xbcc   :  { %v2950_v44 = vpop.f32.mrf.mxu1 }
 0xbd4   :  { %v2952_v7 = vpop.f32.mrf.mxu1 }
 0xbd5   :  { %2885 = vmatmul.bf16.gmra.mxu0 %v4582_v34 }
 0xbe5   :  { %2890 = vmatmul.bf16.gmra.mxu0 %v4583_v58 }
 0xbf5   :  { %2895 = vmatmul.bf16.gmra.mxu0 %v4584_v35 }
 0xc05   :  { %2900 = vmatmul.bf16.gmra.mxu0 %v4585_v9 }
 0xc15   :  { %2905 = vmatmul.bf16.gmra.mxu0 %v4586_v15 }
 0xc25   :  { %2910 = vmatmul.bf16.gmra.mxu0 %v4587_v12 }
 0xc32   :  { %v2876_v17 = vpop.f32.mrf.mxu0 }
 0xc33   :  { %v6097_v62 = vadd.f32 %v2925_v49, %v2876_v17  ;;  %v6111_v49 = vld [vmem:[%s6412_s18 + $0x8] sm:$0xff]  ;;  %s5089_s18 = smov [#allocation31]  }
 0xc34   :  { %6493 = vst [vmem:[#allocation54_spill] sm:$0xff] %v6111_v49  ;;  %v6114_v15 = vperm.slane %v6111_v49, 2  ;;  %s3503_s10 = sshll.u32 %s5089_s18, 4  ;;  %s3504_s10 = int_to_ptr.vmem [resolvable:$true] %s3503_s10 }
 0xc3a   :  { %v6099_v53 = vpop.f32.mrf.mxu0 }
 0xc42   :  { %v2881_v61 = vpop.f32.mrf.mxu0 }
 0xc43   :  { %v6101_v2 = vadd.f32 %v2930_v24, %v2881_v61 }
 0xc4a   :  { %v6103_v33 = vpop.f32.mrf.mxu0 }
 0xc52   :  { %v2886_v20 = vpop.f32.mrf.mxu0 }
 0xc53   :  { %v2936_v48 = vadd.f32 %v2935_v50, %v2886_v20  ;;  %v2955_v50 = vpop.f32.mrf.mxu1 }
 0xc5a   :  { %v2888_v5 = vpop.f32.mrf.mxu0 }
 0xc62   :  { %v2891_v22 = vpop.f32.mrf.mxu0 }
 0xc63   :  { %v6105_v40 = vadd.f32 %v2940_v36, %v2891_v22 }
 0xc6a   :  { %v2893_v51 = vpop.f32.mrf.mxu0 }
 0xc6b   :  { %v2943_v49 = vadd.f32 %v2942_v28, %v2893_v51 }
 0xc72   :  { %v2896_v8 = vpop.f32.mrf.mxu0 }
 0xc7a   :  { %v2898_v41 = vpop.f32.mrf.mxu0 }
 0xc82   :  { %v2901_v10 = vpop.f32.mrf.mxu0 }
 0xc83   :  { %v2951_v34 = vadd.f32 %v2950_v44, %v2901_v10 }
 0xc85   :  { %v2975_v58 = vadd.f32 %v2951_v34, %v5574_v59  ;;  %v2957_v34 = vpop.f32.mrf.mxu1 }
 0xc87   :  { %v2991_v35 = vmul.f32 0.2, %v2975_v58 }
 0xc89   :  { %v3007_v9 = vmax.f32 %v2975_v58, %v2991_v35 }
 0xc8a   :  { %v2903_v12 = vpop.f32.mrf.mxu0 }
 0xc8b   :  { %v2953_v24 = vadd.f32 %v2952_v7, %v2903_v12  ;;  %v3024_v17 = vmul.f32 %v6114_v15, %v3007_v9 }
 0xc8d   :  { %v2976_v61 = vadd.f32 %v2953_v24, %v5578_v63  ;;  %3050 = vadd.xlane.f32.xlu2 %v3024_v17  ;;  %v2972_v24 = vadd.f32 %v2943_v49, %v5564_v31  ;;  %v2938_v31 = vadd.f32 %v2937_v21, %v2888_v5  ;;  %v6494_v21 = vld [vmem:[#allocation48_spill] sm:$0xff] }
 0xc8f   :  { %v2992_v36 = vmul.f32 0.2, %v2976_v61 }
 0xc91   :  { %v3008_v59 = vmax.f32 %v2976_v61, %v2992_v36 }
 0xc92   :  { %v2906_v20 = vpop.f32.mrf.mxu0 }
 0xc93   :  { %v2956_v22 = vadd.f32 %v2955_v50, %v2906_v20  ;;  %v3025_v44 = vmul.f32 %v6114_v15, %v3008_v59  ;;  %v2960_v50 = vpop.f32.mrf.mxu1  ;;  %v2988_v59 = vmul.f32 0.2, %v2972_v24 }
 0xc95   :  { %v2977_v10 = vadd.f32 %v2956_v22, %v5582_v14  ;;  %3052 = vadd.xlane.f32.xlu1 %v3025_v44  ;;  %v2946_v14 = vadd.f32 %v2945_v13, %v2896_v8  ;;  %v3004_v51 = vmax.f32 %v2972_v24, %v2988_v59  ;;  %v2948_v13 = vadd.f32 %v2947_v46, %v2898_v41  ;;  %v6495_v24 = vld [vmem:[#allocation44_spill] sm:$0xff] }
 0xc97   :  { %v2993_v58 = vmul.f32 0.2, %v2977_v10  ;;  %v2973_v44 = vadd.f32 %v2946_v14, %v5568_v27  ;;  %v6497_v14 = vld [vmem:[#allocation47_spill] sm:$0xff] }
 0xc99   :  { %v3009_v35 = vmax.f32 %v2977_v10, %v2993_v58 }
 0xc9a   :  { %v2908_v7 = vpop.f32.mrf.mxu0 }
 0xc9b   :  { %v2958_v12 = vadd.f32 %v2957_v34, %v2908_v7  ;;  %v3026_v9 = vmul.f32 %v6114_v15, %v3009_v35  ;;  %v2962_v49 = vpop.f32.mrf.mxu1  ;;  %v3021_v35 = vmul.f32 %v6114_v15, %v3004_v51  ;;  %v2989_v7 = vmul.f32 0.2, %v2973_v44 }
 0xc9d   :  { %v2978_v63 = vadd.f32 %v2958_v12, %v5586_v23  ;;  %3054 = vadd.xlane.f32.xlu0 %v3026_v9  ;;  %v2969_v23 = vadd.f32 %v2936_v48, %v5554_v38  ;;  %v2970_v38 = vadd.f32 %v2938_v31, %v5556_v55  ;;  %v2974_v48 = vadd.f32 %v2948_v13, %v6494_v21  ;;  %v6496_v55 = vld [vmem:[#allocation45_spill] sm:$0xff] }
 0xc9e   :  { %v2967_v59 = vadd.f32 %v6101_v2, %v6496_v55  ;;  %v6498_v2 = vld [vmem:[#allocation46_spill] sm:$0xff] }
 0xc9f   :  { %v2994_v17 = vmul.f32 0.2, %v2978_v63  ;;  %v2985_v9 = vmul.f32 0.2, %v2969_v23 }
 0xca1   :  { %v3010_v61 = vmax.f32 %v2978_v63, %v2994_v17  ;;  %v3005_v63 = vmax.f32 %v2973_v44, %v2989_v7  ;;  %v3001_v46 = vmax.f32 %v2969_v23, %v2985_v9  ;;  %v2983_v44 = vmul.f32 0.2, %v2967_v59 }
 0xca2   :  { %v2911_v36 = vpop.f32.mrf.mxu0 }
 0xca3   :  { %v2961_v20 = vadd.f32 %v2960_v50, %v2911_v36  ;;  %v3027_v22 = vmul.f32 %v6114_v15, %v3010_v61  ;;  %v2990_v50 = vmul.f32 0.2, %v2974_v48 }
 0xca5   :  { %v2979_v28 = vadd.f32 %v2961_v20, %v5590_v43  ;;  %3056 = vadd.xlane.f32.xlu2 %v3027_v22  ;;  %v2928_v43 = vadd.f32 %v6093_v54, %v6099_v53  ;;  %v3022_v54 = vmul.f32 %v6114_v15, %v3005_v63  ;;  %v2986_v53 = vmul.f32 0.2, %v2970_v38 }
 0xca6   :  { %v2971_v20 = vadd.f32 %v6105_v40, %v6497_v14  ;;  %v3006_v22 = vmax.f32 %v2974_v48, %v2990_v50 }
 0xca7   :  { %v2995_v10 = vmul.f32 0.2, %v2979_v28  ;;  %v2966_v17 = vadd.f32 %v2928_v43, %v6495_v24 }
 0xca8   :  { %v2987_v23 = vmul.f32 0.2, %v2971_v20 }
 0xca9   :  { %v3011_v34 = vmax.f32 %v2979_v28, %v2995_v10  ;;  %v2982_v36 = vmul.f32 0.2, %v2966_v17  ;;  %v3002_v28 = vmax.f32 %v2970_v38, %v2986_v53  ;;  %v2933_v10 = vadd.f32 %v6095_v4, %v6103_v33  ;;  %v6499_v4 = vld [vmem:[#allocation43_spill] sm:$0xff] }
 0xcaa   :  { %v2913_v58 = vpop.f32.mrf.mxu0  ;;  %v3003_v40 = vmax.f32 %v2971_v20, %v2987_v23  ;;  %v2965_v33 = vadd.f32 %v6097_v62, %v6499_v4  ;;  %v6501_v62 = vunpack.c.l.bf16 %v5733_v18  ;;  %v6505_v20 = vunpack.c.l.bf16 %v5755_v52 }
 0xcab   :  { %v2963_v8 = vadd.f32 %v2962_v49, %v2913_v58  ;;  %v3028_v12 = vmul.f32 %v6114_v15, %v3011_v34  ;;  %v2998_v51 = vmax.f32 %v2966_v17, %v2982_v36  ;;  %v3023_v34 = vmul.f32 %v6114_v15, %v3006_v22 }
 0xcac   :  { %v3019_v31 = vmul.f32 %v6114_v15, %v3002_v28  ;;  %v2968_v58 = vadd.f32 %v2933_v10, %v6498_v2  ;;  %v3020_v7 = vmul.f32 %v6114_v15, %v3003_v40  ;;  %v2981_v43 = vmul.f32 0.2, %v2965_v33 }
 0xcad   :  { %v2980_v27 = vadd.f32 %v2963_v8, %v5594_v56  ;;  %3058 = vadd.xlane.f32.xlu1 %v3028_v12  ;;  %3044 = vadd.xlane.f32.xlu2 %v3021_v35  ;;  %v3018_v56 = vmul.f32 %v6114_v15, %v3001_v46  ;;  %v3015_v49 = vmul.f32 %v6114_v15, %v2998_v51  ;;  %v6500_v46 = vunpack.c.h.bf16 %v5733_v18 }
 0xcae   :  { %v2999_v35 = vmax.f32 %v2967_v59, %v2983_v44  ;;  %v2984_v8 = vmul.f32 0.2, %v2968_v58  ;;  %v6504_v59 = vunpack.c.h.bf16 %v5755_v52  ;;  %v6506_v22 = vunpack.c.l.bf16 %v5762_v47 }
 0xcaf   :  { %v2996_v5 = vmul.f32 0.2, %v2980_v27  ;;  %v6507_v44 = vunpack.c.h.bf16 %v5772_v1  ;;  %v6510_v2 = vunpack.c.h.bf16 %v5791_v30  ;;  %v6513_v4 = vunpack.c.h.bf16 %v5810_v45 }
 0xcb0   :  { %v3016_v13 = vmul.f32 %v6114_v15, %v2999_v35  ;;  %v3000_v12 = vmax.f32 %v2968_v58, %v2984_v8  ;;  %v6511_v58 = vunpack.c.l.bf16 %v5791_v30  ;;  %v6515_v30 = vunpack.c.l.bf16 %v5822_v25 }
 0xcb1   :  { %v3012_v41 = vmax.f32 %v2980_v27, %v2996_v5  ;;  %v2997_v27 = vmax.f32 %v2965_v33, %v2981_v43  ;;  %v6514_v33 = vunpack.c.l.bf16 %v5810_v45  ;;  %v6520_v45 = vunpack.c.l.bf16 %v5851_v32 }
 0xcb2   :  { %v3017_v9 = vmul.f32 %v6114_v15, %v3000_v12  ;;  %v6522_v25 = vunpack.c.l.bf16 %v5859_v0 }
 0xcb3   :  { %v3029_v61 = vmul.f32 %v6114_v15, %v3012_v41  ;;  %v3014_v38 = vmul.f32 %v6114_v15, %v2997_v27  ;;  %v6516_v27 = vunpack.c.l.bf16 %v5831_v57 }
 0xcb5   :  { %3060 = vadd.xlane.f32.xlu0 %v3029_v61  ;;  %3046 = vadd.xlane.f32.xlu1 %v3022_v54  ;;  %v6502_v54 = vunpack.c.h.bf16 %v5745_v16 }
 0xcb6   :  { %3038 = vadd.xlane.f32.xlu2 %v3018_v56  ;;  %v6503_v56 = vunpack.c.l.bf16 %v5745_v16 }
 0xcbd   :  { %3048 = vadd.xlane.f32.xlu0 %v3023_v34  ;;  %3040 = vadd.xlane.f32.xlu1 %v3019_v31  ;;  %v6508_v34 = vunpack.c.l.bf16 %v5772_v1 }
 0xcbe   :  { %3032 = vadd.xlane.f32.xlu2 %v3015_v49  ;;  %v6509_v49 = vunpack.c.l.bf16 %v5779_v19 }
 0xcc5   :  { %3042 = vadd.xlane.f32.xlu0 %v3020_v7  ;;  %3034 = vadd.xlane.f32.xlu1 %v3016_v13  ;;  %v6512_v13 = vunpack.c.l.bf16 %v5798_v60  ;;  %v6517_v60 = vunpack.c.h.bf16 %v5831_v57  ;;  %v6524_v57 = vunpack.c.l.bf16 %v5867_v39 }
 0xccd   :  { %3036 = vadd.xlane.f32.xlu0 %v3017_v9 }
 0xcd5   :  { %3030 = vadd.xlane.f32.xlu0 %v3014_v38  ;;  %v6518_v38 = vunpack.c.l.bf16 %v5843_v42 }
 0xd00   :  { %v3051_v48 = vpop.xlane.xlu2 %3050 }
 0xd01   :  { %v3072_v18 = vmul.f32 %v3051_v48, %v6505_v20  ;;  %v6521_v48 = vunpack.c.h.bf16 %v5851_v32  ;;  %v6528_v32 = vunpack.c.l.bf16 %v5886_v37 }
 0xd08   :  { %v3053_v21 = vpop.xlane.xlu1 %3052 }
 0xd09   :  { %v3073_v14 = vmul.f32 %v3053_v21, %v6504_v59  ;;  %v6519_v21 = vunpack.c.h.bf16 %v5843_v42  ;;  %v6526_v42 = vunpack.c.l.bf16 %v5875_v26 }
 0xd10   :  { %v3055_v5 = vpop.xlane.xlu0 %3054 }
 0xd11   :  { %v3074_v36 = vmul.f32 %v3055_v5, %v6503_v56  ;;  %v6523_v5 = vunpack.c.h.bf16 %v5859_v0  ;;  %v6530_v0 = vunpack.c.l.bf16 %v5902_v3  ;;  %v6535_v56 = vunpack.c.h.bf16 %v5897_v11 }
 0xd18   :  { %v3057_v24 = vpop.xlane.xlu2 %3056 }
 0xd19   :  { %v3075_v53 = vmul.f32 %v3057_v24, %v6502_v54  ;;  %v6527_v24 = vunpack.c.h.bf16 %v5875_v26  ;;  %v6533_v26 = vunpack.c.h.bf16 %v5881_v6 }
 0xd20   :  { %v3059_v63 = vpop.xlane.xlu1 %3058  ;;  %v3045_v15 = vpop.xlane.xlu2 %3044 }
 0xd21   :  { %v3076_v50 = vmul.f32 %v3059_v63, %v6501_v62  ;;  %v3069_v31 = vmul.f32 %v3045_v15, %v6508_v34  ;;  %v6525_v63 = vunpack.c.h.bf16 %v5867_v39 }
 0xd28   :  { %v3061_v17 = vpop.xlane.xlu0 %3060  ;;  %v3047_v61 = vpop.xlane.xlu1 %3046 }
 0xd29   :  { %v3077_v41 = vmul.f32 %v3061_v17, %v6500_v46  ;;  %v3070_v10 = vmul.f32 %v3047_v61, %v6507_v44  ;;  %v3039_v16 = vpop.xlane.xlu2 %3038  ;;  %v6529_v17 = vunpack.c.h.bf16 %v5886_v37  ;;  %v6531_v46 = vunpack.c.h.bf16 %v5902_v3 }
 0xd2a   :  { %v3066_v40 = vmul.f32 %v3039_v16, %v6511_v58  ;;  %v6534_v37 = vunpack.c.l.bf16 %v5897_v11 }
 0xd2b   :  { %3078 = vmatpush.msrb.mxu2 %v3077_v41  ;;  %v6532_v41 = vunpack.c.l.bf16 %v5881_v6  ;;  %v6537_v6 = vunpack.c.h.bf16 %v5913_v29 }
 0xd2d   :  { %3079 = vmatpush.msrb.mxu2 %v3076_v50 }
 0xd2f   :  { %3080 = vmatpush.msrb.mxu2 %v3075_v53 }
 0xd30   :  { %v3049_v55 = vpop.xlane.xlu0 %3048  ;;  %v3041_v51 = vpop.xlane.xlu1 %3040 }
 0xd31   :  { %3081 = vmatpush.msrb.mxu2 %v3074_v36  ;;  %v3071_v28 = vmul.f32 %v3049_v55, %v6506_v22  ;;  %v3067_v47 = vmul.f32 %v3041_v51, %v6510_v2  ;;  %v3033_v1 = vpop.xlane.xlu2 %3032  ;;  %v6536_v55 = vunpack.c.l.bf16 %v5913_v29  ;;  %v6538_v22 = vld [vmem:[#allocation49_spill] sm:$0xff] }
 0xd32   :  { %v3063_v12 = vmul.f32 %v3033_v1, %v6514_v33  ;;  %v6540_v11 = vunpack.c.h.bf16 %v6538_v22 }
 0xd33   :  { %3082 = vmatpush.msrb.mxu2 %v3073_v14 }
 0xd35   :  { %3083 = vmatpush.msrb.mxu2 %v3072_v18 }
 0xd37   :  { %3084 = vmatpush.msrb.mxu2 %v3071_v28  ;;  %v6539_v28 = vunpack.c.l.bf16 %v6538_v22 }
 0xd38   :  { %v3043_v23 = vpop.xlane.xlu0 %3042  ;;  %v3035_v35 = vpop.xlane.xlu1 %3034 }
 0xd39   :  { %3085 = vmatpush.msrb.mxu2 %v3070_v10  ;;  %v3068_v52 = vmul.f32 %v3043_v23, %v6509_v49  ;;  %v3064_v19 = vmul.f32 %v3035_v35, %v6513_v4  ;;  %v6541_v23 = vld [vmem:[#allocation50_spill] sm:$0xff] }
 0xd3a   :  { %v6542_v34 = vunpack.c.l.bf16 %v6541_v23 }
 0xd3b   :  { %3086 = vmatpush.msrb.mxu2 %v3069_v31 }
 0xd3d   :  { %3087 = vmatpush.msrb.mxu2 %v3068_v52 }
 0xd3f   :  { %3088 = vmatpush.msrb.mxu2 %v3067_v47 }
 0xd40   :  { %v3037_v7 = vpop.xlane.xlu0 %3036 }
 0xd41   :  { %v3065_v8 = vmul.f32 %v3037_v7, %v6512_v13  ;;  %3089 = vmatpush.msrb.mxu2 %v3066_v40 }
 0xd43   :  { %3090 = vmatpush.msrb.mxu2 %v3065_v8  ;;  %v6543_v8 = vunpack.c.h.bf16 %v6541_v23 }
 0xd45   :  { %3091 = vmatpush.msrb.mxu2 %v3064_v19 }
 0xd47   :  { %3092 = vmatpush.msrb.mxu2 %v3063_v12 }
 0xd48   :  { %v3031_v43 = vpop.xlane.xlu0 %3030 }
 0xd49   :  { %v3062_v9 = vmul.f32 %v3031_v43, %v6515_v30  ;;  %v6544_v30 = vld [vmem:[#allocation51_spill] sm:$0xff] }
 0xd4b   :  { %3093 = vmatpush.msrb.mxu2 %v3062_v9  ;;  %v6545_v9 = vunpack.c.l.bf16 %v6544_v30 }
 0xd4c   :  { %3094 = vmatmul.f32.vlgmr.msrb.gmra.mxu2 %v6516_v27 }
 0xd54   :  { %3097 = vmatmul.f32.gmra.mxu2 %v6517_v60 }
 0xd5c   :  { %3100 = vmatmul.f32.gmra.mxu2 %v6518_v38 }
 0xd64   :  { %3103 = vmatmul.f32.gmra.mxu2 %v6519_v21 }
 0xd6c   :  { %3106 = vmatmul.f32.gmra.mxu2 %v6520_v45 }
 0xd74   :  { %3109 = vmatmul.f32.gmra.mxu2 %v6521_v48 }
 0xd7c   :  { %3112 = vmatmul.f32.gmra.mxu2 %v6522_v25  ;;  %v6546_v25 = vunpack.c.h.bf16 %v6544_v30 }
 0xd84   :  { %3115 = vmatmul.f32.gmra.mxu2 %v6523_v5 }
 0xd8c   :  { %3118 = vmatmul.f32.gmra.mxu2 %v6524_v57 }
 0xd94   :  { %3121 = vmatmul.f32.gmra.mxu2 %v6525_v63 }
 0xd9c   :  { %3124 = vmatmul.f32.gmra.mxu2 %v6526_v42 }
 0xda4   :  { %3127 = vmatmul.f32.gmra.mxu2 %v6527_v24 }
 0xdac   :  { %3130 = vmatmul.f32.gmra.mxu2 %v6528_v32  ;;  %v6547_v32 = vld [vmem:[#allocation52_spill] sm:$0xff] }
 0xdb4   :  { %3133 = vmatmul.f32.gmra.mxu2 %v6529_v17  ;;  %v6548_v17 = vunpack.c.l.bf16 %v6547_v32 }
 0xdbc   :  { %3136 = vmatmul.f32.gmra.mxu2 %v6530_v0 }
 0xdc4   :  { %3139 = vmatmul.f32.gmra.mxu2 %v6531_v46 }
 0xdcf   :  { %v3095_v39 = vpop.f32.mrf.mxu2 }
 0xdd0   :  { %v3096_v62 = vadd.f32 %v6532_v41, %v3095_v39 }
 0xdd2   :  { %3143 = vmax.xlane.f32.xlu1 %v3096_v62 }
 0xdd7   :  { %v3098_v50 = vpop.f32.mrf.mxu2 }
 0xdd8   :  { %v3099_v61 = vadd.f32 %v6533_v26, %v3098_v50  ;;  %v6549_v26 = vunpack.c.h.bf16 %v6547_v32 }
 0xdda   :  { %3145 = vmax.xlane.f32.xlu2 %v3099_v61 }
 0xddf   :  { %v3101_v54 = vpop.f32.mrf.mxu2 }
 0xde0   :  { %v3102_v53 = vadd.f32 %v6534_v37, %v3101_v54 }
 0xde2   :  { %3147 = vmax.xlane.f32.xlu0 %v3102_v53 }
 0xde7   :  { %v3104_v15 = vpop.f32.mrf.mxu2 }
 0xde8   :  { %v3105_v3 = vadd.f32 %v6535_v56, %v3104_v15 }
 0xdea   :  { %3149 = vmax.xlane.f32.xlu1 %v3105_v3 }
 0xdef   :  { %v3107_v36 = vpop.f32.mrf.mxu2 }
 0xdf0   :  { %v3108_v59 = vadd.f32 %v6536_v55, %v3107_v36 }
 0xdf2   :  { %3151 = vmax.xlane.f32.xlu2 %v3108_v59 }
 0xdf7   :  { %v3110_v14 = vpop.f32.mrf.mxu2 }
 0xdf8   :  { %v3111_v20 = vadd.f32 %v6537_v6, %v3110_v14 }
 0xdfa   :  { %3153 = vmax.xlane.f32.xlu0 %v3111_v20 }
 0xdff   :  { %v3113_v18 = vpop.f32.mrf.mxu2 }
 0xe00   :  { %v3114_v51 = vadd.f32 %v6539_v28, %v3113_v18 }
 0xe02   :  { %3155 = vmax.xlane.f32.xlu1 %v3114_v51 }
 0xe07   :  { %v3116_v44 = vpop.f32.mrf.mxu2 }
 0xe08   :  { %v6234_v10 = vadd.f32 %v6540_v11, %v3116_v44 }
 0xe0a   :  { %3157 = vmax.xlane.f32.xlu2 %v6234_v10 }
 0xe0f   :  { %v3119_v16 = vpop.f32.mrf.mxu2 }
 0xe10   :  { %v6239_v31 = vadd.f32 %v6542_v34, %v3119_v16 }
 0xe12   :  { %3159 = vmax.xlane.f32.xlu2 %v6239_v31 }
 0xe17   :  { %v3122_v52 = vpop.f32.mrf.mxu2 }
 0xe18   :  { %v6247_v1 = vadd.f32 %v6543_v8, %v3122_v52 }
 0xe1f   :  { %v3125_v7 = vpop.f32.mrf.mxu2 }
 0xe20   :  { %v6255_v27 = vadd.f32 %v6545_v9, %v3125_v7 }
 0xe27   :  { %v3128_v12 = vpop.f32.mrf.mxu2 }
 0xe28   :  { %v6263_v5 = vadd.f32 %v6546_v25, %v3128_v12 }
 0xe2f   :  { %v3131_v45 = vpop.f32.mrf.mxu2 }
 0xe30   :  { %v6271_v0 = vadd.f32 %v6548_v17, %v3131_v45 }
 0xe37   :  { %v3134_v39 = vpop.f32.mrf.mxu2 }
 0xe3f   :  { %v3137_v15 = vpop.f32.mrf.mxu2 }
 0xe45   :  { %v3144_v29 = vpop.xlane.xlu1 %3143 }
 0xe46   :  { %v3175_v49 = vsub.f32 %v3096_v62, %v3144_v29 }
 0xe48   :  { %v3191_v2 = vmul.f32 1.442695, %v3175_v49 }
 0xe4a   :  { %4498 = vpow2.f32 %v3191_v2 }
 0xe4d   :  { %v3146_v47 = vpop.xlane.xlu2 %3145 }
 0xe4e   :  { %v3176_v58 = vsub.f32 %v3099_v61, %v3146_v47  ;;  %v6279_v61 = vadd.f32 %v6549_v26, %v3134_v39 }
 0xe50   :  { %v6242_v40 = vpop.eup %4498  ;;  %v3193_v35 = vmul.f32 1.442695, %v3176_v58 }
 0xe51   :  { %3223 = vadd.xlane.f32.xlu0 %v6242_v40 }
 0xe52   :  { %4500 = vpow2.f32 %v3193_v35 }
 0xe55   :  { %v3148_v13 = vpop.xlane.xlu0 %3147 }
 0xe56   :  { %v3177_v4 = vsub.f32 %v3102_v53, %v3148_v13 }
 0xe58   :  { %v6249_v19 = vpop.eup %4500  ;;  %v3195_v33 = vmul.f32 1.442695, %v3177_v4 }
 0xe59   :  { %3225 = vadd.xlane.f32.xlu1 %v6249_v19  ;;  %3161 = vmax.xlane.f32.xlu0 %v6247_v1 }
 0xe5a   :  { %4502 = vpow2.f32 %v3195_v33 }
 0xe5d   :  { %v3150_v43 = vpop.xlane.xlu1 %3149 }
 0xe5e   :  { %v3178_v60 = vsub.f32 %v3105_v3, %v3150_v43  ;;  %v6550_v3 = vld [vmem:[#allocation53_spill] sm:$0xff] }
 0xe5f   :  { %v6551_v36 = vunpack.c.l.bf16 %v6550_v3  ;;  %v6552_v22 = vunpack.c.h.bf16 %v6550_v3 }
 0xe60   :  { %v6257_v38 = vpop.eup %4502  ;;  %v3197_v21 = vmul.f32 1.442695, %v3178_v60 }
 0xe61   :  { %3227 = vadd.xlane.f32.xlu1 %v6257_v38  ;;  %3163 = vmax.xlane.f32.xlu0 %v6255_v27  ;;  %v6287_v55 = vadd.f32 %v6551_v36, %v3137_v15 }
 0xe62   :  { %4504 = vpow2.f32 %v3197_v21 }
 0xe65   :  { %v3152_v48 = vpop.xlane.xlu2 %3151 }
 0xe66   :  { %v3179_v57 = vsub.f32 %v3108_v59, %v3152_v48 }
 0xe68   :  { %v6265_v63 = vpop.eup %4504  ;;  %v3199_v42 = vmul.f32 1.442695, %v3179_v57  ;;  %v4166_v57 = vld [vmem:[#allocation29 + $0x38] sm:$0xff] }
 0xe69   :  { %3165 = vmax.xlane.f32.xlu1 %v6263_v5  ;;  %3229 = vadd.xlane.f32.xlu2 %v6265_v63 }
 0xe6a   :  { %4506 = vpow2.f32 %v3199_v42  ;;  %3434 = vmatpush.bf16.msrb.mxu0 %v4166_v57 }
 0xe6d   :  { %v3154_v24 = vpop.xlane.xlu0 %3153 }
 0xe6e   :  { %v3180_v46 = vsub.f32 %v3111_v20, %v3154_v24  ;;  %v3140_v20 = vpop.f32.mrf.mxu2 }
 0xe6f   :  { %v6296_v28 = vadd.f32 %v6552_v22, %v3140_v20  ;;  %v4165_v22 = vld [vmem:[#allocation29 + $0x30] sm:$0xff] }
 0xe70   :  { %v6273_v41 = vpop.eup %4506  ;;  %v3201_v62 = vmul.f32 1.442695, %v3180_v46  ;;  %3435 = vmatpush.bf16.msrb.mxu0 %v4165_v22 }
 0xe71   :  { %3167 = vmax.xlane.f32.xlu1 %v6271_v0  ;;  %3231 = vadd.xlane.f32.xlu2 %v6273_v41 }
 0xe72   :  { %4508 = vpow2.f32 %v3201_v62 }
 0xe75   :  { %v3156_v50 = vpop.xlane.xlu1 %3155 }
 0xe76   :  { %v3181_v54 = vsub.f32 %v3114_v51, %v3156_v50 }
 0xe78   :  { %v6281_v37 = vpop.eup %4508  ;;  %v3203_v53 = vmul.f32 1.442695, %v3181_v54 }
 0xe79   :  { %3233 = vadd.xlane.f32.xlu0 %v6281_v37  ;;  %3169 = vmax.xlane.f32.xlu2 %v6279_v61 }
 0xe7a   :  { %4510 = vpow2.f32 %v3203_v53 }
 0xe7d   :  { %v3158_v56 = vpop.xlane.xlu2 %3157 }
 0xe7e   :  { %v3182_v59 = vsub.f32 %v6234_v10, %v3158_v56 }
 0xe80   :  { %v6290_v14 = vpop.eup %4510  ;;  %v3205_v6 = vmul.f32 1.442695, %v3182_v59 }
 0xe81   :  { %3171 = vmax.xlane.f32.xlu2 %v6287_v55  ;;  %3235 = vadd.xlane.f32.xlu0 %v6290_v14 }
 0xe82   :  { %4512 = vpow2.f32 %v3205_v6 }
 0xe85   :  { %v3160_v18 = vpop.xlane.xlu2 %3159 }
 0xe86   :  { %v3183_v51 = vsub.f32 %v6239_v31, %v3160_v18 }
 0xe88   :  { %v6299_v44 = vpop.eup %4512  ;;  %v3207_v11 = vmul.f32 1.442695, %v3183_v51  ;;  %v4163_v51 = vld [vmem:[#allocation29 + $0x20] sm:$0xff] }
 0xe89   :  { %3237 = vadd.xlane.f32.xlu1 %v6299_v44  ;;  %3173 = vmax.xlane.f32.xlu0 %v6296_v28 }
 0xe8a   :  { %4514 = vpow2.f32 %v3207_v11  ;;  %v4162_v11 = vld [vmem:[#allocation29 + $0x18] sm:$0xff] }
 0xe90   :  { %v6303_v10 = vpop.eup %4514 }
 0xe91   :  { %3239 = vadd.xlane.f32.xlu1 %v6303_v10 }
 0xec4   :  { %v3224_v16 = vpop.xlane.xlu0 %3223 }
 0xec5   :  { %4516 = vrcp.f32 %v3224_v16  ;;  %v4161_v16 = vld [vmem:[#allocation29 + $0x10] sm:$0xff] }
 0xecb   :  { %v4517_v49 = vpop.eup %4516 }
 0xecc   :  { %v3162_v23 = vpop.xlane.xlu0 %3161  ;;  %v3226_v34 = vpop.xlane.xlu1 %3225  ;;  %v3271_v2 = vmul.f32 %v4517_v49, %v6242_v40 }
 0xecd   :  { %v3184_v29 = vsub.f32 %v6247_v1, %v3162_v23  ;;  %4518 = vrcp.f32 %v3226_v34  ;;  %v4160_v23 = vld [vmem:[#allocation29 + $0x8] sm:$0xff] }
 0xecf   :  { %v3209_v31 = vmul.f32 1.442695, %v3184_v29 }
 0xed1   :  { %4520 = vpow2.f32 %v3209_v31 }
 0xed3   :  { %v4519_v52 = vpop.eup %4518 }
 0xed4   :  { %v3272_v47 = vmul.f32 %v4519_v52, %v6249_v19  ;;  %v3164_v58 = vpop.xlane.xlu0 %3163  ;;  %v3228_v35 = vpop.xlane.xlu1 %3227 }
 0xed5   :  { %v3185_v7 = vsub.f32 %v6255_v27, %v3164_v58 }
 0xed6   :  { %v3287_v13 = vpack.c.bf16 %v3272_v47, %v3271_v2 }
 0xed7   :  { %v6310_v8 = vpop.eup %4520  ;;  %v3211_v4 = vmul.f32 1.442695, %v3185_v7  ;;  %v6553_v7 = vld [vmem:[#allocation54_spill] sm:$0xff] }
 0xed8   :  { %3241 = vadd.xlane.f32.xlu2 %v6310_v8  ;;  %3304 = vmatmul.bf16.vlgmr.msrb.gmra.mxu3 %v3287_v13  ;;  %v6345_v13 = vperm.slane %v6553_v7, 3 }
 0xed9   :  { %4522 = vpow2.f32 %v3211_v4 }
 0xeda   :  { %4524 = vrcp.f32 %v3228_v35 }
 0xedc   :  { %v3230_v1 = vpop.xlane.xlu2 %3229  ;;  %v3166_v33 = vpop.xlane.xlu1 %3165 }
 0xedd   :  { %4526 = vrcp.f32 %v3230_v1  ;;  %v3186_v40 = vsub.f32 %v6263_v5, %v3166_v33 }
 0xedf   :  { %v6314_v12 = vpop.eup %4522  ;;  %v3213_v19 = vmul.f32 1.442695, %v3186_v40 }
 0xee0   :  { %3243 = vadd.xlane.f32.xlu0 %v6314_v12  ;;  %v4525_v43 = vpop.eup %4524 }
 0xee1   :  { %4528 = vpow2.f32 %v3213_v19  ;;  %v3273_v60 = vmul.f32 %v4525_v43, %v6257_v38 }
 0xee3   :  { %v4527_v30 = vpop.eup %4526 }
 0xee4   :  { %v3232_v9 = vpop.xlane.xlu2 %3231  ;;  %v3168_v27 = vpop.xlane.xlu1 %3167  ;;  %v3274_v21 = vmul.f32 %v4527_v30, %v6265_v63 }
 0xee5   :  { %v3187_v45 = vsub.f32 %v6271_v0, %v3168_v27 }
 0xee6   :  { %v3288_v48 = vpack.c.bf16 %v3274_v21, %v3273_v60 }
 0xee7   :  { %v6320_v25 = vpop.eup %4528  ;;  %v3215_v5 = vmul.f32 1.442695, %v3187_v45 }
 0xee8   :  { %3309 = vmatmul.bf16.gmra.mxu3 %v3288_v48  ;;  %3245 = vadd.xlane.f32.xlu1 %v6320_v25 }
 0xee9   :  { %4530 = vpow2.f32 %v3215_v5 }
 0xeea   :  { %4532 = vrcp.f32 %v3232_v9 }
 0xeec   :  { %v3234_v42 = vpop.xlane.xlu0 %3233  ;;  %v3170_v24 = vpop.xlane.xlu2 %3169 }
 0xeed   :  { %4534 = vrcp.f32 %v3234_v42  ;;  %v3188_v38 = vsub.f32 %v6279_v61, %v3170_v24 }
 0xeef   :  { %v6324_v32 = vpop.eup %4530  ;;  %v3217_v63 = vmul.f32 1.442695, %v3188_v38 }
 0xef0   :  { %3247 = vadd.xlane.f32.xlu2 %v6324_v32  ;;  %v4533_v17 = vpop.eup %4532 }
 0xef1   :  { %4536 = vpow2.f32 %v3217_v63  ;;  %v3275_v62 = vmul.f32 %v4533_v17, %v6273_v41 }
 0xef3   :  { %v4535_v0 = vpop.eup %4534 }
 0xef4   :  { %v3172_v46 = vpop.xlane.xlu2 %3171  ;;  %v3236_v39 = vpop.xlane.xlu0 %3235  ;;  %v3276_v50 = vmul.f32 %v4535_v0, %v6281_v37 }
 0xef5   :  { %v3189_v26 = vsub.f32 %v6287_v55, %v3172_v46 }
 0xef6   :  { %v3289_v54 = vpack.c.bf16 %v3276_v50, %v3275_v62 }
 0xef7   :  { %v6330_v53 = vpop.eup %4536  ;;  %v3219_v61 = vmul.f32 1.442695, %v3189_v26 }
 0xef8   :  { %3249 = vadd.xlane.f32.xlu0 %v6330_v53  ;;  %3314 = vmatmul.bf16.gmra.mxu3 %v3289_v54 }
 0xef9   :  { %4538 = vpow2.f32 %v3219_v61 }
 0xefa   :  { %4540 = vrcp.f32 %v3236_v39 }
 0xefc   :  { %v3174_v15 = vpop.xlane.xlu0 %3173  ;;  %v3238_v56 = vpop.xlane.xlu1 %3237 }
 0xefd   :  { %v3190_v3 = vsub.f32 %v6296_v28, %v3174_v15  ;;  %4542 = vrcp.f32 %v3238_v56  ;;  %v4164_v28 = vld [vmem:[#allocation29 + $0x28] sm:$0xff] }
 0xefe   :  { %3436 = vmatpush.bf16.msrb.mxu0 %v4164_v28 }
 0xeff   :  { %v6334_v36 = vpop.eup %4538  ;;  %v3221_v41 = vmul.f32 1.442695, %v3190_v3 }
 0xf00   :  { %3251 = vadd.xlane.f32.xlu1 %v6334_v36  ;;  %v4541_v37 = vpop.eup %4540 }
 0xf01   :  { %4544 = vpow2.f32 %v3221_v41  ;;  %v3277_v59 = vmul.f32 %v4541_v37, %v6290_v14  ;;  %v4159_v14 = vld [vmem:[#allocation29] sm:$0xff] }
 0xf02   :  { %3437 = vmatpush.bf16.msrb.mxu0 %v4163_v51 }
 0xf03   :  { %v4543_v55 = vpop.eup %4542 }
 0xf04   :  { %v3278_v6 = vmul.f32 %v4543_v55, %v6299_v44  ;;  %v3240_v44 = vpop.xlane.xlu1 %3239 }
 0xf05   :  { %4546 = vrcp.f32 %v3240_v44 }
 0xf06   :  { %v3290_v20 = vpack.c.bf16 %v3278_v6, %v3277_v59  ;;  %3438 = vmatpush.bf16.msrb.mxu0 %v4162_v11 }
 0xf07   :  { %v6339_v18 = vpop.eup %4544 }
 0xf08   :  { %3253 = vadd.xlane.f32.xlu2 %v6339_v18  ;;  %3319 = vmatmul.bf16.gmra.mxu3 %v3290_v20 }
 0xf0a   :  { %3439 = vmatpush.bf16.msrb.mxu0 %v4161_v16 }
 0xf0b   :  { %v4547_v29 = vpop.eup %4546 }
 0xf0c   :  { %v3279_v49 = vmul.f32 %v4547_v29, %v6303_v10 }
 0xf0e   :  { %3440 = vmatpush.bf16.msrb.mxu0 %v4160_v23  ;;  %v6364_v23 = vperm.slane %v6553_v7, 4 }
 0xf12   :  { %3441 = vmatpush.bf16.msrb.mxu0 %v4159_v14 }
 0xf4b   :  { %v3242_v34 = vpop.xlane.xlu2 %3241 }
 0xf4c   :  { %4548 = vrcp.f32 %v3242_v34 }
 0xf52   :  { %v4549_v31 = vpop.eup %4548 }
 0xf53   :  { %v3280_v52 = vmul.f32 %v4549_v31, %v6310_v8  ;;  %v3244_v47 = vpop.xlane.xlu0 %3243 }
 0xf54   :  { %4550 = vrcp.f32 %v3244_v47 }
 0xf55   :  { %v3291_v2 = vpack.c.bf16 %v3280_v52, %v3279_v49 }
 0xf57   :  { %3324 = vmatmul.bf16.gmra.mxu3 %v3291_v2 }
 0xf5a   :  { %v4551_v4 = vpop.eup %4550 }
 0xf5b   :  { %v3305_v58 = vpop.f32.mrf.mxu3  ;;  %v3246_v35 = vpop.xlane.xlu1 %3245  ;;  %v3281_v19 = vmul.f32 %v4551_v4, %v6314_v12 }
 0xf5c   :  { %4552 = vrcp.f32 %v3246_v35  ;;  %v3306_v33 = vadd.f32 %v3305_v58, %v6345_v13 }
 0xf5e   :  { %v3345_v30 = vmax.f32 %v3306_v33, 0.0 }
 0xf62   :  { %v4553_v1 = vpop.eup %4552 }
 0xf63   :  { %v3307_v40 = vpop.f32.mrf.mxu3  ;;  %v3282_v10 = vmul.f32 %v4553_v1, %v6320_v25  ;;  %v3248_v27 = vpop.xlane.xlu2 %3247 }
 0xf64   :  { %v3308_v8 = vadd.f32 %v3307_v40, %v6345_v13  ;;  %4554 = vrcp.f32 %v3248_v27 }
 0xf65   :  { %v3292_v43 = vpack.c.bf16 %v3282_v10, %v3281_v19 }
 0xf66   :  { %v3346_v9 = vmax.f32 %v3308_v8, 0.0 }
 0xf67   :  { %3329 = vmatmul.bf16.gmra.mxu3 %v3292_v43 }
 0xf68   :  { %v3361_v60 = vpack.c.bf16 %v3346_v9, %v3345_v30 }
 0xf6a   :  { %3442 = vmatmul.bf16.vlgmr.msrb.gmra.mxu0 %v3361_v60  ;;  %v4555_v48 = vpop.eup %4554 }
 0xf6b   :  { %v3250_v21 = vpop.xlane.xlu0 %3249  ;;  %v3310_v45 = vpop.f32.mrf.mxu3  ;;  %v3283_v25 = vmul.f32 %v4555_v48, %v6324_v32 }
 0xf6c   :  { %4556 = vrcp.f32 %v3250_v21  ;;  %v3311_v57 = vadd.f32 %v3310_v45, %v6345_v13 }
 0xf6e   :  { %v3347_v63 = vmax.f32 %v3311_v57, 0.0 }
 0xf72   :  { %v4557_v5 = vpop.eup %4556 }
 0xf73   :  { %v3312_v12 = vpop.f32.mrf.mxu3  ;;  %v3284_v42 = vmul.f32 %v4557_v5, %v6330_v53  ;;  %v3252_v0 = vpop.xlane.xlu1 %3251 }
 0xf74   :  { %v3313_v24 = vadd.f32 %v3312_v12, %v6345_v13  ;;  %4558 = vrcp.f32 %v3252_v0 }
 0xf75   :  { %v3293_v38 = vpack.c.bf16 %v3284_v42, %v3283_v25 }
 0xf76   :  { %v3348_v17 = vmax.f32 %v3313_v24, 0.0 }
 0xf77   :  { %3334 = vmatmul.bf16.gmra.mxu3 %v3293_v38 }
 0xf78   :  { %v3362_v46 = vpack.c.bf16 %v3348_v17, %v3347_v63 }
 0xf7a   :  { %3447 = vmatmul.bf16.gmra.mxu0 %v3362_v46  ;;  %v4559_v50 = vpop.eup %4558 }
 0xf7b   :  { %v3315_v39 = vpop.f32.mrf.mxu3  ;;  %v3254_v62 = vpop.xlane.xlu2 %3253  ;;  %v3285_v53 = vmul.f32 %v4559_v50, %v6334_v36 }
 0xf7c   :  { %4560 = vrcp.f32 %v3254_v62  ;;  %v3316_v54 = vadd.f32 %v3315_v39, %v6345_v13 }
 0xf7e   :  { %v3349_v3 = vmax.f32 %v3316_v54, 0.0 }
 0xf82   :  { %v4561_v26 = vpop.eup %4560 }
 0xf83   :  { %v3317_v32 = vpop.f32.mrf.mxu3  ;;  %v3286_v61 = vmul.f32 %v4561_v26, %v6339_v18 }
 0xf84   :  { %v3318_v15 = vadd.f32 %v3317_v32, %v6345_v13 }
 0xf85   :  { %v3294_v56 = vpack.c.bf16 %v3286_v61, %v3285_v53 }
 0xf86   :  { %v3350_v41 = vmax.f32 %v3318_v15, 0.0 }
 0xf87   :  { %3339 = vmatmul.bf16.gmra.mxu3 %v3294_v56 }
 0xf88   :  { %v3363_v37 = vpack.c.bf16 %v3350_v41, %v3349_v3 }
 0xf8a   :  { %3452 = vmatmul.bf16.gmra.mxu0 %v3363_v37 }
 0xf8b   :  { %v3320_v55 = vpop.f32.mrf.mxu3 }
 0xf8c   :  { %v3321_v59 = vadd.f32 %v3320_v55, %v6345_v13 }
 0xf8e   :  { %v3351_v22 = vmax.f32 %v3321_v59, 0.0 }
 0xf93   :  { %v3322_v6 = vpop.f32.mrf.mxu3 }
 0xf94   :  { %v3323_v20 = vadd.f32 %v3322_v6, %v6345_v13 }
 0xf96   :  { %v3352_v28 = vmax.f32 %v3323_v20, 0.0 }
 0xf98   :  { %v3364_v51 = vpack.c.bf16 %v3352_v28, %v3351_v22 }
 0xf9a   :  { %3457 = vmatmul.bf16.gmra.mxu0 %v3364_v51 }
 0xfda   :  { %v3325_v36 = vpop.f32.mrf.mxu3 }
 0xfdb   :  { %v3326_v18 = vadd.f32 %v3325_v36, %v6345_v13 }
 0xfdd   :  { %v3353_v14 = vmax.f32 %v3326_v18, 0.0 }
 0xfe2   :  { %v3327_v11 = vpop.f32.mrf.mxu3 }
 0xfe3   :  { %v3328_v16 = vadd.f32 %v3327_v11, %v6345_v13 }
 0xfe5   :  { %v3354_v44 = vmax.f32 %v3328_v16, 0.0 }
 0xfe7   :  { %v3365_v34 = vpack.c.bf16 %v3354_v44, %v3353_v14  ;;  %v3443_v29 = vpop.f32.mrf.mxu0 }
 0xfe8   :  { %v3444_v31 = vadd.f32 %v3443_v29, %v6364_v23 }
 0xfe9   :  { %3462 = vmatmul.bf16.gmra.mxu0 %v3365_v34 }
 0xfea   :  { %3483 = vst [vmem:[#allocation31] sm:$0xff] %v3444_v31  ;;  %v3330_v49 = vpop.f32.mrf.mxu3 }
 0xfeb   :  { %v3331_v47 = vadd.f32 %v3330_v49, %v6345_v13 }
 0xfed   :  { %v3355_v7 = vmax.f32 %v3331_v47, 0.0 }
 0xfef   :  { %v3445_v52 = vpop.f32.mrf.mxu0 }
 0xff0   :  { %v3446_v2 = vadd.f32 %v3445_v52, %v6364_v23 }
 0xff2   :  { %3484 = vst [vmem:[#allocation31 + $0x8] sm:$0xff] %v3446_v2  ;;  %v3332_v58 = vpop.f32.mrf.mxu3 }
 0xff3   :  { %v3333_v35 = vadd.f32 %v3332_v58, %v6345_v13 }
 0xff5   :  { %v3356_v4 = vmax.f32 %v3333_v35, 0.0 }
 0xff7   :  { %v3366_v1 = vpack.c.bf16 %v3356_v4, %v3355_v7  ;;  %v3448_v33 = vpop.f32.mrf.mxu0 }
 0xff8   :  { %v3449_v40 = vadd.f32 %v3448_v33, %v6364_v23 }
 0xff9   :  { %3467 = vmatmul.bf16.gmra.mxu0 %v3366_v1 }
 0xffa   :  { %3485 = vst [vmem:[#allocation31 + $0x10] sm:$0xff] %v3449_v40  ;;  %v3335_v19 = vpop.f32.mrf.mxu3 }
 0xffb   :  { %v3336_v43 = vadd.f32 %v3335_v19, %v6345_v13 }
 0xffd   :  { %v3357_v27 = vmax.f32 %v3336_v43, 0.0 }
 0xfff   :  { %v3450_v10 = vpop.f32.mrf.mxu0 }
0x1000   :  { %v3451_v8 = vadd.f32 %v3450_v10, %v6364_v23 }
0x1002   :  { %3486 = vst [vmem:[#allocation31 + $0x18] sm:$0xff] %v3451_v8  ;;  %v3337_v30 = vpop.f32.mrf.mxu3 }
0x1003   :  { %v3338_v9 = vadd.f32 %v3337_v30, %v6345_v13 }
0x1005   :  { %v3358_v60 = vmax.f32 %v3338_v9, 0.0 }
0x1007   :  { %v3367_v21 = vpack.c.bf16 %v3358_v60, %v3357_v27  ;;  %v3453_v45 = vpop.f32.mrf.mxu0 }
0x1008   :  { %v3454_v48 = vadd.f32 %v3453_v45, %v6364_v23 }
0x1009   :  { %3472 = vmatmul.bf16.gmra.mxu0 %v3367_v21 }
0x100a   :  { %3487 = vst [vmem:[#allocation31 + $0x20] sm:$0xff] %v3454_v48  ;;  %v3340_v5 = vpop.f32.mrf.mxu3 }
0x100b   :  { %v3341_v25 = vadd.f32 %v3340_v5, %v6345_v13 }
0x100d   :  { %v3359_v38 = vmax.f32 %v3341_v25, 0.0 }
0x100f   :  { %v3455_v57 = vpop.f32.mrf.mxu0 }
0x1010   :  { %v3456_v12 = vadd.f32 %v3455_v57, %v6364_v23 }
0x1012   :  { %3488 = vst [vmem:[#allocation31 + $0x28] sm:$0xff] %v3456_v12  ;;  %v3342_v42 = vpop.f32.mrf.mxu3 }
0x1013   :  { %v3343_v24 = vadd.f32 %v3342_v42, %v6345_v13 }
0x1015   :  { %v3360_v63 = vmax.f32 %v3343_v24, 0.0 }
0x1017   :  { %v3368_v17 = vpack.c.bf16 %v3360_v63, %v3359_v38  ;;  %v3458_v0 = vpop.f32.mrf.mxu0 }
0x1018   :  { %v3459_v46 = vadd.f32 %v3458_v0, %v6364_v23 }
0x1019   :  { %3477 = vmatmul.bf16.gmra.mxu0 %v3368_v17 }
0x101a   :  { %3489 = vst [vmem:[#allocation31 + $0x30] sm:$0xff] %v3459_v46 }
0x101f   :  { %v3460_v39 = vpop.f32.mrf.mxu0 }
0x1020   :  { %v3461_v62 = vadd.f32 %v3460_v39, %v6364_v23 }
0x1022   :  { %3490 = vst [vmem:[#allocation31 + $0x38] sm:$0xff] %v3461_v62 }
0x1066   :  { %v3463_v50 = vpop.f32.mrf.mxu0 }
0x1067   :  { %v3464_v26 = vadd.f32 %v3463_v50, %v6364_v23 }
0x1069   :  { %3491 = vst [vmem:[#allocation31 + $0x40] sm:$0xff] %v3464_v26 }
0x106e   :  { %v3465_v54 = vpop.f32.mrf.mxu0 }
0x106f   :  { %v3466_v32 = vadd.f32 %v3465_v54, %v6364_v23 }
0x1071   :  { %3492 = vst [vmem:[#allocation31 + $0x48] sm:$0xff] %v3466_v32 }
0x1076   :  { %v3468_v13 = vpop.f32.mrf.mxu0 }
0x1077   :  { %v3469_v53 = vadd.f32 %v3468_v13, %v6364_v23 }
0x1079   :  { %3493 = vst [vmem:[#allocation31 + $0x50] sm:$0xff] %v3469_v53 }
0x107e   :  { %v3470_v61 = vpop.f32.mrf.mxu0 }
0x107f   :  { %v3471_v15 = vadd.f32 %v3470_v61, %v6364_v23 }
0x1081   :  { %3494 = vst [vmem:[#allocation31 + $0x58] sm:$0xff] %v3471_v15 }
0x1086   :  { %v3473_v56 = vpop.f32.mrf.mxu0 }
0x1087   :  { %v3474_v3 = vadd.f32 %v3473_v56, %v6364_v23 }
0x1089   :  { %3495 = vst [vmem:[#allocation31 + $0x60] sm:$0xff] %v3474_v3 }
0x108e   :  { %v3475_v41 = vpop.f32.mrf.mxu0 }
0x108f   :  { %v3476_v37 = vadd.f32 %v3475_v41, %v6364_v23 }
0x1091   :  { %3496 = vst [vmem:[#allocation31 + $0x68] sm:$0xff] %v3476_v37 }
0x1096   :  { %v3478_v55 = vpop.f32.mrf.mxu0 }
0x1097   :  { %v3479_v59 = vadd.f32 %v3478_v55, %v6364_v23 }
0x1099   :  { %3497 = vst [vmem:[#allocation31 + $0x70] sm:$0xff] %v3479_v59 }
0x109e   :  { %v3480_v6 = vpop.f32.mrf.mxu0 }
0x109f   :  { %v3481_v20 = vadd.f32 %v3480_v6, %v6364_v23 }
0x10a1   :  { %3498 = vst [vmem:[#allocation31 + $0x78] sm:$0xff] %v3481_v20 }
0x10a2   :  { %3511 = dma.vmem_to_hbm [thread:$0]  %s3504_s10, 2048, %s3506_s28, [#allocation4], %s5075_s1, %s5075_s1, %s5076_s23  }
0x10a3   :  { %5065 = dma.done.wait [#allocation4], 2048  }
0x10a4   :  { %5066 = vsyncadd [#allocation4], 4294965248 }
0x10a5   :  { %3516 = vsyncpa [#allocation3], 1 }
0x10a6   :  { %3517 = vsyncpa [#allocation6], 1 }
0x10a7   :  { %3518 = vsyncpa [#allocation9], 1 }
0x10a8   :  { %3519 = vsyncpa [#allocation12], 1 }
0x10a9   :  { %3520 = vsyncpa [#allocation15], 1 }
0x10aa   :  { %3521 = vsyncpa [#allocation18], 1 }
0x10ab   :  { %3522 = vsyncpa [#allocation21], 1 }
0x10ac   :  { %3523 = vsyncpa [#allocation24], 1 }
0x10ad   :  { %3524 = vsyncpa [#allocation27], 1 }
0x10ae   :  { %3525 = vsyncpa [#allocation30], 1 }
0x10af   :  { %3526 = vsyncpa [#allocation4], 1 }

</bundles_post_ra>
